<compile_context>
chip_gen: v6e
topology: v6e:2x2x1
jax: 0.10.0
libtpu: 0.0.40
codegen_flags: <defaults>
</compile_context>

<pallas_src>
import functools

import jax
import jax.numpy as jnp
from jax.experimental import pallas as pl
from jax.experimental.pallas import tpu as pltpu

IN_FEATURES = 240 * 19    # 4560
OUT_FEATURES = 240 * 30   # 7200
TM_CAP = 256              # max resident batch rows before M gets tiled


def _pick_config():
    """Per-generation (tn, vmem_limit_bytes); see notes at top of file."""
    try:
        kind = jax.devices()[0].device_kind.lower()
    except Exception:
        kind = ""
    if "v7" in kind:
        # 64 MiB per-TC VMEM, 2 TensorCores: 6 tiles -> perfect 3/3 split.
        return 1280, 48 * 1024 * 1024
    if "v5" in kind or "v6" in kind:
        # 128 MiB VMEM: 3 big contiguous tiles, minimal (+1.3%) column padding.
        return 2432, 64 * 1024 * 1024
    # Unknown generation: conservative, known-good configuration.
    return 384, 32 * 1024 * 1024


def _linear_kernel(x_ref, w_ref, b_ref, o_ref):
    """One (tm, tn) output tile: full-K matmul + bias add, no accumulator."""
    tn = o_ref.shape[-1]
    j = pl.program_id(1)                      # N-tile index
    col0 = pl.multiple_of(j * tn, 128)        # 128-aligned slice of resident bias
    bias = b_ref[:, pl.ds(col0, tn)]          # (1, tn), broadcasts over rows
    x = x_ref[...].astype(w_ref.dtype)        # bf16 activations -> native MXU path
    o_ref[...] = (
        jnp.dot(x, w_ref[...], preferred_element_type=jnp.float32) + bias
    ).astype(o_ref.dtype)


@functools.partial(jax.jit, static_argnames=("n_out", "vmem_limit_bytes"))
def linear_pallas(x, w_tiles, b_row, *, n_out, vmem_limit_bytes):
    """y = x @ W^T + b with W pre-packed as w_tiles[Ntiles, K, tn] (bf16)."""
    M, K = x.shape
    n_tiles, K2, tn = w_tiles.shape
    Np = n_tiles * tn
    assert K == K2
    assert tn % 128 == 0   # legal tn for Np=7296: {128, 384, 2432, 7296}; 1280 for Np=7680
    assert b_row.shape == (1, Np)

    # Batch guard: keep small batches fully resident, tile large ones.
    if M <= TM_CAP:
        tm, Mp = M, M
    else:
        tm = TM_CAP                          # multiple of 8
        Mp = pl.cdiv(M, tm) * tm
    x_in = x if Mp == M else jnp.pad(x, ((0, Mp - M), (0, 0)))

    grid = (Mp // tm, n_tiles)

    out = pl.pallas_call(
        _linear_kernel,
        out_shape=jax.ShapeDtypeStruct((Mp, Np), x.dtype),
        grid_spec=pltpu.PrefetchScalarGridSpec(
            num_scalar_prefetch=0,
            grid=grid,
            in_specs=[
                # Activations: grid-invariant over j -> resident per M-tile.
                pl.BlockSpec((tm, K), lambda i, j: (i, 0)),
                # Weight tile: one fully contiguous bf16 slab per grid step
                # (leading tile dim squeezed out of the kernel ref).
                pl.BlockSpec((None, K, tn), lambda i, j: (j, 0, 0)),
                # Bias: single resident (1, Np) block, sliced in-kernel.
                pl.BlockSpec((1, Np), lambda i, j: (0, 0)),
            ],
            out_specs=pl.BlockSpec((tm, tn), lambda i, j: (i, j)),
        ),
        compiler_params=pltpu.CompilerParams(
            dimension_semantics=("parallel", "parallel"),  # lets v7x split N over both TCs
            vmem_limit_bytes=vmem_limit_bytes,
        ),
    )(x_in, w_tiles, b_row)

    return out[:M, :n_out]


class SimpleModelPallas:
    """JAX/Pallas equivalent of the PyTorch `simple_model` module (forward)."""

    def __init__(self, key, dropout=0.0, dtype=jnp.float32,
                 weight_dtype=jnp.bfloat16, tn=None, vmem_limit_bytes=None):
        # TODO(synk): training-mode dropout (pltpu PRNG mask) not implemented;
        # inference identity path only.
        self.dropout = dropout
        self.weight_dtype = weight_dtype      # bf16 streamed weights (pass jnp.float32 for exact parity)

        cfg_tn, cfg_vmem = _pick_config()
        self.tn = tn or cfg_tn
        self.vmem_limit_bytes = vmem_limit_bytes or cfg_vmem
        assert self.tn % 128 == 0

        kw, kb = jax.random.split(key)
        # Deterministic init mirroring nn.Linear's uniform(-1/sqrt(in), 1/sqrt(in)).
        bound = 1.0 / jnp.sqrt(jnp.float32(IN_FEATURES))
        self.weight = jax.random.uniform(
            kw, (OUT_FEATURES, IN_FEATURES), dtype, minval=-bound, maxval=bound
        )
        self.bias = jax.random.uniform(
            kb, (OUT_FEATURES,), dtype, minval=-bound, maxval=bound
        )

        # One-time transpose + pad + tile-major repack into [Ntiles, K, tn]
        # so every in-kernel weight DMA is a single contiguous slab.
        n_tiles = pl.cdiv(OUT_FEATURES, self.tn)
        np_cols = n_tiles * self.tn
        n_pad = np_cols - OUT_FEATURES
        w_kn = jnp.pad(self.weight.T.astype(self.weight_dtype), ((0, 0), (0, n_pad)))
        self.weight_tiles = (
            w_kn.reshape(IN_FEATURES, n_tiles, self.tn).transpose(1, 0, 2)
        )  # [Ntiles, K, tn]
        # Bias stays f32 (tiny; added after the f32-accumulated dot).
        self.bias_row = jnp.pad(self.bias, ((0, n_pad),)).reshape(1, -1)  # [1, Np]
        # NOTE: fp8 weights with per-column scales (v7x-only review option)
        # intentionally not enabled here.

    def __call__(self, x):
        # Dropout at inference is identity; the linear hot path runs in Pallas.
        return linear_pallas(
            x, self.weight_tiles, self.bias_row,
            n_out=OUT_FEATURES, vmem_limit_bytes=self.vmem_limit_bytes,
        )


if __name__ == "__main__":
    key = jax.random.PRNGKey(0)
    k_model, k_x = jax.random.split(key)

    batch = 2
    x = jax.random.normal(k_x, (batch, IN_FEATURES), jnp.float32)

    model = SimpleModelPallas(k_model, dropout=0.0)

    y = jax.block_until_ready(model(x))

    # Reference applying the same bf16 weight/activation quantization the
    # kernel streams (bf16 packing intentionally shifts numerics vs pure f32).
    wq = model.weight.astype(model.weight_dtype).astype(jnp.float32)
    xq = x.astype(model.weight_dtype).astype(jnp.float32)
    y_ref = xq @ wq.T + model.bias

    assert y.shape == (batch, OUT_FEATURES)
    max_err = float(jnp.max(jnp.abs(y - y_ref)))
    assert jnp.allclose(y, y_ref, atol=1e-2, rtol=1e-2), max_err

    print("KERNEL_OK")
</pallas_src>

<mosaic_0001>
module attributes {stable_mosaic.version = 11 : i64} {
  func.func @_linear_kernel(%arg0: i32, %arg1: i32, %arg2: memref<2x4560xf32, #tpu.memory_space<vmem>>, %arg3: memref<1x4560x384xbf16, #tpu.memory_space<vmem>>, %arg4: memref<1x7296xf32, #tpu.memory_space<vmem>>, %arg5: memref<2x384xf32, #tpu.memory_space<vmem>>) attributes {dimension_semantics = [#tpu.dimension_semantics<parallel>, #tpu.dimension_semantics<parallel>], iteration_bounds = array<i64: 1, 19>, scalar_prefetch = 0 : i64, scratch_operands = 0 : i64, tpu.core_type = #tpu.core_type<tc>, window_params = [{transform_indices = @transform_0, window_bounds = array<i64: 2, 4560>}, {transform_indices = @transform_1, window_bounds = array<i64: 1, 4560, 384>}, {pipeline_mode = #tpu.pipeline_mode<synchronous>, transform_indices = @transform_2, window_bounds = array<i64: 1, 7296>}, {transform_indices = @transform_3, window_bounds = array<i64: 2, 384>}]} {
    %c384_i32 = arith.constant 384 : i32
    %0 = arith.muli %arg1, %c384_i32 : i32
    %1 = tpu.assume_multiple %0, 128 : i32
    %c0 = arith.constant 0 : index
    %2 = arith.index_cast %1 : i32 to index
    %3 = vector.load %arg4[%c0, %2] : memref<1x7296xf32, #tpu.memory_space<vmem>>, vector<1x384xf32>
    %c0_0 = arith.constant 0 : index
    %c0_1 = arith.constant 0 : index
    %4 = vector.load %arg2[%c0_0, %c0_1] : memref<2x4560xf32, #tpu.memory_space<vmem>>, vector<2x4560xf32>
    %5 = arith.truncf %4 : vector<2x4560xf32> to vector<2x4560xbf16>
    %c0_2 = arith.constant 0 : index
    %c0_3 = arith.constant 0 : index
    %c0_4 = arith.constant 0 : index
    %6 = vector.load %arg3[%c0_2, %c0_3, %c0_4] : memref<1x4560x384xbf16, #tpu.memory_space<vmem>>, vector<1x4560x384xbf16>
    %7 = vector.shape_cast %6 : vector<1x4560x384xbf16> to vector<4560x384xbf16>
    %cst = arith.constant dense<0.000000e+00> : vector<2x384xf32>
    %8 = tpu.matmul %5, %7, %cst {dimension_numbers = #tpu.dot_dimension_numbers<[1], [0], [0], [1], [0, 0, 1, 1], [], []>} : vector<2x4560xbf16>, vector<4560x384xbf16>, vector<2x384xf32> -> vector<2x384xf32>
    %9 = vector.broadcast %3 : vector<1x384xf32> to vector<2x384xf32>
    %10 = arith.addf %8, %9 : vector<2x384xf32>
    %c0_5 = arith.constant 0 : index
    %c0_6 = arith.constant 0 : index
    %11 = vector.load %arg5[%c0_5, %c0_6] : memref<2x384xf32, #tpu.memory_space<vmem>>, vector<2x384xf32>
    tpu.vector_store %arg5[%c0_5, %c0_6], %10 {strides = array<i32>} : memref<2x384xf32, #tpu.memory_space<vmem>>, vector<2x384xf32>,
    return
  }
  func.func @transform_0(%arg0: i32, %arg1: i32) -> (i32, i32) {
    %c0_i32 = arith.constant 0 : i32
    %c0_i32_0 = arith.constant 0 : i32
    return %arg0, %c0_i32 : i32, i32
  }
  func.func @transform_1(%arg0: i32, %arg1: i32) -> (i32, i32, i32) {
    %c0_i32 = arith.constant 0 : i32
    %c0_i32_0 = arith.constant 0 : i32
    %c0_i32_1 = arith.constant 0 : i32
    return %arg1, %c0_i32, %c0_i32_0 : i32, i32, i32
  }
  func.func @transform_2(%arg0: i32, %arg1: i32) -> (i32, i32) {
    %c0_i32 = arith.constant 0 : i32
    %c0_i32_0 = arith.constant 0 : i32
    %c0_i32_1 = arith.constant 0 : i32
    return %c0_i32, %c0_i32_0 : i32, i32
  }
  func.func @transform_3(%arg0: i32, %arg1: i32) -> (i32, i32) {
    %c0_i32 = arith.constant 0 : i32
    return %arg0, %arg1 : i32, i32
  }
}

</mosaic_0001>

<bundles_post_ra>
// kernel: linear_pallas.1
= control target key start
LH: loop header
LB: loop body
LE: loop exit
PB: predicated region body
PF: predicated region fallthrough
CT: control target
= control target key end

     0   :  { %s11880_s0 = inlined_call_operand.hbm [shape: f32[2,4560], index: 0, kind: input, shape index: {}]   ;;  %s11881_s1 = inlined_call_operand.hbm [shape: bf16[19,4560,384], index: 1, kind: input, shape index: {}]   ;;  %s11882_s2 = inlined_call_operand.hbm [shape: f32[1,7296], index: 2, kind: input, shape index: {}]   ;;  %s11883_s3 = inlined_call_operand.hbm [shape: f32[2,7296], index: 3, kind: output, shape index: {}]  }
   0x1   :  { %11889 = sst [smem:[#allocation13_spill]] %s11880_s0 }
   0x2   :  { %8 = vsyncpa [#allocation3], 0 }
   0x3   :  { %9 = vsyncpa [#allocation6], 0 }
   0x4   :  { %11 = vsyncpa [#allocation6 + $0x1], 0 }
   0x5   :  { %12 = vsyncpa [#allocation4], 0 }
   0x6   :  { %14 = vsyncpa [#allocation4 + $0x1], 0  ;;  %s10491_s12 = smov 0   ;;  %s10493_s13 = smov 0  }
   0x7   :  { %s10495_s14 = smov 0   ;;  %s10497_s15 = smov 0  }
   0x8   :  { %s10499_s16 = smov 0   ;;  %s10501_s17 = smov 0  }
   0x9 LB: > { %s10522_s18 = sadd.s32 4294967295, %s10461_s17   ;;  %s7808_s19 = sadd.s32 4294967294, %s10461_s17   ;;  %s10461_s17 = sphi %s10501_s17, %s20_s17   ;;  %s10457_s16 = sphi %s10499_s16, %s11911_s16   ;;  %s10453_s15 = sphi %s10497_s15, %s11910_s15   ;;  %s10449_s14 = sphi %s10495_s14, %s11909_s14   ;;  %s10445_s13 = sphi %s10493_s13, %s11908_s13   ;;  %s10441_s12 = sphi %s10491_s12, %s11907_s12  }
   0xa   : > { %s65_s20 = sadd.s32 1, %s10449_s14  ;;  %p72_p0 = scmp.ne.s32.totalorder %s10449_s14, %s10445_s13 }
   0xb   : > { %p73_p1 = scmp.eq.s32.totalorder %s10461_s17, 0  ;;  %p78_p2 = scmp.ne.s32.totalorder %s10445_s13, %s10441_s12 }
   0xc   : > { %p11884_p3 = scmp.eq.s32.totalorder %s10522_s18, 0  ;;  %p125_p4 = scmp.eq.s32.totalorder %s10522_s18, 18 }
   0xd   : > { %p10533_p5 = por %p73_p1, %p72_p0  ;;  %p131_p6 = scmp.eq.s32.totalorder %s7808_s19, 18 }
   0xe   : > { %p10539_p7 = por %p11884_p3, %p78_p2  ;;  %p10543_p8 = por %p125_p4, %p72_p0 }
   0xf   : > { %p10547_p9 = por %p131_p6, %p78_p2  ;;  %p7809_p10 = scmp.ge.s32.totalorder %s10461_s17, 1 }
  0x10   : > { %s11891_s22 = scalar_select %p10539_p7, 1, 0 }
  0x11   : > { %s11892_s23 = scalar_select %p10543_p8, 1, 0 }
  0x12   : > { %s11893_s24 = scalar_select %p10547_p9, 1, 0 }
  0x13   : > { %p138_p11 = scmp.lt.s32.totalorder %s10461_s17, 20  ;;  %s10463_s26 = smov [#allocation7]  }
  0x14   : > { %s165_s27 = sshll.u32 %s10463_s26, 4  ;;  %p9085_p13 = scmp.lt.s32.totalorder %s10461_s17, 19  ;;  %s166_s27 = int_to_ptr.vmem [resolvable:$true] %s165_s27 }
  0x15   : > { %p10553_p12 = pnand %p7809_p10, %p138_p11  ;;  %s10464_s30 = smov [#allocation2]  }
  0x16   : > { %p10562_p1 = pnand %p9085_p13, %p10533_p5  ;;  %s154_s4 = sshll.u32 %s10464_s30, 4  ;;  %s155_s4 = int_to_ptr.vmem [resolvable:$true] %s154_s4 }
  0x17   : > { %s11894_s25 = scalar_select %p10553_p12, 1, 0 }
  0x18   : > { %p9068_p0 = pneg %p10553_p12  ;;  %s10304_s5 = scalar_lea.vmem %s166_s27, 912 }
  0x19   : > { %s11895_s28 = scalar_select %p10562_p1, 1, 0 }
  0x1a   : > { %p10568_p2 = pnand %p9068_p0, %p11884_p3  ;;  %p10305_p6 = scmp.ne.s32.totalorder %s166_s27, %s10304_s5 }
  0x1b   : > { %s10311_s6 = scalar_lea.vmem %s166_s27, 928  ;;  %p10312_p11 = scmp.lt.s32.totalorder %s166_s27, %s166_s27 }
  0x1c   : > { %p10295_p4 = pneg %p10568_p2  ;;  %p10313_p13 = scmp.lt.s32.totalorder %s10311_s6, %s10304_s5 }
  0x1e   : > { %p10307_p5 = pnand %p10305_p6, %p10295_p4  ;;  %p10314_p0 = por %p10313_p13, %p10312_p11 }
  0x20   : > { %p10308_p10 = pneg %p10307_p5 }
  0x22   : > { %p10315_p3 = pnand %p10314_p0, %p10308_p10 }
  0x24   : > { %10318 = shalt.err (!%p10315_p3)
}
  0x25   : > { %9074 = dma.hbm_to_vmem [thread:$0]  (!%p10568_p2), %s11882_s2, 912, %s166_s27, [#allocation6]  }
  0x26   : > { %s10330_s9 = scalar_lea.vmem %s155_s4, 1152  ;;  %p10338_p5 = scmp.lt.s32.totalorder %s155_s4, %s155_s4 }
  0x27   : > { %p10331_p9 = scmp.ne.s32.totalorder %s155_s4, %s10330_s9  ;;  %p10339_p7 = scmp.lt.s32.totalorder %s10330_s9, %s10330_s9 }
  0x29   : > { %p10333_p8 = pnand %p10331_p9, %p10295_p4  ;;  %p10340_p12 = por %p10339_p7, %p10338_p5 }
  0x2b   : > { %p10334_p6 = pneg %p10333_p8 }
  0x2d   : > { %p10341_p1 = pnand %p10340_p12, %p10334_p6 }
  0x2f   : > { %10344 = shalt.err (!%p10341_p1)
}
  0x30   : > { %s11897_s0 = sld [smem:[#allocation13_spill]]  ;;  %s176_s19 = sand.u32 1, %s10461_s17  }
  0x31   : > { %s29_s21 = sadd.s32 1, %s10457_s16  ;;  %s178_s26 = sand.u32 1, %s10449_s14  }
  0x32   : > { %p30_p3 = scmp.ge.s32.totalorder %s29_s21, 19  ;;  %s9052_s27 = smul.u32 6840, %s178_s26 }
  0x33   : > { %s9053_s30 = smul.u32 109440, %s10457_s16  ;;  %s177_s10 = scalar_lea.sflag [#allocation6], %s176_s19 }
  0x34   : > { %s11913_s21 = smov (%p30_p3, %s29_s21), 0  ;;  %s180_s8 = scalar_lea.vmem [#allocation5], %s9052_s27 }
  0x35   : > { %s186_s6 = scalar_lea.hbm %s11881_s1, %s9053_s30  ;;  %s62_s7 = ssub.s32 %s10457_s16, %s11913_s21 }
  0x36   : > { %9071 = dma.hbm_to_vmem [thread:$0]  (!%p10568_p2), %s11897_s0, 1152, %s155_s4, [#allocation3]  }
  0x37   : > { %s187_s9 = sshll.u32 %s180_s8, 4  ;;  %p63_p7 = scmp.eq.s32.totalorder %s62_s7, 0  ;;  %s188_s9 = int_to_ptr.vmem [resolvable:$true] %s187_s9 }
  0x38   : > { %p11898_p8 = scmp.ne.s32.totalorder %s11895_s28, 0  ;;  %s10358_s11 = scalar_lea.vmem %s188_s9, 109440 }
  0x39   : > { %s10604_s4 = scalar_select %p63_p7, %s10449_s14, %s65_s20  }
  0x3a   : > { %p10347_p9 = pneg %p11898_p8  ;;  %p10359_p12 = scmp.ne.s32.totalorder %s188_s9, %s10358_s11 }
  0x3b   : > { %s10465_s26 = smov [#allocation5]  }
  0x3c   : > { %p10361_p1 = pnand %p10359_p12, %p10347_p9  ;;  %s10363_s0 = sshll.u32 %s10465_s26, 4  ;;  %s10364_s0 = int_to_ptr.vmem [resolvable:$false] %s10363_s0 }
  0x3d   : > { %s10365_s29 = scalar_lea.vmem %s10364_s0, 218880  ;;  %p10366_p4 = scmp.lt.s32.totalorder %s188_s9, %s10364_s0 }
  0x3e   : > { %p10362_p2 = pneg %p10361_p1  ;;  %p10367_p10 = scmp.lt.s32.totalorder %s10365_s29, %s10358_s11 }
  0x40   : > { %p10368_p11 = por %p10367_p10, %p10366_p4 }
  0x42   : > { %p10369_p13 = pnand %p10368_p11, %p10362_p2 }
  0x44   : > { %10372 = shalt.err (!%p10369_p13)
}
  0x45   : > { %s10466_s27 = smov 192   ;;  %s10467_s20 = smov 12  }
  0x46   : > { %9078 = dma.hbm_to_vmem [thread:$0]  (!%p11898_p8), %s186_s6, 109440, %s188_s9, %s177_s10, %s10466_s27, %s10466_s27, %s10467_s20  }
  0x47   : > { %p11899_p0 = scmp.ne.s32.totalorder %s11894_s25, 0 }
  0x48   : > { %p11900_p6 = scmp.eq.s32.totalorder (!%p11899_p0), %s10522_s18, 0 }
  0x49   : > { %199 = sbr.rel (%p11899_p0) target bundleno = 1184 (0x4a0), region = 32 }
  0x4e   : > { %10424 = dma.done.wait (%p11900_p6), [#allocation3], 1152   ;;  %p11901_p5 = pmov %p11900_p6 }
  0x4f   : > { %s205_s0 = sand.u32 1, %s10522_s18   ;;  %s10618_s19 = sand.u32 1, %s10445_s13  }
  0x50   : > { %10426 = vsyncadd (%p11901_p5), [#allocation3], 4294966144  ;;  %s9054_s30 = smul.u32 6840, %s10618_s19  ;;  %s206_s5 = scalar_lea.sflag [#allocation6], %s205_s0 }
  0x51   : > { %p11902_p3 = scmp.ne.s32.totalorder %s11891_s22, 0 }
  0x52   : > { %s10621_s28 = scalar_lea.vmem [#allocation5], %s9054_s30 }
  0x53   : > { %10428 = dma.done.wait (%p11902_p3), %s206_s5, 109440  }
  0x54   : > { %10430 = vsyncadd (%p11902_p3), %s206_s5, 4294857856  ;;  %p11903_p7 = pmov %p11901_p5 }
  0x55   : > { %p11904_p8 = pmov %p11901_p5 }
  0x56   : > { %10432 = dma.done.wait (%p11903_p7), [#allocation6], 912  }
  0x57   : > { %10434 = vsyncadd (%p11904_p8), [#allocation6], 4294966384  ;;  %v9143_v0 = vld [vmem:[%s10621_s28 + $0xac] ss:$12 sps:$4 sm:$0xff]   ;;  %v9147_v2 = vld [vmem:[%s10621_s28 + $0xa8] ss:$12 sps:$4 sm:$0xff]   ;;  %v265_v38 = vlaneseq }
  0x58   : > { %v9145_v1 = vld [vmem:[%s10621_s28 + $0x22c] ss:$12 sps:$4 sm:$0xff]   ;;  %6206 = vmatprep.subr.bf16.mxu0 %v9143_v0  ;;  %v9148_v3 = vld [vmem:[%s10621_s28 + $0x228] ss:$12 sps:$4 sm:$0xff]   ;;  %v9153_v6 = vld [vmem:[%s10621_s28 + $0x90] ss:$12 sps:$4 sm:$0xff]  }
  0x59   : > { %6247 = vmatprep.subr.bf16.mxu1 %v9145_v1  ;;  %v9149_v4 = vld [vmem:[%s10621_s28 + $0x94] ss:$12 sps:$4 sm:$0xff]   ;;  %6207 = vmatpush1.bf16.msra.mxu0 %v9147_v2  ;;  %v9154_v7 = vld [vmem:[%s10621_s28 + $0x210] ss:$12 sps:$4 sm:$0xff]   ;;  %v9159_v10 = vld [vmem:[%s10621_s28 + $0x78] ss:$12 sps:$4 sm:$0xff]  }
  0x5a   : > { %6248 = vmatpush1.bf16.msra.mxu1 %v9148_v3  ;;  %v9151_v5 = vld [vmem:[%s10621_s28 + $0x214] ss:$12 sps:$4 sm:$0xff]   ;;  %6208 = vmatprep.subr.bf16.mxu0 %v9149_v4  ;;  %v9155_v8 = vld [vmem:[%s10621_s28 + $0x7c] ss:$12 sps:$4 sm:$0xff]   ;;  %v9160_v11 = vld [vmem:[%s10621_s28 + $0x1f8] ss:$12 sps:$4 sm:$0xff]  }
  0x5b   : > { %6249 = vmatprep.subr.bf16.mxu1 %v9151_v5  ;;  %v9157_v9 = vld [vmem:[%s10621_s28 + $0x1fc] ss:$12 sps:$4 sm:$0xff]   ;;  %v9161_v12 = vld [vmem:[%s10621_s28 + $0x64] ss:$12 sps:$4 sm:$0xff]   ;;  %v9165_v14 = vld [vmem:[%s10621_s28 + $0x60] ss:$12 sps:$4 sm:$0xff]  }
  0x5c   : > { %v9163_v13 = vld [vmem:[%s10621_s28 + $0x1e4] ss:$12 sps:$4 sm:$0xff]   ;;  %v9166_v15 = vld [vmem:[%s10621_s28 + $0x1e0] ss:$12 sps:$4 sm:$0xff]   ;;  %v9171_v18 = vld [vmem:[%s10621_s28 + $0x48] ss:$12 sps:$4 sm:$0xff]  }
  0x5d   : > { %6209 = vmatpush1.bf16.msra.mxu0 %v9153_v6  ;;  %v9167_v16 = vld [vmem:[%s10621_s28 + $0x4c] ss:$12 sps:$4 sm:$0xff]   ;;  %v9172_v19 = vld [vmem:[%s10621_s28 + $0x1c8] ss:$12 sps:$4 sm:$0xff]   ;;  %v9177_v22 = vld [vmem:[%s10621_s28 + $0x30] ss:$12 sps:$4 sm:$0xff]  }
  0x5e   : > { %6250 = vmatpush1.bf16.msra.mxu1 %v9154_v7  ;;  %6210 = vmatprep.subr.bf16.mxu0 %v9155_v8  ;;  %v9169_v17 = vld [vmem:[%s10621_s28 + $0x1cc] ss:$12 sps:$4 sm:$0xff]   ;;  %v9173_v20 = vld [vmem:[%s10621_s28 + $0x34] ss:$12 sps:$4 sm:$0xff]   ;;  %v9178_v23 = vld [vmem:[%s10621_s28 + $0x1b0] ss:$12 sps:$4 sm:$0xff]  }
  0x5f   : > { %6251 = vmatprep.subr.bf16.mxu1 %v9157_v9  ;;  %v9175_v21 = vld [vmem:[%s10621_s28 + $0x1b4] ss:$12 sps:$4 sm:$0xff]   ;;  %v9179_v24 = vld [vmem:[%s10621_s28 + $0x1c] ss:$12 sps:$4 sm:$0xff]   ;;  %v9183_v26 = vld [vmem:[%s10621_s28 + $0x18] ss:$12 sps:$4 sm:$0xff]  }
  0x60   : > { %v9181_v25 = vld [vmem:[%s10621_s28 + $0x19c] ss:$12 sps:$4 sm:$0xff]   ;;  %v9184_v27 = vld [vmem:[%s10621_s28 + $0x198] ss:$12 sps:$4 sm:$0xff]   ;;  %v9189_v30 = vld [vmem:[%s10621_s28] ss:$12 sps:$4 sm:$0xff]  }
  0x61   : > { %6211 = vmatpush1.bf16.msra.mxu0 %v9159_v10  ;;  %v9185_v28 = vld [vmem:[%s10621_s28 + $0x4] ss:$12 sps:$4 sm:$0xff]   ;;  %v9190_v31 = vld [vmem:[%s10621_s28 + $0x180] ss:$12 sps:$4 sm:$0xff]   ;;  %v9195_v34 = vld [vmem:[%s10621_s28 + $0x168] ss:$12 sps:$4 sm:$0xff]  }
  0x62   : > { %6252 = vmatpush1.bf16.msra.mxu1 %v9160_v11  ;;  %6212 = vmatprep.subr.bf16.mxu0 %v9161_v12  ;;  %v9187_v29 = vld [vmem:[%s10621_s28 + $0x184] ss:$12 sps:$4 sm:$0xff]   ;;  %v9191_v32 = vld [vmem:[%s10621_s28 + $0x16c] ss:$12 sps:$4 sm:$0xff]   ;;  %v9196_v35 = vld [vmem:[%s10621_s28 + $0x2e8] ss:$12 sps:$4 sm:$0xff]  }
  0x63   : > { %6253 = vmatprep.subr.bf16.mxu1 %v9163_v13  ;;  %v9193_v33 = vld [vmem:[%s10621_s28 + $0x2ec] ss:$12 sps:$4 sm:$0xff]   ;;  %v10468_v36 = vmov 1983009808   ;;  %v9197_v39 = vld [vmem:[%s10621_s28 + $0x154] ss:$12 sps:$4 sm:$0xff]  }
  0x64   : > { %v263_v37 = vunpack.c.l.s4 %v10468_v36  ;;  %v9199_v40 = vld [vmem:[%s10621_s28 + $0x2d4] ss:$12 sps:$4 sm:$0xff]   ;;  %v9201_v41 = vld [vmem:[%s10621_s28 + $0x150] ss:$12 sps:$4 sm:$0xff]   ;;  %v10670_v43 = vshrl.u32 %v265_v38, 7  ;;  %s238_s18 = smul.u32 384, %s10453_s15 }
  0x65   : > { %6213 = vmatpush1.bf16.msra.mxu0 %v9165_v14  ;;  %v9202_v44 = vld [vmem:[%s10621_s28 + $0x2d0] ss:$12 sps:$4 sm:$0xff]   ;;  %v9207_v47 = vld [vmem:[%s10621_s28 + $0x138] ss:$12 sps:$4 sm:$0xff]   ;;  %v9213_v53 = vld [vmem:[%s10621_s28 + $0x120] ss:$12 sps:$4 sm:$0xff]  }
  0x66   : > { %6254 = vmatpush1.bf16.msra.mxu1 %v9166_v15  ;;  %6214 = vmatprep.subr.bf16.mxu0 %v9167_v16  ;;  %v264_v42 = vunpack.c.0.s8 %v263_v37  ;;  %v9203_v45 = vld [vmem:[%s10621_s28 + $0x13c] ss:$12 sps:$4 sm:$0xff]   ;;  %v9208_v48 = vld [vmem:[%s10621_s28 + $0x2b8] ss:$12 sps:$4 sm:$0xff]   ;;  %v9214_v56 = vld [vmem:[%s10621_s28 + $0x2a0] ss:$12 sps:$4 sm:$0xff]  }
  0x67   : > { %6255 = vmatprep.subr.bf16.mxu1 %v9169_v17  ;;  %v9205_v46 = vld [vmem:[%s10621_s28 + $0x2bc] ss:$12 sps:$4 sm:$0xff]   ;;  %v9209_v50 = vld [vmem:[%s10621_s28 + $0x124] ss:$12 sps:$4 sm:$0xff]   ;;  %v9215_v57 = vld [vmem:[%s10621_s28 + $0x10c] ss:$12 sps:$4 sm:$0xff]  }
  0x68   : > { %v10678_v49 = vsub.s32 %v264_v42, %v10670_v43  ;;  %v9211_v51 = vld [vmem:[%s10621_s28 + $0x2a4] ss:$12 sps:$4 sm:$0xff]   ;;  %v9217_v58 = vld [vmem:[%s10621_s28 + $0x28c] ss:$12 sps:$4 sm:$0xff]   ;;  %v9219_v61 = vld [vmem:[%s10621_s28 + $0x108] ss:$12 sps:$4 sm:$0xff]  }
  0x69   : > { %6215 = vmatpush1.bf16.msra.mxu0 %v9171_v18  ;;  %v243_v52 = vld [vmem:[#allocation2] sm:$0xff]  ;;  %v9220_v0 = vld [vmem:[%s10621_s28 + $0x288] ss:$12 sps:$4 sm:$0xff]   ;;  %s10969_s22 = sshra.s32 %s238_s18, 7  ;;  %vm6202_vm0 = vcmask 654336   ;;  %s9055_s6 = smul.u32 6, %s10618_s19 }
  0x6a   : > { %6256 = vmatpush1.bf16.msra.mxu1 %v9172_v19  ;;  %6216 = vmatprep.subr.bf16.mxu0 %v9173_v20  ;;  %v268_v54 = vrot.slane %v243_v52, %v10678_v49  ;;  %v261_v55 = vcombine.high %v243_v52, %v243_v52  ;;  %v9221_v1 = vld [vmem:[%s10621_s28 + $0xf4] ss:$12 sps:$4 sm:$0xff]   ;;  %v9225_v4 = vld [vmem:[%s10621_s28 + $0xf0] ss:$12 sps:$4 sm:$0xff]   ;;  %v9231_v8 = vld [vmem:[%s10621_s28 + $0xd8] ss:$12 sps:$4 sm:$0xff]  }
  0x6b   : > { %6257 = vmatprep.subr.bf16.mxu1 %v9175_v21  ;;  %v9223_v2 = vld [vmem:[%s10621_s28 + $0x274] ss:$12 sps:$4 sm:$0xff]   ;;  %v9226_v5 = vld [vmem:[%s10621_s28 + $0x270] ss:$12 sps:$4 sm:$0xff]   ;;  %v9232_v9 = vld [vmem:[%s10621_s28 + $0x258] ss:$12 sps:$4 sm:$0xff]  }
  0x6c   : > { %v276_v59 = vcombine.high %v268_v54, %v268_v54  ;;  %v275_v60 = vrot.slane %v261_v55, %v10678_v49  ;;  %v9227_v6 = vld [vmem:[%s10621_s28 + $0xdc] ss:$12 sps:$4 sm:$0xff]   ;;  %v9233_v10 = vld [vmem:[%s10621_s28 + $0xc4] ss:$12 sps:$4 sm:$0xff]   ;;  %v9237_v12 = vld [vmem:[%s10621_s28 + $0xc0] ss:$12 sps:$4 sm:$0xff]   ;;  %v10710_v16 = vpack.c.bf16 %v268_v54, %v268_v54 }
  0x6d   : > { %6217 = vmatpush1.bf16.msra.mxu0 %v9177_v22  ;;  %v9229_v7 = vld [vmem:[%s10621_s28 + $0x25c] ss:$12 sps:$4 sm:$0xff]   ;;  %v9235_v11 = vld [vmem:[%s10621_s28 + $0x244] ss:$12 sps:$4 sm:$0xff]   ;;  %v9238_v13 = vld [vmem:[%s10621_s28 + $0x240] ss:$12 sps:$4 sm:$0xff]  }
  0x6e   : > { %6258 = vmatpush1.bf16.msra.mxu1 %v9178_v23  ;;  %6218 = vmatprep.subr.bf16.mxu0 %v9179_v24  ;;  %v10689_v62 = vpack.c.bf16 %v276_v59, %v276_v59  ;;  %v277_v63 = vcombine.high %v275_v60, %v275_v60  ;;  %v9242_v14 = vld [vmem:[%s10621_s28 + $0x3ac] ss:$12 sps:$4 sm:$0xff]   ;;  %v9240_v17 = vld [vmem:[%s10621_s28 + $0x3a8] ss:$12 sps:$4 sm:$0xff]   ;;  %v10713_v18 = vpack.c.bf16 %v275_v60, %v275_v60  ;;  %v9246_v22 = vld [vmem:[%s10621_s28 + $0x390] ss:$12 sps:$4 sm:$0xff]  }
  0x6f   : > { %6259 = vmatprep.subr.bf16.mxu1 %v9181_v25  ;;  %v9245_v15 = vld [vmem:[%s10621_s28 + $0x52c] ss:$12 sps:$4 sm:$0xff]   ;;  %v9243_v19 = vld [vmem:[%s10621_s28 + $0x528] ss:$12 sps:$4 sm:$0xff]   ;;  %v9249_v23 = vld [vmem:[%s10621_s28 + $0x510] ss:$12 sps:$4 sm:$0xff]  }
  0x70   : > { %v10694_v3 = vpack.c.bf16 %v277_v63, %v277_v63  ;;  %6238 = vmatprep.mubr.bf16.mxu0 %v10689_v62  ;;  %v9248_v20 = vld [vmem:[%s10621_s28 + $0x394] ss:$12 sps:$4 sm:$0xff]   ;;  %v9254_v24 = vld [vmem:[%s10621_s28 + $0x37c] ss:$12 sps:$4 sm:$0xff]   ;;  %v9287_v52 = vld [vmem:[%s10621_s28 + $0x484] ss:$12 sps:$4 sm:$0xff]  }
  0x71   : > { %6219 = vmatpush1.bf16.msra.mxu0 %v9183_v26  ;;  %v9251_v21 = vld [vmem:[%s10621_s28 + $0x514] ss:$12 sps:$4 sm:$0xff]   ;;  %v9257_v25 = vld [vmem:[%s10621_s28 + $0x4fc] ss:$12 sps:$4 sm:$0xff]   ;;  %v9252_v26 = vld [vmem:[%s10621_s28 + $0x378] ss:$12 sps:$4 sm:$0xff]  }
  0x72   : > { %6260 = vmatpush1.bf16.msra.mxu1 %v9184_v27  ;;  %6220 = vmatprep.subr.bf16.mxu0 %v9185_v28  ;;  %v9255_v27 = vld [vmem:[%s10621_s28 + $0x4f8] ss:$12 sps:$4 sm:$0xff]   ;;  %v9272_v36 = vld [vmem:[%s10621_s28 + $0x334] ss:$12 sps:$4 sm:$0xff]   ;;  %v9270_v38 = vld [vmem:[%s10621_s28 + $0x330] ss:$12 sps:$4 sm:$0xff]  }
  0x73   : > { %6261 = vmatprep.subr.bf16.mxu1 %v9187_v29  ;;  %6279 = vmatprep.mubr.bf16.mxu1 %v10694_v3  ;;  %v9260_v28 = vld [vmem:[%s10621_s28 + $0x364] ss:$12 sps:$4 sm:$0xff]   ;;  %v9275_v37 = vld [vmem:[%s10621_s28 + $0x4b4] ss:$12 sps:$4 sm:$0xff]   ;;  %v9293_v59 = vld [vmem:[%s10621_s28 + $0x5ec] ss:$12 sps:$4 sm:$0xff]  }
  0x74   : > { %v9263_v29 = vld [vmem:[%s10621_s28 + $0x4e4] ss:$12 sps:$4 sm:$0xff]   ;;  %v9282_v55 = vld [vmem:[%s10621_s28 + $0x300] ss:$12 sps:$4 sm:$0xff]   ;;  %v9288_v60 = vld [vmem:[%s10621_s28 + $0x468] ss:$12 sps:$4 sm:$0xff]  }
  0x75   : > { %6221 = vmatpush1.bf16.msra.mxu0 %v9189_v30  ;;  %v9258_v30 = vld [vmem:[%s10621_s28 + $0x360] ss:$12 sps:$4 sm:$0xff]   ;;  %s241_s25 = scalar_lea.vmem [#allocation7], %s10969_s22  ;;  %s8677_s7 = smul.u32 96, %s10453_s15 }
  0x76   : > { %6262 = vmatpush1.bf16.msra.mxu1 %v9190_v31  ;;  %6222 = vmatprep.subr.bf16.mxu0 %v9191_v32  ;;  %v9261_v31 = vld [vmem:[%s10621_s28 + $0x4e0] ss:$12 sps:$4 sm:$0xff]   ;;  %s235_s8 = scalar_lea.vmem [#allocation8], %s9055_s6  ;;  %s7686_s15 = scalar_lea.sflag [#allocation4], %s10618_s19 }
  0x77   : > { %6263 = vmatprep.subr.bf16.mxu1 %v9193_v33  ;;  %v9266_v32 = vld [vmem:[%s10621_s28 + $0x34c] ss:$12 sps:$4 sm:$0xff]   ;;  %v9296_v63 = vld [vmem:[%s10621_s28 + $0x454] ss:$12 sps:$4 sm:$0xff]   ;;  %s7702_s9 = sshll.u32 %s235_s8, 4  ;;  %s11839_s26 = scalar_lea.hbm %s11883_s3, %s8677_s7  ;;  %s7703_s9 = int_to_ptr.vmem [resolvable:$true] %s7702_s9 }
  0x78   : > { %v9269_v33 = vld [vmem:[%s10621_s28 + $0x4cc] ss:$12 sps:$4 sm:$0xff]   ;;  %s10373_s29 = scalar_lea.vmem %s7703_s9, 96  ;;  %p11905_p12 = scmp.ne.s32.totalorder %s11892_s23, 0 }
  0x79   : > { %6223 = vmatpush2.bf16.msra.mxu0 %v9195_v34  ;;  %v9264_v34 = vld [vmem:[%s10621_s28 + $0x348] ss:$12 sps:$4 sm:$0xff]   ;;  %p10374_p9 = scmp.ne.s32.totalorder %s7703_s9, %s10373_s29  ;;  %s10470_s27 = smov [#allocation8]  }
  0x7a   : > { %6264 = vmatpush2.bf16.msra.mxu1 %v9196_v35  ;;  %6224 = vmatprep.subr.bf16.mxu0 %v9197_v39  ;;  %v9267_v35 = vld [vmem:[%s10621_s28 + $0x4c8] ss:$12 sps:$4 sm:$0xff]   ;;  %v9273_v39 = vld [vmem:[%s10621_s28 + $0x4b0] ss:$12 sps:$4 sm:$0xff]   ;;  %s10377_s20 = sshll.u32 %s10470_s27, 4  ;;  %s10378_s20 = int_to_ptr.vmem [resolvable:$false] %s10377_s20 }
  0x7b   : > { %6265 = vmatprep.subr.bf16.mxu1 %v9199_v40  ;;  %v9278_v40 = vld [vmem:[%s10621_s28 + $0x31c] ss:$12 sps:$4 sm:$0xff]   ;;  %p10375_p1 = pnand %p10374_p9, %p11905_p12  ;;  %s10379_s0 = scalar_lea.vmem %s10378_s20, 192 }
  0x7c   : > { %v244_v42 = vld [vmem:[#allocation2 + $0x8] sm:$0xff]  ;;  %p10380_p4 = scmp.lt.s32.totalorder %s7703_s9, %s10378_s20  ;;  %p10381_p10 = scmp.lt.s32.totalorder %s10379_s0, %s10373_s29 }
  0x7d   : > { %6225 = vmatpush2.bf16.msra.mxu0 %v9201_v41  ;;  %v9281_v41 = vld [vmem:[%s10621_s28 + $0x49c] ss:$12 sps:$4 sm:$0xff]   ;;  %p10376_p2 = pneg %p10375_p1 }
  0x7e   : > { %6266 = vmatpush2.bf16.msra.mxu1 %v9202_v44  ;;  %6226 = vmatprep.subr.bf16.mxu0 %v9203_v45  ;;  %v10741_v44 = vrot.slane %v244_v42, %v10678_v49  ;;  %v278_v45 = vcombine.high %v244_v42, %v244_v42  ;;  %p10382_p11 = por %p10381_p10, %p10380_p4 }
  0x7f   : > { %6267 = vmatprep.subr.bf16.mxu1 %v9205_v46  ;;  %v9276_v46 = vld [vmem:[%s10621_s28 + $0x318] ss:$12 sps:$4 sm:$0xff]  }
  0x80   : > { %p10383_p13 = pnand %p10382_p11, %p10376_p2 }
  0x81   : > { %6227 = vmatpush2.bf16.msra.mxu0 %v9207_v47  ;;  %v9279_v47 = vld [vmem:[%s10621_s28 + $0x498] ss:$12 sps:$4 sm:$0xff]  }
  0x82   : > { %6268 = vmatpush2.bf16.msra.mxu1 %v9208_v48  ;;  %6228 = vmatprep.subr.bf16.mxu0 %v9209_v50  ;;  %v293_v48 = vcombine.high %v10741_v44, %v10741_v44  ;;  %v10748_v50 = vrot.slane %v278_v45, %v10678_v49  ;;  %v9346_v45 = vld [vmem:[%s10621_s28 + $0x810] ss:$12 sps:$4 sm:$0xff]  }
  0x83   : > { %6269 = vmatprep.subr.bf16.mxu1 %v9211_v51  ;;  %v9284_v51 = vld [vmem:[%s10621_s28 + $0x304] ss:$12 sps:$4 sm:$0xff]  }
  0x84   : > { %v294_v54 = vcombine.high %v10748_v50, %v10748_v50 }
  0x85   : > { %6229 = vmatpush2.bf16.msra.mxu0 %v9213_v53  ;;  %v10752_v53 = vpack.c.bf16 %v293_v48, %v293_v48 }
  0x86   : > { %6270 = vmatpush2.bf16.msra.mxu1 %v9214_v56  ;;  %6230 = vmatprep.subr.bf16.mxu0 %v9215_v57  ;;  %v9285_v56 = vld [vmem:[%s10621_s28 + $0x480] ss:$12 sps:$4 sm:$0xff]   ;;  %v10758_v57 = vpack.c.bf16 %v294_v54, %v294_v54  ;;  %v9352_v54 = vld [vmem:[%s10621_s28 + $0x7f8] ss:$12 sps:$4 sm:$0xff]  }
  0x87   : > { %6271 = vmatprep.subr.bf16.mxu1 %v9217_v58  ;;  %v9290_v58 = vld [vmem:[%s10621_s28 + $0x46c] ss:$12 sps:$4 sm:$0xff]  }
  0x89   : > { %6231 = vmatpush2.bf16.msra.mxu0 %v9219_v61  ;;  %v9291_v61 = vld [vmem:[%s10621_s28 + $0x5e8] ss:$12 sps:$4 sm:$0xff]  }
  0x8a   : > { %6272 = vmatpush2.bf16.msra.mxu1 %v9220_v0  ;;  %6232 = vmatprep.subr.bf16.mxu0 %v9221_v1  ;;  %v9299_v0 = vld [vmem:[%s10621_s28 + $0x5d4] ss:$12 sps:$4 sm:$0xff]   ;;  %v9294_v1 = vld [vmem:[%s10621_s28 + $0x450] ss:$12 sps:$4 sm:$0xff]  }
  0x8b   : > { %6273 = vmatprep.subr.bf16.mxu1 %v9223_v2  ;;  %v9297_v2 = vld [vmem:[%s10621_s28 + $0x5d0] ss:$12 sps:$4 sm:$0xff]  }
  0x8d   : > { %6233 = vmatpush2.bf16.msra.mxu0 %v9225_v4  ;;  %v9302_v4 = vld [vmem:[%s10621_s28 + $0x43c] ss:$12 sps:$4 sm:$0xff]  }
  0x8e   : > { %6274 = vmatpush2.bf16.msra.mxu1 %v9226_v5  ;;  %6234 = vmatprep.subr.bf16.mxu0 %v9227_v6  ;;  %v9305_v5 = vld [vmem:[%s10621_s28 + $0x5bc] ss:$12 sps:$4 sm:$0xff]   ;;  %v9300_v6 = vld [vmem:[%s10621_s28 + $0x438] ss:$12 sps:$4 sm:$0xff]  }
  0x8f   : > { %6275 = vmatprep.subr.bf16.mxu1 %v9229_v7  ;;  %v9303_v7 = vld [vmem:[%s10621_s28 + $0x5b8] ss:$12 sps:$4 sm:$0xff]  }
  0x91   : > { %6235 = vmatpush2.bf16.msra.mxu0 %v9231_v8  ;;  %v9308_v8 = vld [vmem:[%s10621_s28 + $0x424] ss:$12 sps:$4 sm:$0xff]  }
  0x92   : > { %6276 = vmatpush2.bf16.msra.mxu1 %v9232_v9  ;;  %6236 = vmatprep.subr.bf16.mxu0 %v9233_v10  ;;  %v9311_v9 = vld [vmem:[%s10621_s28 + $0x5a4] ss:$12 sps:$4 sm:$0xff]   ;;  %v9306_v10 = vld [vmem:[%s10621_s28 + $0x420] ss:$12 sps:$4 sm:$0xff]  }
  0x93   : > { %6277 = vmatprep.subr.bf16.mxu1 %v9235_v11  ;;  %v9309_v11 = vld [vmem:[%s10621_s28 + $0x5a0] ss:$12 sps:$4 sm:$0xff]  }
  0x95   : > { %6237 = vmatpush2.bf16.msra.mxu0 %v9237_v12  ;;  %v9314_v12 = vld [vmem:[%s10621_s28 + $0x40c] ss:$12 sps:$4 sm:$0xff]  }
  0x96   : > { %6278 = vmatpush2.bf16.msra.mxu1 %v9238_v13  ;;  %6288 = vmatprep.subr.bf16.mxu0 %v9242_v14  ;;  %v9317_v13 = vld [vmem:[%s10621_s28 + $0x58c] ss:$12 sps:$4 sm:$0xff]   ;;  %v9312_v14 = vld [vmem:[%s10621_s28 + $0x408] ss:$12 sps:$4 sm:$0xff]  }
  0x97   : > { %6329 = vmatprep.subr.bf16.mxu1 %v9245_v15  ;;  %v9315_v15 = vld [vmem:[%s10621_s28 + $0x588] ss:$12 sps:$4 sm:$0xff]  }
  0x98   : > { %6239 = vmatmul.mubr.bf16.vlgmr.msra.gmra.mxu0 %v10710_v16 }
  0x99   : > { %6280 = vmatmul.mubr.bf16.vlgmr.msra.gmra.mxu1 %v10713_v18  ;;  %6289 = vmatpush1.bf16.msra.mxu0 %v9240_v17  ;;  %v9320_v17 = vld [vmem:[%s10621_s28 + $0x3f4] ss:$12 sps:$4 sm:$0xff]  }
  0x9a   : > { %6330 = vmatpush1.bf16.msra.mxu1 %v9243_v19  ;;  %6290 = vmatprep.subr.bf16.mxu0 %v9248_v20  ;;  %v9323_v19 = vld [vmem:[%s10621_s28 + $0x574] ss:$12 sps:$4 sm:$0xff]   ;;  %v9318_v20 = vld [vmem:[%s10621_s28 + $0x3f0] ss:$12 sps:$4 sm:$0xff]  }
  0x9b   : > { %6331 = vmatprep.subr.bf16.mxu1 %v9251_v21  ;;  %6320 = vmatprep.mubr.bf16.mxu0 %v10752_v53  ;;  %v9321_v21 = vld [vmem:[%s10621_s28 + $0x570] ss:$12 sps:$4 sm:$0xff]  }
  0x9c   : > { %6361 = vmatprep.mubr.bf16.mxu1 %v10758_v57 }
  0x9d   : > { %6291 = vmatpush1.bf16.msra.mxu0 %v9246_v22  ;;  %v9326_v22 = vld [vmem:[%s10621_s28 + $0x3dc] ss:$12 sps:$4 sm:$0xff]  }
  0x9e   : > { %6332 = vmatpush1.bf16.msra.mxu1 %v9249_v23  ;;  %6292 = vmatprep.subr.bf16.mxu0 %v9254_v24  ;;  %v9329_v23 = vld [vmem:[%s10621_s28 + $0x55c] ss:$12 sps:$4 sm:$0xff]   ;;  %v9324_v24 = vld [vmem:[%s10621_s28 + $0x3d8] ss:$12 sps:$4 sm:$0xff]  }
  0x9f   : > { %6333 = vmatprep.subr.bf16.mxu1 %v9257_v25  ;;  %v9327_v25 = vld [vmem:[%s10621_s28 + $0x558] ss:$12 sps:$4 sm:$0xff]  }
  0xa1   : > { %6293 = vmatpush1.bf16.msra.mxu0 %v9252_v26  ;;  %v9332_v26 = vld [vmem:[%s10621_s28 + $0x3c4] ss:$12 sps:$4 sm:$0xff]  }
  0xa2   : > { %6334 = vmatpush1.bf16.msra.mxu1 %v9255_v27  ;;  %6294 = vmatprep.subr.bf16.mxu0 %v9260_v28  ;;  %v9335_v27 = vld [vmem:[%s10621_s28 + $0x544] ss:$12 sps:$4 sm:$0xff]   ;;  %v9330_v28 = vld [vmem:[%s10621_s28 + $0x3c0] ss:$12 sps:$4 sm:$0xff]  }
  0xa3   : > { %6335 = vmatprep.subr.bf16.mxu1 %v9263_v29  ;;  %v9333_v29 = vld [vmem:[%s10621_s28 + $0x540] ss:$12 sps:$4 sm:$0xff]  }
  0xa5   : > { %6295 = vmatpush1.bf16.msra.mxu0 %v9258_v30  ;;  %v9339_v30 = vld [vmem:[%s10621_s28 + $0x6ac] ss:$12 sps:$4 sm:$0xff]  }
  0xa6   : > { %6336 = vmatpush1.bf16.msra.mxu1 %v9261_v31  ;;  %6296 = vmatprep.subr.bf16.mxu0 %v9266_v32  ;;  %v9342_v31 = vld [vmem:[%s10621_s28 + $0x82c] ss:$12 sps:$4 sm:$0xff]   ;;  %v10798_v32 = vpack.c.bf16 %v10741_v44, %v10741_v44 }
  0xa7   : > { %6337 = vmatprep.subr.bf16.mxu1 %v9269_v33  ;;  %v9337_v33 = vld [vmem:[%s10621_s28 + $0x6a8] ss:$12 sps:$4 sm:$0xff]  }
  0xa9   : > { %6297 = vmatpush1.bf16.msra.mxu0 %v9264_v34  ;;  %v10803_v34 = vpack.c.bf16 %v10748_v50, %v10748_v50 }
  0xaa   : > { %6338 = vmatpush1.bf16.msra.mxu1 %v9267_v35  ;;  %6298 = vmatprep.subr.bf16.mxu0 %v9272_v36  ;;  %v9340_v35 = vld [vmem:[%s10621_s28 + $0x828] ss:$12 sps:$4 sm:$0xff]  }
  0xab   : > { %6339 = vmatprep.subr.bf16.mxu1 %v9275_v37  ;;  %v9345_v36 = vld [vmem:[%s10621_s28 + $0x694] ss:$12 sps:$4 sm:$0xff]  }
  0xac   : > { %v245_v37 = vld [vmem:[#allocation2 + $0x10] sm:$0xff] }
  0xad   : > { %6299 = vmatpush1.bf16.msra.mxu0 %v9270_v38  ;;  %v9348_v38 = vld [vmem:[%s10621_s28 + $0x814] ss:$12 sps:$4 sm:$0xff]  }
  0xae   : > { %6340 = vmatpush1.bf16.msra.mxu1 %v9273_v39  ;;  %6300 = vmatprep.subr.bf16.mxu0 %v9278_v40  ;;  %v10809_v39 = vrot.slane %v245_v37, %v10678_v49  ;;  %v295_v40 = vcombine.high %v245_v37, %v245_v37  ;;  %v9412_v37 = vld [vmem:[%s10621_s28 + $0x888] ss:$12 sps:$4 sm:$0xff]  }
  0xaf   : > { %6341 = vmatprep.subr.bf16.mxu1 %v9281_v41  ;;  %v9343_v41 = vld [vmem:[%s10621_s28 + $0x690] ss:$12 sps:$4 sm:$0xff]  }
  0xb0   : > { %v310_v42 = vcombine.high %v10809_v39, %v10809_v39  ;;  %v10817_v44 = vrot.slane %v295_v40, %v10678_v49  ;;  %v9420_v40 = vld [vmem:[%s10621_s28 + $0x874] ss:$12 sps:$4 sm:$0xff]  }
  0xb1   : > { %6301 = vmatpush1.bf16.msra.mxu0 %v9276_v46  ;;  %v9351_v46 = vld [vmem:[%s10621_s28 + $0x67c] ss:$12 sps:$4 sm:$0xff]  }
  0xb2   : > { %6342 = vmatpush1.bf16.msra.mxu1 %v9279_v47  ;;  %6302 = vmatprep.subr.bf16.mxu0 %v9284_v51  ;;  %v9354_v47 = vld [vmem:[%s10621_s28 + $0x7fc] ss:$12 sps:$4 sm:$0xff]   ;;  %v10822_v48 = vpack.c.bf16 %v310_v42, %v310_v42  ;;  %v311_v50 = vcombine.high %v10817_v44, %v10817_v44  ;;  %v9349_v51 = vld [vmem:[%s10621_s28 + $0x678] ss:$12 sps:$4 sm:$0xff]  }
  0xb3   : > { %6343 = vmatprep.subr.bf16.mxu1 %v9287_v52  ;;  %v246_v42 = vld [vmem:[#allocation2 + $0x18] sm:$0xff] }
  0xb4   : > { %v10828_v52 = vpack.c.bf16 %v311_v50, %v311_v50  ;;  %v312_v50 = vcombine.high %v246_v42, %v246_v42 }
  0xb5   : > { %6303 = vmatpush1.bf16.msra.mxu0 %v9282_v55  ;;  %v9357_v55 = vld [vmem:[%s10621_s28 + $0x664] ss:$12 sps:$4 sm:$0xff]  }
  0xb6   : > { %6344 = vmatpush1.bf16.msra.mxu1 %v9285_v56  ;;  %6304 = vmatprep.subr.bf16.mxu0 %v9290_v58  ;;  %v9360_v56 = vld [vmem:[%s10621_s28 + $0x7e4] ss:$12 sps:$4 sm:$0xff]   ;;  %v9355_v58 = vld [vmem:[%s10621_s28 + $0x660] ss:$12 sps:$4 sm:$0xff]  }
  0xb7   : > { %6345 = vmatprep.subr.bf16.mxu1 %v9293_v59  ;;  %v9358_v59 = vld [vmem:[%s10621_s28 + $0x7e0] ss:$12 sps:$4 sm:$0xff]  }
  0xb9   : > { %6305 = vmatpush2.bf16.msra.mxu0 %v9288_v60  ;;  %v9363_v60 = vld [vmem:[%s10621_s28 + $0x64c] ss:$12 sps:$4 sm:$0xff]  }
  0xba   : > { %6346 = vmatpush2.bf16.msra.mxu1 %v9291_v61  ;;  %6306 = vmatprep.subr.bf16.mxu0 %v9296_v63  ;;  %v9366_v61 = vld [vmem:[%s10621_s28 + $0x7cc] ss:$12 sps:$4 sm:$0xff]   ;;  %v9361_v63 = vld [vmem:[%s10621_s28 + $0x648] ss:$12 sps:$4 sm:$0xff]  }
  0xbb   : > { %6347 = vmatprep.subr.bf16.mxu1 %v9299_v0  ;;  %v9364_v0 = vld [vmem:[%s10621_s28 + $0x7c8] ss:$12 sps:$4 sm:$0xff]  }
  0xbd   : > { %6307 = vmatpush2.bf16.msra.mxu0 %v9294_v1  ;;  %v9369_v1 = vld [vmem:[%s10621_s28 + $0x634] ss:$12 sps:$4 sm:$0xff]  }
  0xbe   : > { %6348 = vmatpush2.bf16.msra.mxu1 %v9297_v2  ;;  %6308 = vmatprep.subr.bf16.mxu0 %v9302_v4  ;;  %v9372_v2 = vld [vmem:[%s10621_s28 + $0x7b4] ss:$12 sps:$4 sm:$0xff]   ;;  %v9367_v4 = vld [vmem:[%s10621_s28 + $0x630] ss:$12 sps:$4 sm:$0xff]  }
  0xbf   : > { %6349 = vmatprep.subr.bf16.mxu1 %v9305_v5  ;;  %v9370_v5 = vld [vmem:[%s10621_s28 + $0x7b0] ss:$12 sps:$4 sm:$0xff]  }
  0xc1   : > { %6309 = vmatpush2.bf16.msra.mxu0 %v9300_v6  ;;  %v9375_v6 = vld [vmem:[%s10621_s28 + $0x61c] ss:$12 sps:$4 sm:$0xff]  }
  0xc2   : > { %6350 = vmatpush2.bf16.msra.mxu1 %v9303_v7  ;;  %6310 = vmatprep.subr.bf16.mxu0 %v9308_v8  ;;  %v9378_v7 = vld [vmem:[%s10621_s28 + $0x79c] ss:$12 sps:$4 sm:$0xff]   ;;  %v9373_v8 = vld [vmem:[%s10621_s28 + $0x618] ss:$12 sps:$4 sm:$0xff]  }
  0xc3   : > { %6351 = vmatprep.subr.bf16.mxu1 %v9311_v9  ;;  %v9376_v9 = vld [vmem:[%s10621_s28 + $0x798] ss:$12 sps:$4 sm:$0xff]  }
  0xc5   : > { %6311 = vmatpush2.bf16.msra.mxu0 %v9306_v10  ;;  %v9381_v10 = vld [vmem:[%s10621_s28 + $0x604] ss:$12 sps:$4 sm:$0xff]  }
  0xc6   : > { %6352 = vmatpush2.bf16.msra.mxu1 %v9309_v11  ;;  %6312 = vmatprep.subr.bf16.mxu0 %v9314_v12  ;;  %v9384_v11 = vld [vmem:[%s10621_s28 + $0x784] ss:$12 sps:$4 sm:$0xff]   ;;  %v9379_v12 = vld [vmem:[%s10621_s28 + $0x600] ss:$12 sps:$4 sm:$0xff]  }
  0xc7   : > { %6353 = vmatprep.subr.bf16.mxu1 %v9317_v13  ;;  %v9382_v13 = vld [vmem:[%s10621_s28 + $0x780] ss:$12 sps:$4 sm:$0xff]  }
  0xc9   : > { %6313 = vmatpush2.bf16.msra.mxu0 %v9312_v14  ;;  %v9387_v14 = vld [vmem:[%s10621_s28 + $0x76c] ss:$12 sps:$4 sm:$0xff]  }
  0xca   : > { %6354 = vmatpush2.bf16.msra.mxu1 %v9315_v15  ;;  %6314 = vmatprep.subr.bf16.mxu0 %v9320_v17  ;;  %v9390_v15 = vld [vmem:[%s10621_s28 + $0x8ec] ss:$12 sps:$4 sm:$0xff]   ;;  %v9385_v17 = vld [vmem:[%s10621_s28 + $0x768] ss:$12 sps:$4 sm:$0xff]  }
  0xcb   : > { %6355 = vmatprep.subr.bf16.mxu1 %v9323_v19  ;;  %v9388_v19 = vld [vmem:[%s10621_s28 + $0x8e8] ss:$12 sps:$4 sm:$0xff]  }
  0xcd   : > { %6315 = vmatpush2.bf16.msra.mxu0 %v9318_v20  ;;  %v9393_v20 = vld [vmem:[%s10621_s28 + $0x754] ss:$12 sps:$4 sm:$0xff]  }
  0xce   : > { %6356 = vmatpush2.bf16.msra.mxu1 %v9321_v21  ;;  %6316 = vmatprep.subr.bf16.mxu0 %v9326_v22  ;;  %v9396_v21 = vld [vmem:[%s10621_s28 + $0x8d4] ss:$12 sps:$4 sm:$0xff]   ;;  %v9391_v22 = vld [vmem:[%s10621_s28 + $0x750] ss:$12 sps:$4 sm:$0xff]  }
  0xcf   : > { %6357 = vmatprep.subr.bf16.mxu1 %v9329_v23  ;;  %v9394_v23 = vld [vmem:[%s10621_s28 + $0x8d0] ss:$12 sps:$4 sm:$0xff]  }
  0xd1   : > { %6317 = vmatpush2.bf16.msra.mxu0 %v9324_v24  ;;  %v9399_v24 = vld [vmem:[%s10621_s28 + $0x73c] ss:$12 sps:$4 sm:$0xff]  }
  0xd2   : > { %6358 = vmatpush2.bf16.msra.mxu1 %v9327_v25  ;;  %6318 = vmatprep.subr.bf16.mxu0 %v9332_v26  ;;  %v9402_v25 = vld [vmem:[%s10621_s28 + $0x8bc] ss:$12 sps:$4 sm:$0xff]   ;;  %v9397_v26 = vld [vmem:[%s10621_s28 + $0x738] ss:$12 sps:$4 sm:$0xff]  }
  0xd3   : > { %6359 = vmatprep.subr.bf16.mxu1 %v9335_v27  ;;  %v9400_v27 = vld [vmem:[%s10621_s28 + $0x8b8] ss:$12 sps:$4 sm:$0xff]  }
  0xd5   : > { %6319 = vmatpush2.bf16.msra.mxu0 %v9330_v28  ;;  %v9405_v28 = vld [vmem:[%s10621_s28 + $0x724] ss:$12 sps:$4 sm:$0xff]  }
  0xd6   : > { %6360 = vmatpush2.bf16.msra.mxu1 %v9333_v29  ;;  %6370 = vmatprep.subr.bf16.mxu0 %v9339_v30  ;;  %v9408_v29 = vld [vmem:[%s10621_s28 + $0x8a4] ss:$12 sps:$4 sm:$0xff]   ;;  %v9403_v30 = vld [vmem:[%s10621_s28 + $0x720] ss:$12 sps:$4 sm:$0xff]  }
  0xd7   : > { %6411 = vmatprep.subr.bf16.mxu1 %v9342_v31  ;;  %v9406_v31 = vld [vmem:[%s10621_s28 + $0x8a0] ss:$12 sps:$4 sm:$0xff]  }
  0xd8   : > { %6321 = vmatmul.mubr.bf16.vlgmr.msra.gmra.mxu0 %v10798_v32 }
  0xd9   : > { %6362 = vmatmul.mubr.bf16.vlgmr.msra.gmra.mxu1 %v10803_v34  ;;  %6371 = vmatpush1.bf16.msra.mxu0 %v9337_v33  ;;  %v9411_v33 = vld [vmem:[%s10621_s28 + $0x70c] ss:$12 sps:$4 sm:$0xff]  }
  0xda   : > { %6412 = vmatpush1.bf16.msra.mxu1 %v9340_v35  ;;  %6372 = vmatprep.subr.bf16.mxu0 %v9345_v36  ;;  %v9414_v35 = vld [vmem:[%s10621_s28 + $0x88c] ss:$12 sps:$4 sm:$0xff]   ;;  %v9409_v36 = vld [vmem:[%s10621_s28 + $0x708] ss:$12 sps:$4 sm:$0xff]  }
  0xdb   : > { %6413 = vmatprep.subr.bf16.mxu1 %v9348_v38  ;;  %6402 = vmatprep.mubr.bf16.mxu0 %v10822_v48  ;;  %v9417_v38 = vld [vmem:[%s10621_s28 + $0x6f4] ss:$12 sps:$4 sm:$0xff]  }
  0xdc   : > { %6443 = vmatprep.mubr.bf16.mxu1 %v10828_v52 }
  0xdd   : > { %6373 = vmatpush1.bf16.msra.mxu0 %v9343_v41  ;;  %v9415_v41 = vld [vmem:[%s10621_s28 + $0x6f0] ss:$12 sps:$4 sm:$0xff]  }
  0xde   : > { %6414 = vmatpush1.bf16.msra.mxu1 %v9346_v45  ;;  %6374 = vmatprep.subr.bf16.mxu0 %v9351_v46  ;;  %v9418_v45 = vld [vmem:[%s10621_s28 + $0x870] ss:$12 sps:$4 sm:$0xff]  }
  0xdf   : > { %6415 = vmatprep.subr.bf16.mxu1 %v9354_v47  ;;  %v9423_v46 = vld [vmem:[%s10621_s28 + $0x6dc] ss:$12 sps:$4 sm:$0xff]  }
  0xe0   : > { %v9426_v47 = vld [vmem:[%s10621_s28 + $0x85c] ss:$12 sps:$4 sm:$0xff]  }
  0xe1   : > { %6375 = vmatpush1.bf16.msra.mxu0 %v9349_v51  ;;  %v9421_v51 = vld [vmem:[%s10621_s28 + $0x6d8] ss:$12 sps:$4 sm:$0xff]  }
  0xe2   : > { %6416 = vmatpush1.bf16.msra.mxu1 %v9352_v54  ;;  %6376 = vmatprep.subr.bf16.mxu0 %v9357_v55  ;;  %v9424_v54 = vld [vmem:[%s10621_s28 + $0x858] ss:$12 sps:$4 sm:$0xff]  }
  0xe3   : > { %6417 = vmatprep.subr.bf16.mxu1 %v9360_v56  ;;  %v9429_v55 = vld [vmem:[%s10621_s28 + $0x6c4] ss:$12 sps:$4 sm:$0xff]  }
  0xe4   : > { %v9432_v56 = vld [vmem:[%s10621_s28 + $0x844] ss:$12 sps:$4 sm:$0xff]  }
  0xe5   : > { %6377 = vmatpush1.bf16.msra.mxu0 %v9355_v58  ;;  %v10883_v58 = vrot.slane %v246_v42, %v10678_v49  ;;  %v9487_v42 = vld [vmem:[%s10621_s28 + $0xbec] ss:$12 sps:$4 sm:$0xff]  }
  0xe6   : > { %6418 = vmatpush1.bf16.msra.mxu1 %v9358_v59  ;;  %6378 = vmatprep.subr.bf16.mxu0 %v9363_v60  ;;  %v10886_v59 = vrot.slane %v312_v50, %v10678_v49  ;;  %v9427_v60 = vld [vmem:[%s10621_s28 + $0x6c0] ss:$12 sps:$4 sm:$0xff]  }
  0xe7   : > { %6419 = vmatprep.subr.bf16.mxu1 %v9366_v61  ;;  %v9430_v61 = vld [vmem:[%s10621_s28 + $0x840] ss:$12 sps:$4 sm:$0xff]  }
  0xe8   : > { %v9493_v50 = vld [vmem:[%s10621_s28 + $0xbd4] ss:$12 sps:$4 sm:$0xff]  }
  0xe9   : > { %6379 = vmatpush1.bf16.msra.mxu0 %v9361_v63  ;;  %v9436_v63 = vld [vmem:[%s10621_s28 + $0x9ac] ss:$12 sps:$4 sm:$0xff]  }
  0xea   : > { %6420 = vmatpush1.bf16.msra.mxu1 %v9364_v0  ;;  %6380 = vmatprep.subr.bf16.mxu0 %v9369_v1  ;;  %v9439_v0 = vld [vmem:[%s10621_s28 + $0xb2c] ss:$12 sps:$4 sm:$0xff]   ;;  %v327_v1 = vcombine.high %v10883_v58, %v10883_v58 }
  0xeb   : > { %6421 = vmatprep.subr.bf16.mxu1 %v9372_v2  ;;  %v328_v2 = vcombine.high %v10886_v59, %v10886_v59 }
  0xed   : > { %6381 = vmatpush1.bf16.msra.mxu0 %v9367_v4  ;;  %v10898_v4 = vpack.c.bf16 %v10809_v39, %v10809_v39  ;;  %v10910_v39 = vpack.c.bf16 %v328_v2, %v328_v2  ;;  %v9503_v2 = vld [vmem:[%s10621_s28 + $0xba0] ss:$12 sps:$4 sm:$0xff]  }
  0xee   : > { %6422 = vmatpush1.bf16.msra.mxu1 %v9370_v5  ;;  %6382 = vmatprep.subr.bf16.mxu0 %v9375_v6  ;;  %v9434_v5 = vld [vmem:[%s10621_s28 + $0x9a8] ss:$12 sps:$4 sm:$0xff]   ;;  %v10903_v6 = vpack.c.bf16 %v10817_v44, %v10817_v44  ;;  %v9440_v44 = vld [vmem:[%s10621_s28 + $0x990] ss:$12 sps:$4 sm:$0xff]  }
  0xef   : > { %6423 = vmatprep.subr.bf16.mxu1 %v9378_v7  ;;  %v9437_v7 = vld [vmem:[%s10621_s28 + $0xb28] ss:$12 sps:$4 sm:$0xff]  }
  0xf1   : > { %6383 = vmatpush1.bf16.msra.mxu0 %v9373_v8  ;;  %v9442_v8 = vld [vmem:[%s10621_s28 + $0x994] ss:$12 sps:$4 sm:$0xff]  }
  0xf2   : > { %6424 = vmatpush1.bf16.msra.mxu1 %v9376_v9  ;;  %6384 = vmatprep.subr.bf16.mxu0 %v9381_v10  ;;  %v9445_v9 = vld [vmem:[%s10621_s28 + $0xb14] ss:$12 sps:$4 sm:$0xff]   ;;  %v10908_v10 = vpack.c.bf16 %v327_v1, %v327_v1 }
  0xf3   : > { %6425 = vmatprep.subr.bf16.mxu1 %v9384_v11  ;;  %v9443_v11 = vld [vmem:[%s10621_s28 + $0xb10] ss:$12 sps:$4 sm:$0xff]   ;;  %v9500_v1 = vld [vmem:[%s10621_s28 + $0xa20] ss:$12 sps:$4 sm:$0xff]  }
  0xf5   : > { %6385 = vmatpush1.bf16.msra.mxu0 %v9379_v12  ;;  %v9448_v12 = vld [vmem:[%s10621_s28 + $0x97c] ss:$12 sps:$4 sm:$0xff]  }
  0xf6   : > { %6426 = vmatpush1.bf16.msra.mxu1 %v9382_v13  ;;  %6386 = vmatprep.subr.bf16.mxu0 %v9387_v14  ;;  %v9451_v13 = vld [vmem:[%s10621_s28 + $0xafc] ss:$12 sps:$4 sm:$0xff]   ;;  %v9446_v14 = vld [vmem:[%s10621_s28 + $0x978] ss:$12 sps:$4 sm:$0xff]  }
  0xf7   : > { %6427 = vmatprep.subr.bf16.mxu1 %v9390_v15  ;;  %v9449_v15 = vld [vmem:[%s10621_s28 + $0xaf8] ss:$12 sps:$4 sm:$0xff]  }
  0xf9   : > { %6387 = vmatpush2.bf16.msra.mxu0 %v9385_v17  ;;  %v9454_v17 = vld [vmem:[%s10621_s28 + $0x964] ss:$12 sps:$4 sm:$0xff]  }
  0xfa   : > { %6428 = vmatpush2.bf16.msra.mxu1 %v9388_v19  ;;  %6388 = vmatprep.subr.bf16.mxu0 %v9393_v20  ;;  %v9457_v19 = vld [vmem:[%s10621_s28 + $0xae4] ss:$12 sps:$4 sm:$0xff]   ;;  %v9452_v20 = vld [vmem:[%s10621_s28 + $0x960] ss:$12 sps:$4 sm:$0xff]  }
  0xfb   : > { %6429 = vmatprep.subr.bf16.mxu1 %v9396_v21  ;;  %v9455_v21 = vld [vmem:[%s10621_s28 + $0xae0] ss:$12 sps:$4 sm:$0xff]  }
  0xfd   : > { %6389 = vmatpush2.bf16.msra.mxu0 %v9391_v22  ;;  %v9460_v22 = vld [vmem:[%s10621_s28 + $0x94c] ss:$12 sps:$4 sm:$0xff]  }
  0xfe   : > { %6430 = vmatpush2.bf16.msra.mxu1 %v9394_v23  ;;  %6390 = vmatprep.subr.bf16.mxu0 %v9399_v24  ;;  %v9463_v23 = vld [vmem:[%s10621_s28 + $0xacc] ss:$12 sps:$4 sm:$0xff]   ;;  %v9458_v24 = vld [vmem:[%s10621_s28 + $0x948] ss:$12 sps:$4 sm:$0xff]  }
  0xff   : > { %6431 = vmatprep.subr.bf16.mxu1 %v9402_v25  ;;  %v9461_v25 = vld [vmem:[%s10621_s28 + $0xac8] ss:$12 sps:$4 sm:$0xff]  }
 0x101   : > { %6391 = vmatpush2.bf16.msra.mxu0 %v9397_v26  ;;  %v9466_v26 = vld [vmem:[%s10621_s28 + $0x934] ss:$12 sps:$4 sm:$0xff]  }
 0x102   : > { %6432 = vmatpush2.bf16.msra.mxu1 %v9400_v27  ;;  %6392 = vmatprep.subr.bf16.mxu0 %v9405_v28  ;;  %v9469_v27 = vld [vmem:[%s10621_s28 + $0xab4] ss:$12 sps:$4 sm:$0xff]   ;;  %v9464_v28 = vld [vmem:[%s10621_s28 + $0x930] ss:$12 sps:$4 sm:$0xff]  }
 0x103   : > { %6433 = vmatprep.subr.bf16.mxu1 %v9408_v29  ;;  %v9467_v29 = vld [vmem:[%s10621_s28 + $0xab0] ss:$12 sps:$4 sm:$0xff]  }
 0x105   : > { %6393 = vmatpush2.bf16.msra.mxu0 %v9403_v30  ;;  %v9472_v30 = vld [vmem:[%s10621_s28 + $0x91c] ss:$12 sps:$4 sm:$0xff]  }
 0x106   : > { %6434 = vmatpush2.bf16.msra.mxu1 %v9406_v31  ;;  %6394 = vmatprep.subr.bf16.mxu0 %v9411_v33  ;;  %v9475_v31 = vld [vmem:[%s10621_s28 + $0xa9c] ss:$12 sps:$4 sm:$0xff]   ;;  %v9470_v33 = vld [vmem:[%s10621_s28 + $0x918] ss:$12 sps:$4 sm:$0xff]  }
 0x107   : > { %6435 = vmatprep.subr.bf16.mxu1 %v9414_v35  ;;  %v9473_v35 = vld [vmem:[%s10621_s28 + $0xa98] ss:$12 sps:$4 sm:$0xff]  }
 0x109   : > { %6395 = vmatpush2.bf16.msra.mxu0 %v9409_v36  ;;  %v9478_v36 = vld [vmem:[%s10621_s28 + $0x904] ss:$12 sps:$4 sm:$0xff]  }
 0x10a   : > { %6436 = vmatpush2.bf16.msra.mxu1 %v9412_v37  ;;  %6396 = vmatprep.subr.bf16.mxu0 %v9417_v38  ;;  %v9481_v37 = vld [vmem:[%s10621_s28 + $0xa84] ss:$12 sps:$4 sm:$0xff]   ;;  %v9476_v38 = vld [vmem:[%s10621_s28 + $0x900] ss:$12 sps:$4 sm:$0xff]  }
 0x10b   : > { %6437 = vmatprep.subr.bf16.mxu1 %v9420_v40  ;;  %v9479_v40 = vld [vmem:[%s10621_s28 + $0xa80] ss:$12 sps:$4 sm:$0xff]  }
 0x10d   : > { %6397 = vmatpush2.bf16.msra.mxu0 %v9415_v41  ;;  %v9484_v41 = vld [vmem:[%s10621_s28 + $0xa6c] ss:$12 sps:$4 sm:$0xff]  }
 0x10e   : > { %6438 = vmatpush2.bf16.msra.mxu1 %v9418_v45  ;;  %6398 = vmatprep.subr.bf16.mxu0 %v9423_v46  ;;  %v9482_v45 = vld [vmem:[%s10621_s28 + $0xa68] ss:$12 sps:$4 sm:$0xff]  }
 0x10f   : > { %6439 = vmatprep.subr.bf16.mxu1 %v9426_v47  ;;  %v9485_v46 = vld [vmem:[%s10621_s28 + $0xbe8] ss:$12 sps:$4 sm:$0xff]  }
 0x110   : > { %v9490_v47 = vld [vmem:[%s10621_s28 + $0xa54] ss:$12 sps:$4 sm:$0xff]  }
 0x111   : > { %6399 = vmatpush2.bf16.msra.mxu0 %v9421_v51  ;;  %v9488_v51 = vld [vmem:[%s10621_s28 + $0xa50] ss:$12 sps:$4 sm:$0xff]  }
 0x112   : > { %6440 = vmatpush2.bf16.msra.mxu1 %v9424_v54  ;;  %6400 = vmatprep.subr.bf16.mxu0 %v9429_v55  ;;  %v9491_v54 = vld [vmem:[%s10621_s28 + $0xbd0] ss:$12 sps:$4 sm:$0xff]  }
 0x113   : > { %6441 = vmatprep.subr.bf16.mxu1 %v9432_v56  ;;  %v9496_v55 = vld [vmem:[%s10621_s28 + $0xa3c] ss:$12 sps:$4 sm:$0xff]  }
 0x114   : > { %v9499_v56 = vld [vmem:[%s10621_s28 + $0xbbc] ss:$12 sps:$4 sm:$0xff]  }
 0x115   : > { %6401 = vmatpush2.bf16.msra.mxu0 %v9427_v60  ;;  %v9494_v60 = vld [vmem:[%s10621_s28 + $0xa38] ss:$12 sps:$4 sm:$0xff]  }
 0x116   : > { %6442 = vmatpush2.bf16.msra.mxu1 %v9430_v61  ;;  %6452 = vmatprep.subr.bf16.mxu0 %v9436_v63  ;;  %v9497_v61 = vld [vmem:[%s10621_s28 + $0xbb8] ss:$12 sps:$4 sm:$0xff]  }
 0x117   : > { %6493 = vmatprep.subr.bf16.mxu1 %v9439_v0  ;;  %v9502_v63 = vld [vmem:[%s10621_s28 + $0xa24] ss:$12 sps:$4 sm:$0xff]  }
 0x118   : > { %6403 = vmatmul.mubr.bf16.vlgmr.msra.gmra.mxu0 %v10898_v4  ;;  %v9505_v0 = vld [vmem:[%s10621_s28 + $0xba4] ss:$12 sps:$4 sm:$0xff]  }
 0x119   : > { %6444 = vmatmul.mubr.bf16.vlgmr.msra.gmra.mxu1 %v10903_v6  ;;  %6453 = vmatpush1.bf16.msra.mxu0 %v9434_v5  ;;  %v9508_v5 = vld [vmem:[%s10621_s28 + $0xa0c] ss:$12 sps:$4 sm:$0xff]  }
 0x11a   : > { %6494 = vmatpush1.bf16.msra.mxu1 %v9437_v7  ;;  %6454 = vmatprep.subr.bf16.mxu0 %v9442_v8  ;;  %v9511_v7 = vld [vmem:[%s10621_s28 + $0xb8c] ss:$12 sps:$4 sm:$0xff]   ;;  %v9506_v8 = vld [vmem:[%s10621_s28 + $0xa08] ss:$12 sps:$4 sm:$0xff]  }
 0x11b   : > { %6495 = vmatprep.subr.bf16.mxu1 %v9445_v9  ;;  %6484 = vmatprep.mubr.bf16.mxu0 %v10908_v10  ;;  %v9509_v9 = vld [vmem:[%s10621_s28 + $0xb88] ss:$12 sps:$4 sm:$0xff]  }
 0x11c   : > { %6525 = vmatprep.mubr.bf16.mxu1 %v10910_v39 }
 0x11d   : > { %6455 = vmatpush1.bf16.msra.mxu0 %v9440_v44  ;;  %v9514_v44 = vld [vmem:[%s10621_s28 + $0x9f4] ss:$12 sps:$4 sm:$0xff]  }
 0x11e   : > { %6496 = vmatpush1.bf16.msra.mxu1 %v9443_v11  ;;  %6456 = vmatprep.subr.bf16.mxu0 %v9448_v12  ;;  %v9517_v11 = vld [vmem:[%s10621_s28 + $0xb74] ss:$12 sps:$4 sm:$0xff]  }
 0x11f   : > { %6497 = vmatprep.subr.bf16.mxu1 %v9451_v13  ;;  %v247_v12 = vld [vmem:[#allocation2 + $0x20] sm:$0xff] }
 0x120   : > { %v9512_v13 = vld [vmem:[%s10621_s28 + $0x9f0] ss:$12 sps:$4 sm:$0xff]  }
 0x121   : > { %6457 = vmatpush1.bf16.msra.mxu0 %v9446_v14  ;;  %v9515_v14 = vld [vmem:[%s10621_s28 + $0xb70] ss:$12 sps:$4 sm:$0xff]  }
 0x122   : > { %6498 = vmatpush1.bf16.msra.mxu1 %v9449_v15  ;;  %6458 = vmatprep.subr.bf16.mxu0 %v9454_v17  ;;  %v9520_v15 = vld [vmem:[%s10621_s28 + $0x9dc] ss:$12 sps:$4 sm:$0xff]  }
 0x123   : > { %6499 = vmatprep.subr.bf16.mxu1 %v9457_v19  ;;  %v9523_v17 = vld [vmem:[%s10621_s28 + $0xb5c] ss:$12 sps:$4 sm:$0xff]   ;;  %v329_v19 = vcombine.high %v247_v12, %v247_v12 }
 0x125   : > { %6459 = vmatpush1.bf16.msra.mxu0 %v9452_v20  ;;  %v9518_v20 = vld [vmem:[%s10621_s28 + $0x9d8] ss:$12 sps:$4 sm:$0xff]  }
 0x126   : > { %6500 = vmatpush1.bf16.msra.mxu1 %v9455_v21  ;;  %6460 = vmatprep.subr.bf16.mxu0 %v9460_v22  ;;  %v9521_v21 = vld [vmem:[%s10621_s28 + $0xb58] ss:$12 sps:$4 sm:$0xff]  }
 0x127   : > { %6501 = vmatprep.subr.bf16.mxu1 %v9463_v23  ;;  %v9526_v22 = vld [vmem:[%s10621_s28 + $0x9c4] ss:$12 sps:$4 sm:$0xff]  }
 0x128   : > { %v9529_v23 = vld [vmem:[%s10621_s28 + $0xb44] ss:$12 sps:$4 sm:$0xff]  }
 0x129   : > { %6461 = vmatpush1.bf16.msra.mxu0 %v9458_v24  ;;  %v10976_v24 = vrot.slane %v247_v12, %v10678_v49  ;;  %v9551_v12 = vld [vmem:[%s10621_s28 + $0xc64] ss:$12 sps:$4 sm:$0xff]  }
 0x12a   : > { %6502 = vmatpush1.bf16.msra.mxu1 %v9461_v25  ;;  %6462 = vmatprep.subr.bf16.mxu0 %v9466_v26  ;;  %v10979_v25 = vrot.slane %v329_v19, %v10678_v49  ;;  %v9524_v26 = vld [vmem:[%s10621_s28 + $0x9c0] ss:$12 sps:$4 sm:$0xff]  }
 0x12b   : > { %6503 = vmatprep.subr.bf16.mxu1 %v9469_v27  ;;  %v9527_v27 = vld [vmem:[%s10621_s28 + $0xb40] ss:$12 sps:$4 sm:$0xff]  }
 0x12c   : > { %v9557_v19 = vld [vmem:[%s10621_s28 + $0xc4c] ss:$12 sps:$4 sm:$0xff]  }
 0x12d   : > { %6463 = vmatpush1.bf16.msra.mxu0 %v9464_v28  ;;  %v242_v28 = vld [vmem:[%s241_s25] sm:$0x7] }
 0x12e   : > { %6504 = vmatpush1.bf16.msra.mxu1 %v9467_v29  ;;  %6464 = vmatprep.subr.bf16.mxu0 %v9472_v30  ;;  %v1629_v29 = vsub.s32 0, %v10670_v43  ;;  %v9533_v30 = vld [vmem:[%s10621_s28 + $0xcac] ss:$12 sps:$4 sm:$0xff]  }
 0x12f   : > { %6505 = vmatprep.subr.bf16.mxu1 %v9475_v31  ;;  %v9536_v31 = vld [vmem:[%s10621_s28 + $0xe2c] ss:$12 sps:$4 sm:$0xff]  }
 0x131   : > { %6465 = vmatpush1.bf16.msra.mxu0 %v9470_v33  ;;  %v1633_v33 = vsub.s32 1, %v10670_v43 }
 0x132   : > { %6506 = vmatpush1.bf16.msra.mxu1 %v9473_v35  ;;  %6466 = vmatprep.subr.bf16.mxu0 %v9478_v36  ;;  %v344_v35 = vcombine.high %v10976_v24, %v10976_v24  ;;  %v345_v36 = vcombine.high %v10979_v25, %v10979_v25 }
 0x133   : > { %6507 = vmatprep.subr.bf16.mxu1 %v9481_v37  ;;  %v10996_v37 = vpack.c.bf16 %v10883_v58, %v10883_v58 }
 0x134   : > { %v11008_v58 = vpack.c.bf16 %v345_v36, %v345_v36  ;;  %v9578_v36 = vld [vmem:[%s10621_s28 + $0xd84] ss:$12 sps:$4 sm:$0xff]  }
 0x135   : > { %6467 = vmatpush1.bf16.msra.mxu0 %v9476_v38  ;;  %v11000_v38 = vpack.c.bf16 %v10886_v59, %v10886_v59 }
 0x136   : > { %6508 = vmatpush1.bf16.msra.mxu1 %v9479_v40  ;;  %6468 = vmatprep.subr.bf16.mxu0 %v9484_v41  ;;  %v1630_v40 = vrot.slane %v242_v28, %v1629_v29  ;;  %v9531_v41 = vld [vmem:[%s10621_s28 + $0xca8] ss:$12 sps:$4 sm:$0xff]  }
 0x137   : > { %6509 = vmatprep.subr.bf16.mxu1 %v9487_v42  ;;  %v9534_v42 = vld [vmem:[%s10621_s28 + $0xe28] ss:$12 sps:$4 sm:$0xff]  }
 0x138   : > { %v9569_v29 = vld [vmem:[%s10621_s28 + $0xc1c] ss:$12 sps:$4 sm:$0xff]  }
 0x139   : > { %6469 = vmatpush2.bf16.msra.mxu0 %v9482_v45  ;;  %v9539_v45 = vld [vmem:[%s10621_s28 + $0xc94] ss:$12 sps:$4 sm:$0xff]  }
 0x13a   : > { %6510 = vmatpush2.bf16.msra.mxu1 %v9485_v46  ;;  %6470 = vmatprep.subr.bf16.mxu0 %v9490_v47  ;;  %v9542_v46 = vld [vmem:[%s10621_s28 + $0xe14] ss:$12 sps:$4 sm:$0xff]   ;;  %v1634_v47 = vrot.slane %v242_v28, %v1633_v33  ;;  %v9564_v28 = vld [vmem:[%s10621_s28 + $0xdb0] ss:$12 sps:$4 sm:$0xff]   ;;  %v9570_v33 = vld [vmem:[%s10621_s28 + $0xd98] ss:$12 sps:$4 sm:$0xff]  }
 0x13b   : > { %6511 = vmatprep.subr.bf16.mxu1 %v9493_v50  ;;  %v11006_v50 = vpack.c.bf16 %v344_v35, %v344_v35  ;;  %v9575_v35 = vld [vmem:[%s10621_s28 + $0xc04] ss:$12 sps:$4 sm:$0xff]  }
 0x13d   : > { %6471 = vmatpush2.bf16.msra.mxu0 %v9488_v51 }
 0x13e   : > { %6512 = vmatpush2.bf16.msra.mxu1 %v9491_v54  ;;  %6472 = vmatprep.subr.bf16.mxu0 %v9496_v55  ;;  %v9537_v54 = vld [vmem:[%s10621_s28 + $0xc90] ss:$12 sps:$4 sm:$0xff]  }
 0x13f   : > { %6513 = vmatprep.subr.bf16.mxu1 %v9499_v56  ;;  %v9540_v56 = vld [vmem:[%s10621_s28 + $0xe10] ss:$12 sps:$4 sm:$0xff]  }
 0x141   : > { %6473 = vmatpush2.bf16.msra.mxu0 %v9494_v60  ;;  %v9545_v60 = vld [vmem:[%s10621_s28 + $0xc7c] ss:$12 sps:$4 sm:$0xff]  }
 0x142   : > { %6514 = vmatpush2.bf16.msra.mxu1 %v9497_v61  ;;  %6474 = vmatprep.subr.bf16.mxu0 %v9502_v63 }
 0x143   : > { %6515 = vmatprep.subr.bf16.mxu1 %v9505_v0  ;;  %v9548_v0 = vld [vmem:[%s10621_s28 + $0xdfc] ss:$12 sps:$4 sm:$0xff]  }
 0x145   : > { %6475 = vmatpush2.bf16.msra.mxu0 %v9500_v1 }
 0x146   : > { %6516 = vmatpush2.bf16.msra.mxu1 %v9503_v2  ;;  %6476 = vmatprep.subr.bf16.mxu0 %v9508_v5 }
 0x147   : > { %6517 = vmatprep.subr.bf16.mxu1 %v9511_v7  ;;  %v9543_v7 = vld [vmem:[%s10621_s28 + $0xc78] ss:$12 sps:$4 sm:$0xff]  }
 0x149   : > { %6477 = vmatpush2.bf16.msra.mxu0 %v9506_v8  ;;  %v9546_v8 = vld [vmem:[%s10621_s28 + $0xdf8] ss:$12 sps:$4 sm:$0xff]  }
 0x14a   : > { %6518 = vmatpush2.bf16.msra.mxu1 %v9509_v9  ;;  %6478 = vmatprep.subr.bf16.mxu0 %v9514_v44 }
 0x14b   : > { %6519 = vmatprep.subr.bf16.mxu1 %v9517_v11 }
 0x14d   : > { %6479 = vmatpush2.bf16.msra.mxu0 %v9512_v13  ;;  %v9554_v13 = vld [vmem:[%s10621_s28 + $0xde4] ss:$12 sps:$4 sm:$0xff]  }
 0x14e   : > { %6520 = vmatpush2.bf16.msra.mxu1 %v9515_v14  ;;  %6480 = vmatprep.subr.bf16.mxu0 %v9520_v15  ;;  %v9549_v15 = vld [vmem:[%s10621_s28 + $0xc60] ss:$12 sps:$4 sm:$0xff]  }
 0x14f   : > { %6521 = vmatprep.subr.bf16.mxu1 %v9523_v17  ;;  %v9552_v17 = vld [vmem:[%s10621_s28 + $0xde0] ss:$12 sps:$4 sm:$0xff]  }
 0x151   : > { %6481 = vmatpush2.bf16.msra.mxu0 %v9518_v20  ;;  %v9560_v20 = vld [vmem:[%s10621_s28 + $0xdcc] ss:$12 sps:$4 sm:$0xff]  }
 0x152   : > { %6522 = vmatpush2.bf16.msra.mxu1 %v9521_v21  ;;  %6482 = vmatprep.subr.bf16.mxu0 %v9526_v22  ;;  %v9555_v21 = vld [vmem:[%s10621_s28 + $0xc48] ss:$12 sps:$4 sm:$0xff]  }
 0x153   : > { %6523 = vmatprep.subr.bf16.mxu1 %v9529_v23  ;;  %v9558_v22 = vld [vmem:[%s10621_s28 + $0xdc8] ss:$12 sps:$4 sm:$0xff]  }
 0x154   : > { %v9563_v23 = vld [vmem:[%s10621_s28 + $0xc34] ss:$12 sps:$4 sm:$0xff]  }
 0x155   : > { %6483 = vmatpush2.bf16.msra.mxu0 %v9524_v26  ;;  %v9566_v26 = vld [vmem:[%s10621_s28 + $0xdb4] ss:$12 sps:$4 sm:$0xff]  }
 0x156   : > { %6524 = vmatpush2.bf16.msra.mxu1 %v9527_v27  ;;  %6534 = vmatprep.subr.bf16.mxu0 %v9533_v30  ;;  %v9561_v27 = vld [vmem:[%s10621_s28 + $0xc30] ss:$12 sps:$4 sm:$0xff]  }
 0x157   : > { %6575 = vmatprep.subr.bf16.mxu1 %v9536_v31  ;;  %v9572_v30 = vld [vmem:[%s10621_s28 + $0xd9c] ss:$12 sps:$4 sm:$0xff]   ;;  %v9567_v31 = vld [vmem:[%s10621_s28 + $0xc18] ss:$12 sps:$4 sm:$0xff]  }
 0x158   : > { %v6240_v59 = vpop.f32.mrf.mxu0  ;;  %6485 = vmatmul.mubr.bf16.vlgmr.msra.gmra.mxu0 %v10996_v37 }
 0x159   : > { %6526 = vmatmul.mubr.bf16.vlgmr.msra.gmra.mxu1 %v11000_v38  ;;  %v6281_v51 = vpop.f32.mrf.mxu1  ;;  %v6241_v55 = vadd.f32 %v6240_v59, %v1630_v40  ;;  %6535 = vmatpush1.bf16.msra.mxu0 %v9531_v41  ;;  %v9573_v40 = vld [vmem:[%s10621_s28 + $0xc00] ss:$12 sps:$4 sm:$0xff]  }
 0x15a   : > { %6576 = vmatpush1.bf16.msra.mxu1 %v9534_v42  ;;  %v6242_v61 = vpop.f32.mrf.mxu0  ;;  %6536 = vmatprep.subr.bf16.mxu0 %v9539_v45  ;;  %v9576_v41 = vld [vmem:[%s10621_s28 + $0xd80] ss:$12 sps:$4 sm:$0xff]  }
 0x15b   : > { %v6283_v63 = vpop.f32.mrf.mxu1  ;;  %6577 = vmatprep.subr.bf16.mxu1 %v9542_v46  ;;  %v6243_v1 = vadd.f32 %v6242_v61, %v1634_v47  ;;  %v11016_v2 = vadd.f32 %v6281_v51, %v6241_v55  ;;  %6566 = vmatprep.mubr.bf16.mxu0 %v11006_v50  ;;  %v9581_v42 = vld [vmem:[%s10621_s28 + $0xd6c] ss:$12 sps:$4 sm:$0xff]   ;;  %v9579_v46 = vld [vmem:[%s10621_s28 + $0xd68] ss:$12 sps:$4 sm:$0xff]   ;;  %v9588_v55 = vld [vmem:[%s10621_s28 + $0xed0] ss:$12 sps:$4 sm:$0xff]  }
 0x15c   : > { %6607 = vmatprep.mubr.bf16.mxu1 %v11008_v58  ;;  %v6244_v5 = vpop.f32.mrf.mxu0  ;;  %v9584_v45 = vld [vmem:[%s10621_s28 + $0xeec] ss:$12 sps:$4 sm:$0xff]   ;;  %v9582_v47 = vld [vmem:[%s10621_s28 + $0xee8] ss:$12 sps:$4 sm:$0xff]  }
 0x15d   : > { %v6285_v9 = vpop.f32.mrf.mxu1  ;;  %v11022_v44 = vadd.f32 %v6283_v63, %v6243_v1  ;;  %6537 = vmatpush1.bf16.msra.mxu0 %v9537_v54  ;;  %v9587_v59 = vld [vmem:[%s10621_s28 + $0xd54] ss:$12 sps:$4 sm:$0xff]   ;;  %v9585_v54 = vld [vmem:[%s10621_s28 + $0xd50] ss:$12 sps:$4 sm:$0xff]   ;;  %v9591_v61 = vld [vmem:[%s10621_s28 + $0xd38] ss:$12 sps:$4 sm:$0xff]  }
 0x15e   : > { %6578 = vmatpush1.bf16.msra.mxu1 %v9540_v56  ;;  %v6245_v11 = vpop.f32.mrf.mxu0  ;;  %6538 = vmatprep.subr.bf16.mxu0 %v9545_v60  ;;  %v9590_v51 = vld [vmem:[%s10621_s28 + $0xed4] ss:$12 sps:$4 sm:$0xff]   ;;  %v9593_v56 = vld [vmem:[%s10621_s28 + $0xd3c] ss:$12 sps:$4 sm:$0xff]   ;;  %v9594_v63 = vld [vmem:[%s10621_s28 + $0xeb8] ss:$12 sps:$4 sm:$0xff]  }
 0x15f   : > { %6579 = vmatprep.subr.bf16.mxu1 %v9548_v0  ;;  %v6286_v14 = vpop.f32.mrf.mxu1  ;;  %v9596_v60 = vld [vmem:[%s10621_s28 + $0xebc] ss:$12 sps:$4 sm:$0xff]   ;;  %v9599_v0 = vld [vmem:[%s10621_s28 + $0xd24] ss:$12 sps:$4 sm:$0xff]   ;;  %v9597_v5 = vld [vmem:[%s10621_s28 + $0xd20] ss:$12 sps:$4 sm:$0xff]  }
 0x160   : > { %v9602_v1 = vld [vmem:[%s10621_s28 + $0xea4] ss:$12 sps:$4 sm:$0xff]   ;;  %v9608_v9 = vld [vmem:[%s10621_s28 + $0xe8c] ss:$12 sps:$4 sm:$0xff]   ;;  %v9603_v11 = vld [vmem:[%s10621_s28 + $0xd08] ss:$12 sps:$4 sm:$0xff]  }
 0x161   : > { %6539 = vmatpush1.bf16.msra.mxu0 %v9543_v7  ;;  %v9600_v7 = vld [vmem:[%s10621_s28 + $0xea0] ss:$12 sps:$4 sm:$0xff]  }
 0x162   : > { %6580 = vmatpush1.bf16.msra.mxu1 %v9546_v8  ;;  %6540 = vmatprep.subr.bf16.mxu0 %v9551_v12  ;;  %v9605_v8 = vld [vmem:[%s10621_s28 + $0xd0c] ss:$12 sps:$4 sm:$0xff]   ;;  %v9606_v12 = vld [vmem:[%s10621_s28 + $0xe88] ss:$12 sps:$4 sm:$0xff]  }
 0x163   : > { %6581 = vmatprep.subr.bf16.mxu1 %v9554_v13  ;;  %v9611_v13 = vld [vmem:[%s10621_s28 + $0xcf4] ss:$12 sps:$4 sm:$0xff]  }
 0x164   : > { %v9614_v14 = vld [vmem:[%s10621_s28 + $0xe74] ss:$12 sps:$4 sm:$0xff]  }
 0x165   : > { %6541 = vmatpush1.bf16.msra.mxu0 %v9549_v15  ;;  %v248_v15 = vld [vmem:[#allocation2 + $0x28] sm:$0xff] }
 0x166   : > { %6582 = vmatpush1.bf16.msra.mxu1 %v9552_v17  ;;  %6542 = vmatprep.subr.bf16.mxu0 %v9557_v19  ;;  %v9609_v17 = vld [vmem:[%s10621_s28 + $0xcf0] ss:$12 sps:$4 sm:$0xff]  }
 0x167   : > { %6583 = vmatprep.subr.bf16.mxu1 %v9560_v20  ;;  %v9612_v19 = vld [vmem:[%s10621_s28 + $0xe70] ss:$12 sps:$4 sm:$0xff]  }
 0x168   : > { %v9617_v20 = vld [vmem:[%s10621_s28 + $0xcdc] ss:$12 sps:$4 sm:$0xff]  }
 0x169   : > { %6543 = vmatpush1.bf16.msra.mxu0 %v9555_v21  ;;  %v9620_v21 = vld [vmem:[%s10621_s28 + $0xe5c] ss:$12 sps:$4 sm:$0xff]  }
 0x16a   : > { %6584 = vmatpush1.bf16.msra.mxu1 %v9558_v22  ;;  %6544 = vmatprep.subr.bf16.mxu0 %v9563_v23  ;;  %v346_v22 = vcombine.high %v248_v15, %v248_v15  ;;  %v9615_v23 = vld [vmem:[%s10621_s28 + $0xcd8] ss:$12 sps:$4 sm:$0xff]  }
 0x16b   : > { %6585 = vmatprep.subr.bf16.mxu1 %v9566_v26  ;;  %v9618_v26 = vld [vmem:[%s10621_s28 + $0xe58] ss:$12 sps:$4 sm:$0xff]  }
 0x16d   : > { %6545 = vmatpush1.bf16.msra.mxu0 %v9561_v27  ;;  %v9623_v27 = vld [vmem:[%s10621_s28 + $0xcc4] ss:$12 sps:$4 sm:$0xff]  }
 0x16e   : > { %6586 = vmatpush1.bf16.msra.mxu1 %v9564_v28  ;;  %6546 = vmatprep.subr.bf16.mxu0 %v9569_v29  ;;  %v9626_v28 = vld [vmem:[%s10621_s28 + $0xe44] ss:$12 sps:$4 sm:$0xff]   ;;  %v11075_v29 = vrot.slane %v248_v15, %v10678_v49 }
 0x16f   : > { %6587 = vmatprep.subr.bf16.mxu1 %v9572_v30  ;;  %v11078_v30 = vrot.slane %v346_v22, %v10678_v49  ;;  %v9651_v15 = vld [vmem:[%s10621_s28 + $0x10e4] ss:$12 sps:$4 sm:$0xff]   ;;  %v9657_v22 = vld [vmem:[%s10621_s28 + $0x10cc] ss:$12 sps:$4 sm:$0xff]  }
 0x171   : > { %6547 = vmatpush1.bf16.msra.mxu0 %v9567_v31  ;;  %v9621_v31 = vld [vmem:[%s10621_s28 + $0xcc0] ss:$12 sps:$4 sm:$0xff]  }
 0x172   : > { %6588 = vmatpush1.bf16.msra.mxu1 %v9570_v33  ;;  %6548 = vmatprep.subr.bf16.mxu0 %v9575_v35  ;;  %v9624_v33 = vld [vmem:[%s10621_s28 + $0xe40] ss:$12 sps:$4 sm:$0xff]  }
 0x173   : > { %6589 = vmatprep.subr.bf16.mxu1 %v9578_v36  ;;  %v9630_v35 = vld [vmem:[%s10621_s28 + $0xfac] ss:$12 sps:$4 sm:$0xff]  }
 0x174   : > { %v9633_v36 = vld [vmem:[%s10621_s28 + $0x112c] ss:$12 sps:$4 sm:$0xff]  }
 0x175   : > { %6549 = vmatpush1.bf16.msra.mxu0 %v9573_v40  ;;  %v9628_v40 = vld [vmem:[%s10621_s28 + $0xfa8] ss:$12 sps:$4 sm:$0xff]  }
 0x176   : > { %6590 = vmatpush1.bf16.msra.mxu1 %v9576_v41  ;;  %6550 = vmatprep.subr.bf16.mxu0 %v9581_v42  ;;  %v9631_v41 = vld [vmem:[%s10621_s28 + $0x1128] ss:$12 sps:$4 sm:$0xff]   ;;  %v361_v42 = vcombine.high %v11075_v29, %v11075_v29 }
 0x177   : > { %6591 = vmatprep.subr.bf16.mxu1 %v9584_v45  ;;  %v362_v45 = vcombine.high %v11078_v30, %v11078_v30 }
 0x179   : > { %6551 = vmatpush2.bf16.msra.mxu0 %v9579_v46  ;;  %v11092_v46 = vpack.c.bf16 %v10976_v24, %v10976_v24 }
 0x17a   : > { %6592 = vmatpush2.bf16.msra.mxu1 %v9582_v47  ;;  %6552 = vmatprep.subr.bf16.mxu0 %v9587_v59  ;;  %v11096_v47 = vpack.c.bf16 %v10979_v25, %v10979_v25  ;;  %v9636_v59 = vld [vmem:[%s10621_s28 + $0xf94] ss:$12 sps:$4 sm:$0xff]  }
 0x17b   : > { %6593 = vmatprep.subr.bf16.mxu1 %v9590_v51  ;;  %v9639_v51 = vld [vmem:[%s10621_s28 + $0x1114] ss:$12 sps:$4 sm:$0xff]  }
 0x17d   : > { %6553 = vmatpush2.bf16.msra.mxu0 %v9585_v54  ;;  %v9634_v54 = vld [vmem:[%s10621_s28 + $0xf90] ss:$12 sps:$4 sm:$0xff]  }
 0x17e   : > { %6594 = vmatpush2.bf16.msra.mxu1 %v9588_v55  ;;  %6554 = vmatprep.subr.bf16.mxu0 %v9593_v56  ;;  %v9637_v55 = vld [vmem:[%s10621_s28 + $0x1110] ss:$12 sps:$4 sm:$0xff]   ;;  %v11102_v56 = vpack.c.bf16 %v361_v42, %v361_v42 }
 0x17f   : > { %6595 = vmatprep.subr.bf16.mxu1 %v9596_v60  ;;  %v11104_v60 = vpack.c.bf16 %v362_v45, %v362_v45  ;;  %v9672_v42 = vld [vmem:[%s10621_s28 + $0xf04] ss:$12 sps:$4 sm:$0xff]  }
 0x180   : > { %v9675_v45 = vld [vmem:[%s10621_s28 + $0x1084] ss:$12 sps:$4 sm:$0xff]  }
 0x181   : > { %6555 = vmatpush2.bf16.msra.mxu0 %v9591_v61 }
 0x182   : > { %6596 = vmatpush2.bf16.msra.mxu1 %v9594_v63  ;;  %6556 = vmatprep.subr.bf16.mxu0 %v9599_v0 }
 0x183   : > { %6597 = vmatprep.subr.bf16.mxu1 %v9602_v1  ;;  %v9642_v1 = vld [vmem:[%s10621_s28 + $0xf7c] ss:$12 sps:$4 sm:$0xff]  }
 0x185   : > { %6557 = vmatpush2.bf16.msra.mxu0 %v9597_v5  ;;  %v9645_v5 = vld [vmem:[%s10621_s28 + $0x10fc] ss:$12 sps:$4 sm:$0xff]  }
 0x186   : > { %6598 = vmatpush2.bf16.msra.mxu1 %v9600_v7  ;;  %6558 = vmatprep.subr.bf16.mxu0 %v9605_v8 }
 0x187   : > { %6599 = vmatprep.subr.bf16.mxu1 %v9608_v9  ;;  %v9640_v9 = vld [vmem:[%s10621_s28 + $0xf78] ss:$12 sps:$4 sm:$0xff]  }
 0x189   : > { %6559 = vmatpush2.bf16.msra.mxu0 %v9603_v11  ;;  %v9643_v11 = vld [vmem:[%s10621_s28 + $0x10f8] ss:$12 sps:$4 sm:$0xff]  }
 0x18a   : > { %6600 = vmatpush2.bf16.msra.mxu1 %v9606_v12  ;;  %6560 = vmatprep.subr.bf16.mxu0 %v9611_v13 }
 0x18b   : > { %6601 = vmatprep.subr.bf16.mxu1 %v9614_v14 }
 0x18d   : > { %6561 = vmatpush2.bf16.msra.mxu0 %v9609_v17 }
 0x18e   : > { %6602 = vmatpush2.bf16.msra.mxu1 %v9612_v19  ;;  %6562 = vmatprep.subr.bf16.mxu0 %v9617_v20  ;;  %v9646_v19 = vld [vmem:[%s10621_s28 + $0xf60] ss:$12 sps:$4 sm:$0xff]  }
 0x18f   : > { %6603 = vmatprep.subr.bf16.mxu1 %v9620_v21  ;;  %v9649_v20 = vld [vmem:[%s10621_s28 + $0x10e0] ss:$12 sps:$4 sm:$0xff]  }
 0x190   : > { %v9654_v21 = vld [vmem:[%s10621_s28 + $0xf4c] ss:$12 sps:$4 sm:$0xff]  }
 0x191   : > { %6563 = vmatpush2.bf16.msra.mxu0 %v9615_v23  ;;  %v9652_v23 = vld [vmem:[%s10621_s28 + $0xf48] ss:$12 sps:$4 sm:$0xff]  }
 0x192   : > { %6604 = vmatpush2.bf16.msra.mxu1 %v9618_v26  ;;  %6564 = vmatprep.subr.bf16.mxu0 %v9623_v27  ;;  %v9655_v26 = vld [vmem:[%s10621_s28 + $0x10c8] ss:$12 sps:$4 sm:$0xff]  }
 0x193   : > { %6605 = vmatprep.subr.bf16.mxu1 %v9626_v28  ;;  %v9660_v27 = vld [vmem:[%s10621_s28 + $0xf34] ss:$12 sps:$4 sm:$0xff]  }
 0x194   : > { %v9663_v28 = vld [vmem:[%s10621_s28 + $0x10b4] ss:$12 sps:$4 sm:$0xff]  }
 0x195   : > { %6565 = vmatpush2.bf16.msra.mxu0 %v9621_v31  ;;  %v9658_v31 = vld [vmem:[%s10621_s28 + $0xf30] ss:$12 sps:$4 sm:$0xff]  }
 0x196   : > { %6606 = vmatpush2.bf16.msra.mxu1 %v9624_v33  ;;  %6616 = vmatprep.subr.bf16.mxu0 %v9630_v35  ;;  %v9661_v33 = vld [vmem:[%s10621_s28 + $0x10b0] ss:$12 sps:$4 sm:$0xff]  }
 0x197   : > { %6657 = vmatprep.subr.bf16.mxu1 %v9633_v36  ;;  %v9666_v35 = vld [vmem:[%s10621_s28 + $0xf1c] ss:$12 sps:$4 sm:$0xff]  }
 0x198   : > { %v6322_v24 = vpop.f32.mrf.mxu0  ;;  %6567 = vmatmul.mubr.bf16.vlgmr.msra.gmra.mxu0 %v11092_v46  ;;  %v9669_v36 = vld [vmem:[%s10621_s28 + $0x109c] ss:$12 sps:$4 sm:$0xff]  }
 0x199   : > { %6608 = vmatmul.mubr.bf16.vlgmr.msra.gmra.mxu1 %v11096_v47  ;;  %v6363_v25 = vpop.f32.mrf.mxu1  ;;  %v6323_v61 = vadd.f32 %v6322_v24, %v11016_v2  ;;  %6617 = vmatpush1.bf16.msra.mxu0 %v9628_v40  ;;  %v9664_v40 = vld [vmem:[%s10621_s28 + $0xf18] ss:$12 sps:$4 sm:$0xff]   ;;  %v9676_v24 = vld [vmem:[%s10621_s28 + $0x1068] ss:$12 sps:$4 sm:$0xff]  }
 0x19a   : > { %6658 = vmatpush1.bf16.msra.mxu1 %v9631_v41  ;;  %v6324_v63 = vpop.f32.mrf.mxu0  ;;  %6618 = vmatprep.subr.bf16.mxu0 %v9636_v59  ;;  %v9667_v41 = vld [vmem:[%s10621_s28 + $0x1098] ss:$12 sps:$4 sm:$0xff]   ;;  %v9670_v59 = vld [vmem:[%s10621_s28 + $0xf00] ss:$12 sps:$4 sm:$0xff]  }
 0x19b   : > { %v6365_v0 = vpop.f32.mrf.mxu1  ;;  %6659 = vmatprep.subr.bf16.mxu1 %v9639_v51  ;;  %v6325_v7 = vadd.f32 %v6324_v63, %v11022_v44  ;;  %v11112_v8 = vadd.f32 %v6363_v25, %v6323_v61  ;;  %6648 = vmatprep.mubr.bf16.mxu0 %v11102_v56  ;;  %v9648_v44 = vld [vmem:[%s10621_s28 + $0xf64] ss:$12 sps:$4 sm:$0xff]   ;;  %v9673_v51 = vld [vmem:[%s10621_s28 + $0x1080] ss:$12 sps:$4 sm:$0xff]   ;;  %v9679_v25 = vld [vmem:[%s10621_s28 + $0x11e8] ss:$12 sps:$4 sm:$0xff]  }
 0x19c   : > { %6689 = vmatprep.mubr.bf16.mxu1 %v11104_v60  ;;  %v6326_v2 = vpop.f32.mrf.mxu0  ;;  %v9684_v61 = vld [vmem:[%s10621_s28 + $0x1054] ss:$12 sps:$4 sm:$0xff]  }
 0x19d   : > { %v6367_v12 = vpop.f32.mrf.mxu1  ;;  %v11118_v13 = vadd.f32 %v6365_v0, %v6325_v7  ;;  %6619 = vmatpush1.bf16.msra.mxu0 %v9634_v54  ;;  %v9678_v54 = vld [vmem:[%s10621_s28 + $0x106c] ss:$12 sps:$4 sm:$0xff]   ;;  %v9687_v63 = vld [vmem:[%s10621_s28 + $0x11d4] ss:$12 sps:$4 sm:$0xff]   ;;  %v9682_v0 = vld [vmem:[%s10621_s28 + $0x1050] ss:$12 sps:$4 sm:$0xff]  }
 0x19e   : > { %6660 = vmatpush1.bf16.msra.mxu1 %v9637_v55  ;;  %v6327_v14 = vpop.f32.mrf.mxu0  ;;  %6620 = vmatprep.subr.bf16.mxu0 %v9642_v1  ;;  %v9681_v55 = vld [vmem:[%s10621_s28 + $0x11ec] ss:$12 sps:$4 sm:$0xff]   ;;  %v9685_v1 = vld [vmem:[%s10621_s28 + $0x11d0] ss:$12 sps:$4 sm:$0xff]  }
 0x19f   : > { %6661 = vmatprep.subr.bf16.mxu1 %v9645_v5  ;;  %v6368_v17 = vpop.f32.mrf.mxu1  ;;  %v9690_v5 = vld [vmem:[%s10621_s28 + $0x103c] ss:$12 sps:$4 sm:$0xff]   ;;  %v9696_v2 = vld [vmem:[%s10621_s28 + $0x1024] ss:$12 sps:$4 sm:$0xff]   ;;  %v9694_v14 = vld [vmem:[%s10621_s28 + $0x1020] ss:$12 sps:$4 sm:$0xff]  }
 0x1a0   : > { %v9693_v7 = vld [vmem:[%s10621_s28 + $0x11bc] ss:$12 sps:$4 sm:$0xff]   ;;  %v9699_v12 = vld [vmem:[%s10621_s28 + $0x11a4] ss:$12 sps:$4 sm:$0xff]   ;;  %v9705_v17 = vld [vmem:[%s10621_s28 + $0x118c] ss:$12 sps:$4 sm:$0xff]  }
 0x1a1   : > { %6621 = vmatpush1.bf16.msra.mxu0 %v9640_v9  ;;  %v9688_v9 = vld [vmem:[%s10621_s28 + $0x1038] ss:$12 sps:$4 sm:$0xff]  }
 0x1a2   : > { %6662 = vmatpush1.bf16.msra.mxu1 %v9643_v11  ;;  %6622 = vmatprep.subr.bf16.mxu0 %v9648_v44  ;;  %v9691_v11 = vld [vmem:[%s10621_s28 + $0x11b8] ss:$12 sps:$4 sm:$0xff]   ;;  %v9697_v44 = vld [vmem:[%s10621_s28 + $0x11a0] ss:$12 sps:$4 sm:$0xff]  }
 0x1a3   : > { %6663 = vmatprep.subr.bf16.mxu1 %v9651_v15  ;;  %v9702_v15 = vld [vmem:[%s10621_s28 + $0x100c] ss:$12 sps:$4 sm:$0xff]  }
 0x1a5   : > { %6623 = vmatpush1.bf16.msra.mxu0 %v9646_v19  ;;  %v9700_v19 = vld [vmem:[%s10621_s28 + $0x1008] ss:$12 sps:$4 sm:$0xff]  }
 0x1a6   : > { %6664 = vmatpush1.bf16.msra.mxu1 %v9649_v20  ;;  %6624 = vmatprep.subr.bf16.mxu0 %v9654_v21  ;;  %v9703_v20 = vld [vmem:[%s10621_s28 + $0x1188] ss:$12 sps:$4 sm:$0xff]  }
 0x1a7   : > { %6665 = vmatprep.subr.bf16.mxu1 %v9657_v22  ;;  %v9708_v21 = vld [vmem:[%s10621_s28 + $0xff4] ss:$12 sps:$4 sm:$0xff]  }
 0x1a8   : > { %v9711_v22 = vld [vmem:[%s10621_s28 + $0x1174] ss:$12 sps:$4 sm:$0xff]  }
 0x1a9   : > { %6625 = vmatpush1.bf16.msra.mxu0 %v9652_v23  ;;  %v249_v23 = vld [vmem:[#allocation2 + $0x30] sm:$0xff] }
 0x1aa   : > { %6666 = vmatpush1.bf16.msra.mxu1 %v9655_v26  ;;  %6626 = vmatprep.subr.bf16.mxu0 %v9660_v27  ;;  %v9706_v26 = vld [vmem:[%s10621_s28 + $0xff0] ss:$12 sps:$4 sm:$0xff]  }
 0x1ab   : > { %6667 = vmatprep.subr.bf16.mxu1 %v9663_v28  ;;  %v9709_v27 = vld [vmem:[%s10621_s28 + $0x1170] ss:$12 sps:$4 sm:$0xff]  }
 0x1ac   : > { %v9714_v28 = vld [vmem:[%s10621_s28 + $0xfdc] ss:$12 sps:$4 sm:$0xff]  }
 0x1ad   : > { %6627 = vmatpush1.bf16.msra.mxu0 %v9658_v31  ;;  %v9717_v31 = vld [vmem:[%s10621_s28 + $0x115c] ss:$12 sps:$4 sm:$0xff]  }
 0x1ae   : > { %6668 = vmatpush1.bf16.msra.mxu1 %v9661_v33  ;;  %6628 = vmatprep.subr.bf16.mxu0 %v9666_v35  ;;  %v363_v33 = vcombine.high %v249_v23, %v249_v23  ;;  %v9712_v35 = vld [vmem:[%s10621_s28 + $0xfd8] ss:$12 sps:$4 sm:$0xff]  }
 0x1af   : > { %6669 = vmatprep.subr.bf16.mxu1 %v9669_v36  ;;  %v9715_v36 = vld [vmem:[%s10621_s28 + $0x1158] ss:$12 sps:$4 sm:$0xff]  }
 0x1b1   : > { %6629 = vmatpush1.bf16.msra.mxu0 %v9664_v40  ;;  %v9720_v40 = vld [vmem:[%s10621_s28 + $0xfc4] ss:$12 sps:$4 sm:$0xff]  }
 0x1b2   : > { %6670 = vmatpush1.bf16.msra.mxu1 %v9667_v41  ;;  %6630 = vmatprep.subr.bf16.mxu0 %v9672_v42  ;;  %v9723_v41 = vld [vmem:[%s10621_s28 + $0x1144] ss:$12 sps:$4 sm:$0xff]   ;;  %v11171_v42 = vrot.slane %v249_v23, %v10678_v49 }
 0x1b3   : > { %6671 = vmatprep.subr.bf16.mxu1 %v9675_v45  ;;  %v11174_v45 = vrot.slane %v363_v33, %v10678_v49  ;;  %v9740_v23 = vld [vmem:[%s10621_s28 + $0x13f8] ss:$12 sps:$4 sm:$0xff]  }
 0x1b5   : > { %6631 = vmatpush1.bf16.msra.mxu0 %v9670_v59  ;;  %v9718_v59 = vld [vmem:[%s10621_s28 + $0xfc0] ss:$12 sps:$4 sm:$0xff]  }
 0x1b6   : > { %6672 = vmatpush1.bf16.msra.mxu1 %v9673_v51  ;;  %6632 = vmatprep.subr.bf16.mxu0 %v9678_v54  ;;  %v9721_v51 = vld [vmem:[%s10621_s28 + $0x1140] ss:$12 sps:$4 sm:$0xff]  }
 0x1b7   : > { %6673 = vmatprep.subr.bf16.mxu1 %v9681_v55  ;;  %v9727_v54 = vld [vmem:[%s10621_s28 + $0x12ac] ss:$12 sps:$4 sm:$0xff]  }
 0x1b8   : > { %v9730_v55 = vld [vmem:[%s10621_s28 + $0x142c] ss:$12 sps:$4 sm:$0xff]  }
 0x1b9   : > { %6633 = vmatpush2.bf16.msra.mxu0 %v9676_v24  ;;  %v9725_v24 = vld [vmem:[%s10621_s28 + $0x12a8] ss:$12 sps:$4 sm:$0xff]  }
 0x1ba   : > { %6674 = vmatpush2.bf16.msra.mxu1 %v9679_v25  ;;  %6634 = vmatprep.subr.bf16.mxu0 %v9684_v61  ;;  %v9728_v25 = vld [vmem:[%s10621_s28 + $0x1428] ss:$12 sps:$4 sm:$0xff]   ;;  %v378_v61 = vcombine.high %v11171_v42, %v11171_v42 }
 0x1bb   : > { %6675 = vmatprep.subr.bf16.mxu1 %v9687_v63  ;;  %v379_v63 = vcombine.high %v11174_v45, %v11174_v45 }
 0x1bd   : > { %6635 = vmatpush2.bf16.msra.mxu0 %v9682_v0  ;;  %v11188_v0 = vpack.c.bf16 %v11075_v29, %v11075_v29 }
 0x1be   : > { %6676 = vmatpush2.bf16.msra.mxu1 %v9685_v1  ;;  %6636 = vmatprep.subr.bf16.mxu0 %v9690_v5  ;;  %v11192_v1 = vpack.c.bf16 %v11078_v30, %v11078_v30  ;;  %v9733_v5 = vld [vmem:[%s10621_s28 + $0x1294] ss:$12 sps:$4 sm:$0xff]  }
 0x1bf   : > { %6677 = vmatprep.subr.bf16.mxu1 %v9693_v7  ;;  %v9736_v7 = vld [vmem:[%s10621_s28 + $0x1414] ss:$12 sps:$4 sm:$0xff]  }
 0x1c1   : > { %6637 = vmatpush2.bf16.msra.mxu0 %v9688_v9  ;;  %v9731_v9 = vld [vmem:[%s10621_s28 + $0x1290] ss:$12 sps:$4 sm:$0xff]  }
 0x1c2   : > { %6678 = vmatpush2.bf16.msra.mxu1 %v9691_v11  ;;  %6638 = vmatprep.subr.bf16.mxu0 %v9696_v2  ;;  %v9734_v11 = vld [vmem:[%s10621_s28 + $0x1410] ss:$12 sps:$4 sm:$0xff]   ;;  %v11198_v2 = vpack.c.bf16 %v378_v61, %v378_v61 }
 0x1c3   : > { %6679 = vmatprep.subr.bf16.mxu1 %v9699_v12  ;;  %v11200_v12 = vpack.c.bf16 %v379_v63, %v379_v63  ;;  %v9763_v61 = vld [vmem:[%s10621_s28 + $0x121c] ss:$12 sps:$4 sm:$0xff]  }
 0x1c4   : > { %v9766_v63 = vld [vmem:[%s10621_s28 + $0x139c] ss:$12 sps:$4 sm:$0xff]  }
 0x1c5   : > { %6639 = vmatpush2.bf16.msra.mxu0 %v9694_v14 }
 0x1c6   : > { %6680 = vmatpush2.bf16.msra.mxu1 %v9697_v44  ;;  %6640 = vmatprep.subr.bf16.mxu0 %v9702_v15 }
 0x1c7   : > { %6681 = vmatprep.subr.bf16.mxu1 %v9705_v17  ;;  %v9739_v17 = vld [vmem:[%s10621_s28 + $0x127c] ss:$12 sps:$4 sm:$0xff]  }
 0x1c9   : > { %6641 = vmatpush2.bf16.msra.mxu0 %v9700_v19  ;;  %v9742_v19 = vld [vmem:[%s10621_s28 + $0x13fc] ss:$12 sps:$4 sm:$0xff]  }
 0x1ca   : > { %6682 = vmatpush2.bf16.msra.mxu1 %v9703_v20  ;;  %6642 = vmatprep.subr.bf16.mxu0 %v9708_v21 }
 0x1cb   : > { %6683 = vmatprep.subr.bf16.mxu1 %v9711_v22  ;;  %v9737_v22 = vld [vmem:[%s10621_s28 + $0x1278] ss:$12 sps:$4 sm:$0xff]  }
 0x1cd   : > { %6643 = vmatpush2.bf16.msra.mxu0 %v9706_v26 }
 0x1ce   : > { %6684 = vmatpush2.bf16.msra.mxu1 %v9709_v27  ;;  %6644 = vmatprep.subr.bf16.mxu0 %v9714_v28 }
 0x1cf   : > { %6685 = vmatprep.subr.bf16.mxu1 %v9717_v31  ;;  %v9748_v31 = vld [vmem:[%s10621_s28 + $0x13e4] ss:$12 sps:$4 sm:$0xff]  }
 0x1d1   : > { %6645 = vmatpush2.bf16.msra.mxu0 %v9712_v35  ;;  %v9743_v35 = vld [vmem:[%s10621_s28 + $0x1260] ss:$12 sps:$4 sm:$0xff]  }
 0x1d2   : > { %6686 = vmatpush2.bf16.msra.mxu1 %v9715_v36  ;;  %6646 = vmatprep.subr.bf16.mxu0 %v9720_v40  ;;  %v9746_v36 = vld [vmem:[%s10621_s28 + $0x13e0] ss:$12 sps:$4 sm:$0xff]  }
 0x1d3   : > { %6687 = vmatprep.subr.bf16.mxu1 %v9723_v41  ;;  %v9751_v40 = vld [vmem:[%s10621_s28 + $0x124c] ss:$12 sps:$4 sm:$0xff]  }
 0x1d4   : > { %v9754_v41 = vld [vmem:[%s10621_s28 + $0x13cc] ss:$12 sps:$4 sm:$0xff]  }
 0x1d5   : > { %6647 = vmatpush2.bf16.msra.mxu0 %v9718_v59  ;;  %v9749_v59 = vld [vmem:[%s10621_s28 + $0x1248] ss:$12 sps:$4 sm:$0xff]  }
 0x1d6   : > { %6688 = vmatpush2.bf16.msra.mxu1 %v9721_v51  ;;  %6698 = vmatprep.subr.bf16.mxu0 %v9727_v54  ;;  %v9752_v51 = vld [vmem:[%s10621_s28 + $0x13c8] ss:$12 sps:$4 sm:$0xff]  }
 0x1d7   : > { %6739 = vmatprep.subr.bf16.mxu1 %v9730_v55  ;;  %v9757_v54 = vld [vmem:[%s10621_s28 + $0x1234] ss:$12 sps:$4 sm:$0xff]  }
 0x1d8   : > { %v6404_v29 = vpop.f32.mrf.mxu0  ;;  %6649 = vmatmul.mubr.bf16.vlgmr.msra.gmra.mxu0 %v11188_v0  ;;  %v9760_v55 = vld [vmem:[%s10621_s28 + $0x13b4] ss:$12 sps:$4 sm:$0xff]  }
 0x1d9   : > { %6690 = vmatmul.mubr.bf16.vlgmr.msra.gmra.mxu1 %v11192_v1  ;;  %v6445_v30 = vpop.f32.mrf.mxu1  ;;  %v6405_v14 = vadd.f32 %v6404_v29, %v11112_v8  ;;  %6699 = vmatpush1.bf16.msra.mxu0 %v9725_v24  ;;  %v9755_v24 = vld [vmem:[%s10621_s28 + $0x1230] ss:$12 sps:$4 sm:$0xff]   ;;  %v9767_v29 = vld [vmem:[%s10621_s28 + $0x1200] ss:$12 sps:$4 sm:$0xff]  }
 0x1da   : > { %6740 = vmatpush1.bf16.msra.mxu1 %v9728_v25  ;;  %v6406_v44 = vpop.f32.mrf.mxu0  ;;  %6700 = vmatprep.subr.bf16.mxu0 %v9733_v5  ;;  %v9758_v25 = vld [vmem:[%s10621_s28 + $0x13b0] ss:$12 sps:$4 sm:$0xff]   ;;  %v9761_v5 = vld [vmem:[%s10621_s28 + $0x1218] ss:$12 sps:$4 sm:$0xff]  }
 0x1db   : > { %v6447_v15 = vpop.f32.mrf.mxu1  ;;  %6741 = vmatprep.subr.bf16.mxu1 %v9736_v7  ;;  %v6407_v20 = vadd.f32 %v6406_v44, %v11118_v13  ;;  %v11208_v21 = vadd.f32 %v6445_v30, %v6405_v14  ;;  %6730 = vmatprep.mubr.bf16.mxu0 %v11198_v2  ;;  %v9745_v13 = vld [vmem:[%s10621_s28 + $0x1264] ss:$12 sps:$4 sm:$0xff]   ;;  %v9770_v30 = vld [vmem:[%s10621_s28 + $0x1380] ss:$12 sps:$4 sm:$0xff]  }
 0x1dc   : > { %6771 = vmatprep.mubr.bf16.mxu1 %v11200_v12  ;;  %v6408_v8 = vpop.f32.mrf.mxu0  ;;  %v9764_v7 = vld [vmem:[%s10621_s28 + $0x1398] ss:$12 sps:$4 sm:$0xff]  }
 0x1dd   : > { %v6449_v26 = vpop.f32.mrf.mxu1  ;;  %v11214_v27 = vadd.f32 %v6447_v15, %v6407_v20  ;;  %6701 = vmatpush1.bf16.msra.mxu0 %v9731_v9  ;;  %v9769_v9 = vld [vmem:[%s10621_s28 + $0x1204] ss:$12 sps:$4 sm:$0xff]   ;;  %v9775_v14 = vld [vmem:[%s10621_s28 + $0x136c] ss:$12 sps:$4 sm:$0xff]   ;;  %v9773_v15 = vld [vmem:[%s10621_s28 + $0x1368] ss:$12 sps:$4 sm:$0xff]  }
 0x1de   : > { %6742 = vmatpush1.bf16.msra.mxu1 %v9734_v11  ;;  %v6409_v28 = vpop.f32.mrf.mxu0  ;;  %6702 = vmatprep.subr.bf16.mxu0 %v9739_v17  ;;  %v9772_v11 = vld [vmem:[%s10621_s28 + $0x1384] ss:$12 sps:$4 sm:$0xff]   ;;  %v9778_v44 = vld [vmem:[%s10621_s28 + $0x14ec] ss:$12 sps:$4 sm:$0xff]   ;;  %v9776_v17 = vld [vmem:[%s10621_s28 + $0x14e8] ss:$12 sps:$4 sm:$0xff]  }
 0x1df   : > { %6743 = vmatprep.subr.bf16.mxu1 %v9742_v19  ;;  %v6450_v33 = vpop.f32.mrf.mxu1  ;;  %v9781_v19 = vld [vmem:[%s10621_s28 + $0x1354] ss:$12 sps:$4 sm:$0xff]   ;;  %v9787_v8 = vld [vmem:[%s10621_s28 + $0x133c] ss:$12 sps:$4 sm:$0xff]   ;;  %v9785_v28 = vld [vmem:[%s10621_s28 + $0x1338] ss:$12 sps:$4 sm:$0xff]  }
 0x1e0   : > { %v9784_v20 = vld [vmem:[%s10621_s28 + $0x14d4] ss:$12 sps:$4 sm:$0xff]   ;;  %v9790_v26 = vld [vmem:[%s10621_s28 + $0x14bc] ss:$12 sps:$4 sm:$0xff]   ;;  %v9796_v33 = vld [vmem:[%s10621_s28 + $0x14a4] ss:$12 sps:$4 sm:$0xff]  }
 0x1e1   : > { %6703 = vmatpush1.bf16.msra.mxu0 %v9737_v22  ;;  %v9779_v22 = vld [vmem:[%s10621_s28 + $0x1350] ss:$12 sps:$4 sm:$0xff]  }
 0x1e2   : > { %6744 = vmatpush1.bf16.msra.mxu1 %v9740_v23  ;;  %6704 = vmatprep.subr.bf16.mxu0 %v9745_v13  ;;  %v9782_v23 = vld [vmem:[%s10621_s28 + $0x14d0] ss:$12 sps:$4 sm:$0xff]   ;;  %v9788_v13 = vld [vmem:[%s10621_s28 + $0x14b8] ss:$12 sps:$4 sm:$0xff]  }
 0x1e3   : > { %6745 = vmatprep.subr.bf16.mxu1 %v9748_v31  ;;  %v9793_v31 = vld [vmem:[%s10621_s28 + $0x1324] ss:$12 sps:$4 sm:$0xff]  }
 0x1e5   : > { %6705 = vmatpush1.bf16.msra.mxu0 %v9743_v35  ;;  %v9791_v35 = vld [vmem:[%s10621_s28 + $0x1320] ss:$12 sps:$4 sm:$0xff]  }
 0x1e6   : > { %6746 = vmatpush1.bf16.msra.mxu1 %v9746_v36  ;;  %6706 = vmatprep.subr.bf16.mxu0 %v9751_v40  ;;  %v9794_v36 = vld [vmem:[%s10621_s28 + $0x14a0] ss:$12 sps:$4 sm:$0xff]  }
 0x1e7   : > { %6747 = vmatprep.subr.bf16.mxu1 %v9754_v41  ;;  %v9799_v40 = vld [vmem:[%s10621_s28 + $0x130c] ss:$12 sps:$4 sm:$0xff]  }
 0x1e8   : > { %v9802_v41 = vld [vmem:[%s10621_s28 + $0x148c] ss:$12 sps:$4 sm:$0xff]  }
 0x1e9   : > { %6707 = vmatpush1.bf16.msra.mxu0 %v9749_v59  ;;  %v9797_v59 = vld [vmem:[%s10621_s28 + $0x1308] ss:$12 sps:$4 sm:$0xff]  }
 0x1ea   : > { %6748 = vmatpush1.bf16.msra.mxu1 %v9752_v51  ;;  %6708 = vmatprep.subr.bf16.mxu0 %v9757_v54  ;;  %v9800_v51 = vld [vmem:[%s10621_s28 + $0x1488] ss:$12 sps:$4 sm:$0xff]  }
 0x1eb   : > { %6749 = vmatprep.subr.bf16.mxu1 %v9760_v55  ;;  %v9805_v54 = vld [vmem:[%s10621_s28 + $0x12f4] ss:$12 sps:$4 sm:$0xff]  }
 0x1ec   : > { %v9808_v55 = vld [vmem:[%s10621_s28 + $0x1474] ss:$12 sps:$4 sm:$0xff]  }
 0x1ed   : > { %6709 = vmatpush1.bf16.msra.mxu0 %v9755_v24  ;;  %v250_v24 = vld [vmem:[#allocation2 + $0x38] sm:$0xff] }
 0x1ee   : > { %6750 = vmatpush1.bf16.msra.mxu1 %v9758_v25  ;;  %6710 = vmatprep.subr.bf16.mxu0 %v9763_v61  ;;  %v9803_v25 = vld [vmem:[%s10621_s28 + $0x12f0] ss:$12 sps:$4 sm:$0xff]  }
 0x1ef   : > { %6751 = vmatprep.subr.bf16.mxu1 %v9766_v63  ;;  %v9806_v61 = vld [vmem:[%s10621_s28 + $0x1470] ss:$12 sps:$4 sm:$0xff]  }
 0x1f0   : > { %v9811_v63 = vld [vmem:[%s10621_s28 + $0x12dc] ss:$12 sps:$4 sm:$0xff]  }
 0x1f1   : > { %6711 = vmatpush1.bf16.msra.mxu0 %v9761_v5  ;;  %v9814_v5 = vld [vmem:[%s10621_s28 + $0x145c] ss:$12 sps:$4 sm:$0xff]  }
 0x1f2   : > { %6752 = vmatpush1.bf16.msra.mxu1 %v9764_v7  ;;  %6712 = vmatprep.subr.bf16.mxu0 %v9769_v9  ;;  %v9809_v7 = vld [vmem:[%s10621_s28 + $0x12d8] ss:$12 sps:$4 sm:$0xff]   ;;  %v380_v9 = vcombine.high %v250_v24, %v250_v24 }
 0x1f3   : > { %6753 = vmatprep.subr.bf16.mxu1 %v9772_v11  ;;  %v9812_v11 = vld [vmem:[%s10621_s28 + $0x1458] ss:$12 sps:$4 sm:$0xff]  }
 0x1f5   : > { %6713 = vmatpush1.bf16.msra.mxu0 %v9767_v29  ;;  %v9817_v29 = vld [vmem:[%s10621_s28 + $0x12c4] ss:$12 sps:$4 sm:$0xff]  }
 0x1f6   : > { %6754 = vmatpush1.bf16.msra.mxu1 %v9770_v30  ;;  %6714 = vmatprep.subr.bf16.mxu0 %v9775_v14  ;;  %v9820_v30 = vld [vmem:[%s10621_s28 + $0x1444] ss:$12 sps:$4 sm:$0xff]   ;;  %v9815_v14 = vld [vmem:[%s10621_s28 + $0x12c0] ss:$12 sps:$4 sm:$0xff]  }
 0x1f7   : > { %6755 = vmatprep.subr.bf16.mxu1 %v9778_v44  ;;  %v11268_v44 = vrot.slane %v250_v24, %v10678_v49  ;;  %v9839_v24 = vld [vmem:[%s10621_s28 + $0x16fc] ss:$12 sps:$4 sm:$0xff]  }
 0x1f9   : > { %6715 = vmatpush2.bf16.msra.mxu0 %v9773_v15  ;;  %v11271_v15 = vrot.slane %v380_v9, %v10678_v49 }
 0x1fa   : > { %6756 = vmatpush2.bf16.msra.mxu1 %v9776_v17  ;;  %6716 = vmatprep.subr.bf16.mxu0 %v9781_v19  ;;  %v9818_v17 = vld [vmem:[%s10621_s28 + $0x1440] ss:$12 sps:$4 sm:$0xff]  }
 0x1fb   : > { %6757 = vmatprep.subr.bf16.mxu1 %v9784_v20  ;;  %v9824_v19 = vld [vmem:[%s10621_s28 + $0x15ac] ss:$12 sps:$4 sm:$0xff]  }
 0x1fc   : > { %v9827_v20 = vld [vmem:[%s10621_s28 + $0x172c] ss:$12 sps:$4 sm:$0xff]  }
 0x1fd   : > { %6717 = vmatpush2.bf16.msra.mxu0 %v9779_v22  ;;  %v9822_v22 = vld [vmem:[%s10621_s28 + $0x15a8] ss:$12 sps:$4 sm:$0xff]  }
 0x1fe   : > { %6758 = vmatpush2.bf16.msra.mxu1 %v9782_v23  ;;  %6718 = vmatprep.subr.bf16.mxu0 %v9787_v8  ;;  %v9825_v23 = vld [vmem:[%s10621_s28 + $0x1728] ss:$12 sps:$4 sm:$0xff]   ;;  %v395_v8 = vcombine.high %v11268_v44, %v11268_v44 }
 0x1ff   : > { %6759 = vmatprep.subr.bf16.mxu1 %v9790_v26  ;;  %v396_v26 = vcombine.high %v11271_v15, %v11271_v15 }
 0x201   : > { %6719 = vmatpush2.bf16.msra.mxu0 %v9785_v28  ;;  %v11284_v28 = vpack.c.bf16 %v11171_v42, %v11171_v42 }
 0x202   : > { %6760 = vmatpush2.bf16.msra.mxu1 %v9788_v13  ;;  %6720 = vmatprep.subr.bf16.mxu0 %v9793_v31  ;;  %v11288_v13 = vpack.c.bf16 %v11174_v45, %v11174_v45  ;;  %v9830_v31 = vld [vmem:[%s10621_s28 + $0x1594] ss:$12 sps:$4 sm:$0xff]  }
 0x203   : > { %6761 = vmatprep.subr.bf16.mxu1 %v9796_v33  ;;  %v9833_v33 = vld [vmem:[%s10621_s28 + $0x1714] ss:$12 sps:$4 sm:$0xff]  }
 0x205   : > { %6721 = vmatpush2.bf16.msra.mxu0 %v9791_v35  ;;  %v9828_v35 = vld [vmem:[%s10621_s28 + $0x1590] ss:$12 sps:$4 sm:$0xff]  }
 0x206   : > { %6762 = vmatpush2.bf16.msra.mxu1 %v9794_v36  ;;  %6722 = vmatprep.subr.bf16.mxu0 %v9799_v40  ;;  %v9831_v36 = vld [vmem:[%s10621_s28 + $0x1710] ss:$12 sps:$4 sm:$0xff]   ;;  %v11294_v40 = vpack.c.bf16 %v395_v8, %v395_v8  ;;  %v9854_v8 = vld [vmem:[%s10621_s28 + $0x1534] ss:$12 sps:$4 sm:$0xff]  }
 0x207   : > { %6763 = vmatprep.subr.bf16.mxu1 %v9802_v41  ;;  %v11296_v41 = vpack.c.bf16 %v396_v26, %v396_v26  ;;  %v9857_v26 = vld [vmem:[%s10621_s28 + $0x16b4] ss:$12 sps:$4 sm:$0xff]  }
 0x209   : > { %6723 = vmatpush2.bf16.msra.mxu0 %v9797_v59 }
 0x20a   : > { %6764 = vmatpush2.bf16.msra.mxu1 %v9800_v51  ;;  %6724 = vmatprep.subr.bf16.mxu0 %v9805_v54 }
 0x20b   : > { %6765 = vmatprep.subr.bf16.mxu1 %v9808_v55  ;;  %v9836_v55 = vld [vmem:[%s10621_s28 + $0x157c] ss:$12 sps:$4 sm:$0xff]  }
 0x20d   : > { %6725 = vmatpush2.bf16.msra.mxu0 %v9803_v25 }
 0x20e   : > { %6766 = vmatpush2.bf16.msra.mxu1 %v9806_v61  ;;  %6726 = vmatprep.subr.bf16.mxu0 %v9811_v63  ;;  %v9834_v63 = vld [vmem:[%s10621_s28 + $0x1578] ss:$12 sps:$4 sm:$0xff]  }
 0x20f   : > { %6767 = vmatprep.subr.bf16.mxu1 %v9814_v5  ;;  %v9837_v5 = vld [vmem:[%s10621_s28 + $0x16f8] ss:$12 sps:$4 sm:$0xff]  }
 0x211   : > { %6727 = vmatpush2.bf16.msra.mxu0 %v9809_v7 }
 0x212   : > { %6768 = vmatpush2.bf16.msra.mxu1 %v9812_v11  ;;  %6728 = vmatprep.subr.bf16.mxu0 %v9817_v29  ;;  %v9842_v11 = vld [vmem:[%s10621_s28 + $0x1564] ss:$12 sps:$4 sm:$0xff]  }
 0x213   : > { %6769 = vmatprep.subr.bf16.mxu1 %v9820_v30  ;;  %v9845_v29 = vld [vmem:[%s10621_s28 + $0x16e4] ss:$12 sps:$4 sm:$0xff]  }
 0x215   : > { %6729 = vmatpush2.bf16.msra.mxu0 %v9815_v14  ;;  %v9840_v14 = vld [vmem:[%s10621_s28 + $0x1560] ss:$12 sps:$4 sm:$0xff]  }
 0x216   : > { %6770 = vmatpush2.bf16.msra.mxu1 %v9818_v17  ;;  %6780 = vmatprep.subr.bf16.mxu0 %v9824_v19  ;;  %v9843_v17 = vld [vmem:[%s10621_s28 + $0x16e0] ss:$12 sps:$4 sm:$0xff]  }
 0x217   : > { %6821 = vmatprep.subr.bf16.mxu1 %v9827_v20  ;;  %v9848_v19 = vld [vmem:[%s10621_s28 + $0x154c] ss:$12 sps:$4 sm:$0xff]  }
 0x218   : > { %v6486_v42 = vpop.f32.mrf.mxu0  ;;  %6731 = vmatmul.mubr.bf16.vlgmr.msra.gmra.mxu0 %v11284_v28  ;;  %v9851_v20 = vld [vmem:[%s10621_s28 + $0x16cc] ss:$12 sps:$4 sm:$0xff]  }
 0x219   : > { %6772 = vmatmul.mubr.bf16.vlgmr.msra.gmra.mxu1 %v11288_v13  ;;  %v6527_v45 = vpop.f32.mrf.mxu1  ;;  %v6487_v59 = vadd.f32 %v6486_v42, %v11208_v21  ;;  %6781 = vmatpush1.bf16.msra.mxu0 %v9822_v22  ;;  %v9846_v22 = vld [vmem:[%s10621_s28 + $0x1548] ss:$12 sps:$4 sm:$0xff]   ;;  %v9858_v42 = vld [vmem:[%s10621_s28 + $0x1518] ss:$12 sps:$4 sm:$0xff]  }
 0x21a   : > { %6822 = vmatpush1.bf16.msra.mxu1 %v9825_v23  ;;  %v6488_v51 = vpop.f32.mrf.mxu0  ;;  %6782 = vmatprep.subr.bf16.mxu0 %v9830_v31  ;;  %v9849_v23 = vld [vmem:[%s10621_s28 + $0x16c8] ss:$12 sps:$4 sm:$0xff]   ;;  %v9852_v31 = vld [vmem:[%s10621_s28 + $0x1530] ss:$12 sps:$4 sm:$0xff]  }
 0x21b   : > { %v6529_v54 = vpop.f32.mrf.mxu1  ;;  %6823 = vmatprep.subr.bf16.mxu1 %v9833_v33  ;;  %v6489_v25 = vadd.f32 %v6488_v51, %v11214_v27  ;;  %v11304_v61 = vadd.f32 %v6527_v45, %v6487_v59  ;;  %6812 = vmatprep.mubr.bf16.mxu0 %v11294_v40  ;;  %v9855_v33 = vld [vmem:[%s10621_s28 + $0x16b0] ss:$12 sps:$4 sm:$0xff]   ;;  %v9861_v45 = vld [vmem:[%s10621_s28 + $0x1698] ss:$12 sps:$4 sm:$0xff]  }
 0x21c   : > { %6853 = vmatprep.mubr.bf16.mxu1 %v11296_v41  ;;  %v6490_v21 = vpop.f32.mrf.mxu0  ;;  %v9866_v59 = vld [vmem:[%s10621_s28 + $0x1504] ss:$12 sps:$4 sm:$0xff]  }
 0x21d   : > { %v6531_v7 = vpop.f32.mrf.mxu1  ;;  %v11310_v9 = vadd.f32 %v6529_v54, %v6489_v25  ;;  %6783 = vmatpush1.bf16.msra.mxu0 %v9828_v35  ;;  %v9860_v35 = vld [vmem:[%s10621_s28 + $0x151c] ss:$12 sps:$4 sm:$0xff]   ;;  %v9869_v51 = vld [vmem:[%s10621_s28 + $0x1684] ss:$12 sps:$4 sm:$0xff]   ;;  %v9864_v54 = vld [vmem:[%s10621_s28 + $0x1500] ss:$12 sps:$4 sm:$0xff]  }
 0x21e   : > { %6824 = vmatpush1.bf16.msra.mxu1 %v9831_v36  ;;  %v6491_v27 = vpop.f32.mrf.mxu0  ;;  %6784 = vmatprep.subr.bf16.mxu0 %v9836_v55  ;;  %v9863_v36 = vld [vmem:[%s10621_s28 + $0x169c] ss:$12 sps:$4 sm:$0xff]   ;;  %v9867_v55 = vld [vmem:[%s10621_s28 + $0x1680] ss:$12 sps:$4 sm:$0xff]  }
 0x21f   : > { %6825 = vmatprep.subr.bf16.mxu1 %v9839_v24  ;;  %v6532_v30 = vpop.f32.mrf.mxu1  ;;  %v9872_v24 = vld [vmem:[%s10621_s28 + $0x166c] ss:$12 sps:$4 sm:$0xff]   ;;  %v9878_v21 = vld [vmem:[%s10621_s28 + $0x1654] ss:$12 sps:$4 sm:$0xff]   ;;  %v9876_v27 = vld [vmem:[%s10621_s28 + $0x1650] ss:$12 sps:$4 sm:$0xff]  }
 0x220   : > { %v9875_v25 = vld [vmem:[%s10621_s28 + $0x17ec] ss:$12 sps:$4 sm:$0xff]   ;;  %v9881_v7 = vld [vmem:[%s10621_s28 + $0x17d4] ss:$12 sps:$4 sm:$0xff]   ;;  %v9887_v30 = vld [vmem:[%s10621_s28 + $0x17bc] ss:$12 sps:$4 sm:$0xff]  }
 0x221   : > { %6785 = vmatpush1.bf16.msra.mxu0 %v9834_v63  ;;  %v9870_v63 = vld [vmem:[%s10621_s28 + $0x1668] ss:$12 sps:$4 sm:$0xff]  }
 0x222   : > { %6826 = vmatpush1.bf16.msra.mxu1 %v9837_v5  ;;  %6786 = vmatprep.subr.bf16.mxu0 %v9842_v11  ;;  %v9873_v5 = vld [vmem:[%s10621_s28 + $0x17e8] ss:$12 sps:$4 sm:$0xff]   ;;  %v9879_v11 = vld [vmem:[%s10621_s28 + $0x17d0] ss:$12 sps:$4 sm:$0xff]  }
 0x223   : > { %6827 = vmatprep.subr.bf16.mxu1 %v9845_v29  ;;  %v9884_v29 = vld [vmem:[%s10621_s28 + $0x163c] ss:$12 sps:$4 sm:$0xff]  }
 0x225   : > { %6787 = vmatpush1.bf16.msra.mxu0 %v9840_v14  ;;  %v9882_v14 = vld [vmem:[%s10621_s28 + $0x1638] ss:$12 sps:$4 sm:$0xff]  }
 0x226   : > { %6828 = vmatpush1.bf16.msra.mxu1 %v9843_v17  ;;  %6788 = vmatprep.subr.bf16.mxu0 %v9848_v19  ;;  %v9885_v17 = vld [vmem:[%s10621_s28 + $0x17b8] ss:$12 sps:$4 sm:$0xff]  }
 0x227   : > { %6829 = vmatprep.subr.bf16.mxu1 %v9851_v20  ;;  %v9890_v19 = vld [vmem:[%s10621_s28 + $0x1624] ss:$12 sps:$4 sm:$0xff]  }
 0x228   : > { %v9893_v20 = vld [vmem:[%s10621_s28 + $0x17a4] ss:$12 sps:$4 sm:$0xff]  }
 0x229   : > { %6789 = vmatpush1.bf16.msra.mxu0 %v9846_v22  ;;  %v9888_v22 = vld [vmem:[%s10621_s28 + $0x1620] ss:$12 sps:$4 sm:$0xff]  }
 0x22a   : > { %6830 = vmatpush1.bf16.msra.mxu1 %v9849_v23  ;;  %6790 = vmatprep.subr.bf16.mxu0 %v9854_v8  ;;  %v9891_v23 = vld [vmem:[%s10621_s28 + $0x17a0] ss:$12 sps:$4 sm:$0xff]  }
 0x22b   : > { %6831 = vmatprep.subr.bf16.mxu1 %v9857_v26  ;;  %v9896_v8 = vld [vmem:[%s10621_s28 + $0x160c] ss:$12 sps:$4 sm:$0xff]  }
 0x22c   : > { %v9899_v26 = vld [vmem:[%s10621_s28 + $0x178c] ss:$12 sps:$4 sm:$0xff]  }
 0x22d   : > { %6791 = vmatpush1.bf16.msra.mxu0 %v9852_v31  ;;  %v9894_v31 = vld [vmem:[%s10621_s28 + $0x1608] ss:$12 sps:$4 sm:$0xff]  }
 0x22e   : > { %6832 = vmatpush1.bf16.msra.mxu1 %v9855_v33  ;;  %6792 = vmatprep.subr.bf16.mxu0 %v9860_v35  ;;  %v9897_v33 = vld [vmem:[%s10621_s28 + $0x1788] ss:$12 sps:$4 sm:$0xff]  }
 0x22f   : > { %6833 = vmatprep.subr.bf16.mxu1 %v9863_v36  ;;  %v9902_v35 = vld [vmem:[%s10621_s28 + $0x15f4] ss:$12 sps:$4 sm:$0xff]  }
 0x230   : > { %v9905_v36 = vld [vmem:[%s10621_s28 + $0x1774] ss:$12 sps:$4 sm:$0xff]  }
 0x231   : > { %6793 = vmatpush1.bf16.msra.mxu0 %v9858_v42  ;;  %v9900_v42 = vld [vmem:[%s10621_s28 + $0x15f0] ss:$12 sps:$4 sm:$0xff]  }
 0x232   : > { %6834 = vmatpush1.bf16.msra.mxu1 %v9861_v45  ;;  %6794 = vmatprep.subr.bf16.mxu0 %v9866_v59  ;;  %v9903_v45 = vld [vmem:[%s10621_s28 + $0x1770] ss:$12 sps:$4 sm:$0xff]  }
 0x233   : > { %6835 = vmatprep.subr.bf16.mxu1 %v9869_v51  ;;  %v251_v59 = vld [vmem:[#allocation2 + $0x40] sm:$0xff] }
 0x234   : > { %v9908_v51 = vld [vmem:[%s10621_s28 + $0x15dc] ss:$12 sps:$4 sm:$0xff]  }
 0x235   : > { %6795 = vmatpush1.bf16.msra.mxu0 %v9864_v54  ;;  %v9911_v54 = vld [vmem:[%s10621_s28 + $0x175c] ss:$12 sps:$4 sm:$0xff]  }
 0x236   : > { %6836 = vmatpush1.bf16.msra.mxu1 %v9867_v55  ;;  %6796 = vmatprep.subr.bf16.mxu0 %v9872_v24  ;;  %v9906_v55 = vld [vmem:[%s10621_s28 + $0x15d8] ss:$12 sps:$4 sm:$0xff]   ;;  %v397_v24 = vcombine.high %v251_v59, %v251_v59 }
 0x237   : > { %6837 = vmatprep.subr.bf16.mxu1 %v9875_v25  ;;  %v9909_v25 = vld [vmem:[%s10621_s28 + $0x1758] ss:$12 sps:$4 sm:$0xff]  }
 0x239   : > { %6797 = vmatpush2.bf16.msra.mxu0 %v9870_v63  ;;  %v9914_v63 = vld [vmem:[%s10621_s28 + $0x15c4] ss:$12 sps:$4 sm:$0xff]  }
 0x23a   : > { %6838 = vmatpush2.bf16.msra.mxu1 %v9873_v5  ;;  %6798 = vmatprep.subr.bf16.mxu0 %v9878_v21  ;;  %v9917_v5 = vld [vmem:[%s10621_s28 + $0x1744] ss:$12 sps:$4 sm:$0xff]   ;;  %v9912_v21 = vld [vmem:[%s10621_s28 + $0x15c0] ss:$12 sps:$4 sm:$0xff]  }
 0x23b   : > { %6839 = vmatprep.subr.bf16.mxu1 %v9881_v7  ;;  %v11364_v7 = vrot.slane %v397_v24, %v10678_v49 }
 0x23d   : > { %6799 = vmatpush2.bf16.msra.mxu0 %v9876_v27  ;;  %v11367_v27 = vrot.slane %v251_v59, %v10678_v49 }
 0x23e   : > { %6840 = vmatpush2.bf16.msra.mxu1 %v9879_v11  ;;  %6800 = vmatprep.subr.bf16.mxu0 %v9884_v29  ;;  %v9915_v11 = vld [vmem:[%s10621_s28 + $0x1740] ss:$12 sps:$4 sm:$0xff]  }
 0x23f   : > { %6841 = vmatprep.subr.bf16.mxu1 %v9887_v30  ;;  %v9921_v29 = vld [vmem:[%s10621_s28 + $0x18ac] ss:$12 sps:$4 sm:$0xff]  }
 0x240   : > { %v9924_v30 = vld [vmem:[%s10621_s28 + $0x1a2c] ss:$12 sps:$4 sm:$0xff]  }
 0x241   : > { %6801 = vmatpush2.bf16.msra.mxu0 %v9882_v14  ;;  %v9919_v14 = vld [vmem:[%s10621_s28 + $0x18a8] ss:$12 sps:$4 sm:$0xff]  }
 0x242   : > { %6842 = vmatpush2.bf16.msra.mxu1 %v9885_v17  ;;  %6802 = vmatprep.subr.bf16.mxu0 %v9890_v19  ;;  %v9922_v17 = vld [vmem:[%s10621_s28 + $0x1a28] ss:$12 sps:$4 sm:$0xff]   ;;  %v413_v19 = vcombine.high %v11364_v7, %v11364_v7 }
 0x243   : > { %6843 = vmatprep.subr.bf16.mxu1 %v9893_v20  ;;  %v412_v20 = vcombine.high %v11367_v27, %v11367_v27 }
 0x245   : > { %6803 = vmatpush2.bf16.msra.mxu0 %v9888_v22  ;;  %v11380_v22 = vpack.c.bf16 %v11268_v44, %v11268_v44 }
 0x246   : > { %6844 = vmatpush2.bf16.msra.mxu1 %v9891_v23  ;;  %6804 = vmatprep.subr.bf16.mxu0 %v9896_v8  ;;  %v11384_v23 = vpack.c.bf16 %v11271_v15, %v11271_v15  ;;  %v9927_v8 = vld [vmem:[%s10621_s28 + $0x1894] ss:$12 sps:$4 sm:$0xff]  }
 0x247   : > { %6845 = vmatprep.subr.bf16.mxu1 %v9899_v26  ;;  %v9930_v26 = vld [vmem:[%s10621_s28 + $0x1a14] ss:$12 sps:$4 sm:$0xff]  }
 0x249   : > { %6805 = vmatpush2.bf16.msra.mxu0 %v9894_v31  ;;  %v9925_v31 = vld [vmem:[%s10621_s28 + $0x1890] ss:$12 sps:$4 sm:$0xff]  }
 0x24a   : > { %6846 = vmatpush2.bf16.msra.mxu1 %v9897_v33  ;;  %6806 = vmatprep.subr.bf16.mxu0 %v9902_v35  ;;  %v9928_v33 = vld [vmem:[%s10621_s28 + $0x1a10] ss:$12 sps:$4 sm:$0xff]   ;;  %v11390_v35 = vpack.c.bf16 %v413_v19, %v413_v19  ;;  %v9945_v19 = vld [vmem:[%s10621_s28 + $0x184c] ss:$12 sps:$4 sm:$0xff]  }
 0x24b   : > { %6847 = vmatprep.subr.bf16.mxu1 %v9905_v36  ;;  %v11392_v36 = vpack.c.bf16 %v412_v20, %v412_v20  ;;  %v9948_v20 = vld [vmem:[%s10621_s28 + $0x19cc] ss:$12 sps:$4 sm:$0xff]  }
 0x24d   : > { %6807 = vmatpush2.bf16.msra.mxu0 %v9900_v42 }
 0x24e   : > { %6848 = vmatpush2.bf16.msra.mxu1 %v9903_v45  ;;  %6808 = vmatprep.subr.bf16.mxu0 %v9908_v51  ;;  %v9933_v51 = vld [vmem:[%s10621_s28 + $0x187c] ss:$12 sps:$4 sm:$0xff]  }
 0x24f   : > { %6849 = vmatprep.subr.bf16.mxu1 %v9911_v54  ;;  %v9936_v54 = vld [vmem:[%s10621_s28 + $0x19fc] ss:$12 sps:$4 sm:$0xff]  }
 0x251   : > { %6809 = vmatpush2.bf16.msra.mxu0 %v9906_v55 }
 0x252   : > { %6850 = vmatpush2.bf16.msra.mxu1 %v9909_v25  ;;  %6810 = vmatprep.subr.bf16.mxu0 %v9914_v63  ;;  %v9931_v25 = vld [vmem:[%s10621_s28 + $0x1878] ss:$12 sps:$4 sm:$0xff]  }
 0x253   : > { %6851 = vmatprep.subr.bf16.mxu1 %v9917_v5  ;;  %v9934_v63 = vld [vmem:[%s10621_s28 + $0x19f8] ss:$12 sps:$4 sm:$0xff]  }
 0x255   : > { %6811 = vmatpush2.bf16.msra.mxu0 %v9912_v21 }
 0x256   : > { %6852 = vmatpush2.bf16.msra.mxu1 %v9915_v11  ;;  %6862 = vmatprep.subr.bf16.mxu0 %v9921_v29  ;;  %v9939_v11 = vld [vmem:[%s10621_s28 + $0x1864] ss:$12 sps:$4 sm:$0xff]  }
 0x257   : > { %6903 = vmatprep.subr.bf16.mxu1 %v9924_v30  ;;  %v9942_v29 = vld [vmem:[%s10621_s28 + $0x19e4] ss:$12 sps:$4 sm:$0xff]  }
 0x258   : > { %v6568_v44 = vpop.f32.mrf.mxu0  ;;  %6813 = vmatmul.mubr.bf16.vlgmr.msra.gmra.mxu0 %v11380_v22 }
 0x259   : > { %6854 = vmatmul.mubr.bf16.vlgmr.msra.gmra.mxu1 %v11384_v23  ;;  %v6609_v15 = vpop.f32.mrf.mxu1  ;;  %v6569_v42 = vadd.f32 %v6568_v44, %v11304_v61  ;;  %6863 = vmatpush1.bf16.msra.mxu0 %v9919_v14  ;;  %v9937_v14 = vld [vmem:[%s10621_s28 + $0x1860] ss:$12 sps:$4 sm:$0xff]   ;;  %v9949_v44 = vld [vmem:[%s10621_s28 + $0x1830] ss:$12 sps:$4 sm:$0xff]  }
 0x25a   : > { %6904 = vmatpush1.bf16.msra.mxu1 %v9922_v17  ;;  %v6570_v45 = vpop.f32.mrf.mxu0  ;;  %6864 = vmatprep.subr.bf16.mxu0 %v9927_v8  ;;  %v9940_v17 = vld [vmem:[%s10621_s28 + $0x19e0] ss:$12 sps:$4 sm:$0xff]   ;;  %v9943_v8 = vld [vmem:[%s10621_s28 + $0x1848] ss:$12 sps:$4 sm:$0xff]  }
 0x25b   : > { %v6611_v59 = vpop.f32.mrf.mxu1  ;;  %6905 = vmatprep.subr.bf16.mxu1 %v9930_v26  ;;  %v6571_v55 = vadd.f32 %v6570_v45, %v11310_v9  ;;  %v11400_v24 = vadd.f32 %v6609_v15, %v6569_v42  ;;  %8672 = vmatprep.mubr.msk.bf16.mxu1 %vm6202_vm0, %v11390_v35  ;;  %v9946_v26 = vld [vmem:[%s10621_s28 + $0x19c8] ss:$12 sps:$4 sm:$0xff]   ;;  %v9952_v15 = vld [vmem:[%s10621_s28 + $0x19b0] ss:$12 sps:$4 sm:$0xff]  }
 0x25c   : > { %6894 = vmatprep.mubr.bf16.mxu0 %v11392_v36  ;;  %v6572_v61 = vpop.f32.mrf.mxu0  ;;  %v9957_v42 = vld [vmem:[%s10621_s28 + $0x181c] ss:$12 sps:$4 sm:$0xff]  }
 0x25d   : > { %v6613_v5 = vpop.f32.mrf.mxu1  ;;  %v11407_v21 = vadd.f32 %v6611_v59, %v6571_v55  ;;  %6865 = vmatpush1.bf16.msra.mxu0 %v9925_v31  ;;  %v9951_v31 = vld [vmem:[%s10621_s28 + $0x1834] ss:$12 sps:$4 sm:$0xff]   ;;  %v9960_v45 = vld [vmem:[%s10621_s28 + $0x199c] ss:$12 sps:$4 sm:$0xff]   ;;  %v9955_v59 = vld [vmem:[%s10621_s28 + $0x1818] ss:$12 sps:$4 sm:$0xff]  }
 0x25e   : > { %6906 = vmatpush1.bf16.msra.mxu1 %v9928_v33  ;;  %v6573_v9 = vpop.f32.mrf.mxu0  ;;  %6866 = vmatprep.subr.bf16.mxu0 %v9933_v51  ;;  %v9954_v33 = vld [vmem:[%s10621_s28 + $0x19b4] ss:$12 sps:$4 sm:$0xff]   ;;  %v9958_v51 = vld [vmem:[%s10621_s28 + $0x1998] ss:$12 sps:$4 sm:$0xff]  }
 0x25f   : > { %6907 = vmatprep.subr.bf16.mxu1 %v9936_v54  ;;  %v6614_v30 = vpop.f32.mrf.mxu1  ;;  %v9963_v54 = vld [vmem:[%s10621_s28 + $0x1804] ss:$12 sps:$4 sm:$0xff]   ;;  %v9969_v61 = vld [vmem:[%s10621_s28 + $0x196c] ss:$12 sps:$4 sm:$0xff]   ;;  %v9967_v9 = vld [vmem:[%s10621_s28 + $0x1968] ss:$12 sps:$4 sm:$0xff]  }
 0x260   : > { %v9966_v55 = vld [vmem:[%s10621_s28 + $0x1984] ss:$12 sps:$4 sm:$0xff]   ;;  %v9978_v30 = vld [vmem:[%s10621_s28 + $0x1a8c] ss:$12 sps:$4 sm:$0xff]  }
 0x261   : > { %6867 = vmatpush1.bf16.msra.mxu0 %v9931_v25  ;;  %v9961_v25 = vld [vmem:[%s10621_s28 + $0x1800] ss:$12 sps:$4 sm:$0xff]   ;;  %v9972_v5 = vld [vmem:[%s10621_s28 + $0x1aa4] ss:$12 sps:$4 sm:$0xff]  }
 0x262   : > { %6908 = vmatpush1.bf16.msra.mxu1 %v9934_v63  ;;  %6868 = vmatprep.subr.bf16.mxu0 %v9939_v11  ;;  %v9964_v63 = vld [vmem:[%s10621_s28 + $0x1980] ss:$12 sps:$4 sm:$0xff]  }
 0x263   : > { %6909 = vmatprep.subr.bf16.mxu1 %v9942_v29  ;;  %v9970_v11 = vld [vmem:[%s10621_s28 + $0x1aa0] ss:$12 sps:$4 sm:$0xff]  }
 0x264   : > { %v9975_v29 = vld [vmem:[%s10621_s28 + $0x1954] ss:$12 sps:$4 sm:$0xff]  }
 0x265   : > { %6869 = vmatpush1.bf16.msra.mxu0 %v9937_v14  ;;  %v9973_v14 = vld [vmem:[%s10621_s28 + $0x1950] ss:$12 sps:$4 sm:$0xff]  }
 0x266   : > { %6910 = vmatpush1.bf16.msra.mxu1 %v9940_v17  ;;  %6870 = vmatprep.subr.bf16.mxu0 %v9945_v19  ;;  %v9976_v17 = vld [vmem:[%s10621_s28 + $0x1a88] ss:$12 sps:$4 sm:$0xff]  }
 0x267   : > { %6911 = vmatprep.subr.bf16.mxu1 %v9948_v20  ;;  %v9981_v19 = vld [vmem:[%s10621_s28 + $0x193c] ss:$12 sps:$4 sm:$0xff]   ;;  %v9984_v20 = vld [vmem:[%s10621_s28 + $0x1a74] ss:$12 sps:$4 sm:$0xff]  }
 0x269   : > { %6871 = vmatpush1.bf16.msra.mxu0 %v9943_v8  ;;  %v9979_v8 = vld [vmem:[%s10621_s28 + $0x1938] ss:$12 sps:$4 sm:$0xff]  }
 0x26a   : > { %6912 = vmatpush1.bf16.msra.mxu1 %v9946_v26  ;;  %6872 = vmatprep.subr.bf16.mxu0 %v9951_v31  ;;  %v9982_v26 = vld [vmem:[%s10621_s28 + $0x1a70] ss:$12 sps:$4 sm:$0xff]  }
 0x26b   : > { %6913 = vmatprep.subr.bf16.mxu1 %v9954_v33  ;;  %v9987_v31 = vld [vmem:[%s10621_s28 + $0x1924] ss:$12 sps:$4 sm:$0xff]   ;;  %v9990_v33 = vld [vmem:[%s10621_s28 + $0x1a5c] ss:$12 sps:$4 sm:$0xff]  }
 0x26d   : > { %6873 = vmatpush1.bf16.msra.mxu0 %v9949_v44  ;;  %v9985_v44 = vld [vmem:[%s10621_s28 + $0x1920] ss:$12 sps:$4 sm:$0xff]  }
 0x26e   : > { %6914 = vmatpush1.bf16.msra.mxu1 %v9952_v15  ;;  %6874 = vmatprep.subr.bf16.mxu0 %v9957_v42  ;;  %v9988_v15 = vld [vmem:[%s10621_s28 + $0x1a58] ss:$12 sps:$4 sm:$0xff]  }
 0x26f   : > { %6915 = vmatprep.subr.bf16.mxu1 %v9960_v45  ;;  %v9993_v42 = vld [vmem:[%s10621_s28 + $0x190c] ss:$12 sps:$4 sm:$0xff]   ;;  %v9996_v45 = vld [vmem:[%s10621_s28 + $0x1a44] ss:$12 sps:$4 sm:$0xff]  }
 0x271   : > { %6875 = vmatpush1.bf16.msra.mxu0 %v9955_v59  ;;  %v9991_v59 = vld [vmem:[%s10621_s28 + $0x1908] ss:$12 sps:$4 sm:$0xff]  }
 0x272   : > { %6916 = vmatpush1.bf16.msra.mxu1 %v9958_v51  ;;  %6876 = vmatprep.subr.bf16.mxu0 %v9963_v54  ;;  %v9994_v51 = vld [vmem:[%s10621_s28 + $0x1a40] ss:$12 sps:$4 sm:$0xff]  }
 0x273   : > { %6917 = vmatprep.subr.bf16.mxu1 %v9966_v55  ;;  %v9999_v54 = vld [vmem:[%s10621_s28 + $0x18f4] ss:$12 sps:$4 sm:$0xff]   ;;  %v10001_v55 = vld [vmem:[%s10621_s28 + $0x170] ss:$12 sps:$4 sm:$0xff]  }
 0x275   : > { %6877 = vmatpush1.bf16.msra.mxu0 %v9961_v25  ;;  %v9997_v25 = vld [vmem:[%s10621_s28 + $0x18f0] ss:$12 sps:$4 sm:$0xff]  }
 0x276   : > { %6918 = vmatpush1.bf16.msra.mxu1 %v9964_v63  ;;  %6878 = vmatprep.subr.bf16.mxu0 %v9969_v61  ;;  %v10002_v63 = vld [vmem:[%s10621_s28 + $0xb0] ss:$12 sps:$4 sm:$0xff]   ;;  %v11455_v61 = vpack.c.bf16 %v11364_v7, %v11364_v7 }
 0x277   : > { %6925 = vmatprep.subr.bf16.mxu1 %v9972_v5  ;;  %v10005_v5 = vld [vmem:[%s10621_s28 + $0x18dc] ss:$12 sps:$4 sm:$0xff]   ;;  %v10010_v7 = vld [vmem:[%s10621_s28 + $0x18c4] ss:$12 sps:$4 sm:$0xff]  }
 0x279   : > { %6879 = vmatpush2.bf16.msra.mxu0 %v9967_v9  ;;  %v10006_v9 = vld [vmem:[%s10621_s28 + $0x158] ss:$12 sps:$4 sm:$0xff]  }
 0x27a   : > { %6926 = vmatpush2.bf16.msra.mxu1 %v9970_v11  ;;  %6880 = vmatprep.subr.bf16.mxu0 %v9975_v29  ;;  %v10003_v11 = vld [vmem:[%s10621_s28 + $0x18d8] ss:$12 sps:$4 sm:$0xff]  }
 0x27b   : > { %6927 = vmatprep.subr.bf16.mxu1 %v9978_v30  ;;  %v10007_v29 = vld [vmem:[%s10621_s28 + $0x98] ss:$12 sps:$4 sm:$0xff]   ;;  %v10011_v30 = vld [vmem:[%s10621_s28 + $0x140] ss:$12 sps:$4 sm:$0xff]  }
 0x27d   : > { %6881 = vmatpush2.bf16.msra.mxu0 %v9973_v14  ;;  %v10008_v14 = vld [vmem:[%s10621_s28 + $0x18c0] ss:$12 sps:$4 sm:$0xff]  }
 0x27e   : > { %6928 = vmatpush2.bf16.msra.mxu1 %v9976_v17  ;;  %6882 = vmatprep.subr.bf16.mxu0 %v9981_v19  ;;  %v10012_v17 = vld [vmem:[%s10621_s28 + $0x80] ss:$12 sps:$4 sm:$0xff]   ;;  %v10013_v19 = vld [vmem:[%s10621_s28 + $0x128] ss:$12 sps:$4 sm:$0xff]  }
 0x27f   : > { %6929 = vmatprep.subr.bf16.mxu1 %v9984_v20  ;;  %v10014_v20 = vld [vmem:[%s10621_s28 + $0x2f0] ss:$12 sps:$4 sm:$0xff]  }
 0x281   : > { %6883 = vmatpush2.bf16.msra.mxu0 %v9979_v8  ;;  %v10015_v8 = vld [vmem:[%s10621_s28 + $0x68] ss:$12 sps:$4 sm:$0xff]  }
 0x282   : > { %6930 = vmatpush2.bf16.msra.mxu1 %v9982_v26  ;;  %6884 = vmatprep.subr.bf16.mxu0 %v9987_v31  ;;  %v10016_v26 = vld [vmem:[%s10621_s28 + $0x230] ss:$12 sps:$4 sm:$0xff]   ;;  %v11473_v31 = vpack.c.bf16 %v11367_v27, %v11367_v27 }
 0x283   : > { %6931 = vmatprep.subr.bf16.mxu1 %v9990_v33  ;;  %v10018_v33 = vld [vmem:[%s10621_s28 + $0x2d8] ss:$12 sps:$4 sm:$0xff]  }
 0x285   : > { %6885 = vmatpush2.bf16.msra.mxu0 %v9985_v44  ;;  %v10019_v44 = vld [vmem:[%s10621_s28 + $0x50] ss:$12 sps:$4 sm:$0xff]  }
 0x286   : > { %6932 = vmatpush2.bf16.msra.mxu1 %v9988_v15  ;;  %6886 = vmatprep.subr.bf16.mxu0 %v9993_v42  ;;  %v10020_v15 = vld [vmem:[%s10621_s28 + $0x218] ss:$12 sps:$4 sm:$0xff]  }
 0x287   : > { %6933 = vmatprep.subr.bf16.mxu1 %v9996_v45 }
 0x289   : > { %6887 = vmatpush2.bf16.msra.mxu0 %v9991_v59 }
 0x28a   : > { %6934 = vmatpush2.bf16.msra.mxu1 %v9994_v51  ;;  %6888 = vmatprep.subr.bf16.mxu0 %v9999_v54  ;;  %v10021_v54 = vld [vmem:[%s10621_s28 + $0xf8] ss:$12 sps:$4 sm:$0xff]  }
 0x28b   : > { %8678 = vmatprep.subr.bf16.mxu1 %v10001_v55  ;;  %v10022_v55 = vld [vmem:[%s10621_s28 + $0x2c0] ss:$12 sps:$4 sm:$0xff]  }
 0x28d   : > { %6936 = vmatmul.mubr.bf16.vlgmr.msra.gmra.mxu1 %v11455_v61  ;;  %6889 = vmatpush2.bf16.msra.mxu0 %v9997_v25 }
 0x28e   : > { %8679 = vmatpush3.bf16.msra.mxu1 %v10002_v63  ;;  %6890 = vmatprep.subr.bf16.mxu0 %v10005_v5  ;;  %v10023_v5 = vld [vmem:[%s10621_s28 + $0x38] ss:$12 sps:$4 sm:$0xff]  }
 0x28f   : > { %8680 = vmatprep.subr.bf16.mxu1 %v10006_v9  ;;  %6976 = vmatprep.mubr.bf16.mxu1 %v10689_v62  ;;  %v10017_v62 = vld [vmem:[%s10621_s28 + $0x110] ss:$12 sps:$4 sm:$0xff]   ;;  %v10024_v9 = vld [vmem:[%s10621_s28 + $0x200] ss:$12 sps:$4 sm:$0xff]  }
 0x291   : > { %6891 = vmatpush2.bf16.msra.mxu0 %v10003_v11 }
 0x292   : > { %8681 = vmatpush3.bf16.msra.mxu1 %v10007_v29  ;;  %6892 = vmatprep.subr.bf16.mxu0 %v10010_v7 }
 0x293   : > { %8682 = vmatprep.subr.bf16.mxu1 %v10011_v30  ;;  %v10026_v30 = vld [vmem:[%s10621_s28 + $0x2a8] ss:$12 sps:$4 sm:$0xff]  }
 0x295   : > { %6893 = vmatpush2.bf16.msra.mxu0 %v10008_v14 }
 0x296   : > { %8683 = vmatpush3.bf16.msra.mxu1 %v10012_v17  ;;  %8700 = vmatprep.subr.bf16.mxu0 %v10014_v20  ;;  %v10027_v17 = vld [vmem:[%s10621_s28 + $0x20] ss:$12 sps:$4 sm:$0xff]   ;;  %v10030_v20 = vld [vmem:[%s10621_s28 + $0x290] ss:$12 sps:$4 sm:$0xff]  }
 0x297   : > { %8684 = vmatprep.subr.bf16.mxu1 %v10013_v19  ;;  %v10029_v19 = vld [vmem:[%s10621_s28 + $0xc8] ss:$12 sps:$4 sm:$0xff]  }
 0x298   : > { %v6650_v42 = vpop.f32.mrf.mxu0  ;;  %6895 = vmatmul.mubr.bf16.vlgmr.msra.gmra.mxu0 %v11473_v31 }
 0x299   : > { %v6691_v45 = vpop.f32.mrf.mxu1  ;;  %v6651_v59 = vadd.f32 %v6650_v42, %v11400_v24  ;;  %8701 = vmatpush3.bf16.msra.mxu0 %v10016_v26  ;;  %7016 = vmatprep.mubr.bf16.mxu0 %v10694_v3  ;;  %v10028_v3 = vld [vmem:[%s10621_s28 + $0x1e8] ss:$12 sps:$4 sm:$0xff]   ;;  %v10032_v26 = vld [vmem:[%s10621_s28 + $0x1d0] ss:$12 sps:$4 sm:$0xff]   ;;  %v10037_v42 = vld [vmem:[%s10621_s28 + $0x260] ss:$12 sps:$4 sm:$0xff]  }
 0x29a   : > { %8685 = vmatpush3.bf16.msra.mxu1 %v10015_v8  ;;  %v6652_v27 = vpop.f32.mrf.mxu0  ;;  %8702 = vmatprep.subr.bf16.mxu0 %v10018_v33  ;;  %v10031_v8 = vld [vmem:[%s10621_s28 + $0x8] ss:$12 sps:$4 sm:$0xff]   ;;  %v10034_v33 = vld [vmem:[%s10621_s28 + $0x470] ss:$12 sps:$4 sm:$0xff]  }
 0x29b   : > { %v6693_v51 = vpop.f32.mrf.mxu1  ;;  %8686 = vmatprep.subr.bf16.mxu1 %v10017_v62  ;;  %v6653_v25 = vadd.f32 %v6652_v27, %v11407_v21  ;;  %v11484_v63 = vadd.f32 %v6691_v45, %v6651_v59  ;;  %v10025_v21 = vld [vmem:[%s10621_s28 + $0xe0] ss:$12 sps:$4 sm:$0xff]   ;;  %v10033_v62 = vld [vmem:[%s10621_s28 + $0x278] ss:$12 sps:$4 sm:$0xff]  }
 0x29c   : > { %v6654_v24 = vpop.f32.mrf.mxu0  ;;  %v10038_v45 = vld [vmem:[%s10621_s28 + $0x458] ss:$12 sps:$4 sm:$0xff]   ;;  %v10039_v59 = vld [vmem:[%s10621_s28 + $0x1a0] ss:$12 sps:$4 sm:$0xff]  }
 0x29d   : > { %v6695_v11 = vpop.f32.mrf.mxu1  ;;  %v11489_v29 = vadd.f32 %v6693_v51, %v6653_v25  ;;  %8703 = vmatpush3.bf16.msra.mxu0 %v10020_v15  ;;  %v10036_v15 = vld [vmem:[%s10621_s28 + $0x3b0] ss:$12 sps:$4 sm:$0xff]   ;;  %v10040_v27 = vld [vmem:[%s10621_s28 + $0x398] ss:$12 sps:$4 sm:$0xff]   ;;  %v10041_v51 = vld [vmem:[%s10621_s28 + $0x248] ss:$12 sps:$4 sm:$0xff]  }
 0x29e   : > { %8687 = vmatpush3.bf16.msra.mxu1 %v10019_v44  ;;  %v6655_v7 = vpop.f32.mrf.mxu0  ;;  %8704 = vmatprep.subr.bf16.mxu0 %v10022_v55  ;;  %v10035_v44 = vld [vmem:[%s10621_s28 + $0x1b8] ss:$12 sps:$4 sm:$0xff]   ;;  %v10043_v55 = vld [vmem:[%s10621_s28 + $0x188] ss:$12 sps:$4 sm:$0xff]   ;;  %v10044_v25 = vld [vmem:[%s10621_s28 + $0x380] ss:$12 sps:$4 sm:$0xff]  }
 0x29f   : > { %8688 = vmatprep.subr.bf16.mxu1 %v10021_v54  ;;  %v6696_v14 = vpop.f32.mrf.mxu1  ;;  %v10042_v54 = vld [vmem:[%s10621_s28 + $0x440] ss:$12 sps:$4 sm:$0xff]   ;;  %v10048_v24 = vld [vmem:[%s10621_s28 + $0x530] ss:$12 sps:$4 sm:$0xff]   ;;  %v10050_v11 = vld [vmem:[%s10621_s28 + $0x5d8] ss:$12 sps:$4 sm:$0xff]  }
 0x2a0   : > { %v10051_v7 = vld [vmem:[%s10621_s28 + $0x350] ss:$12 sps:$4 sm:$0xff]   ;;  %v10054_v14 = vld [vmem:[%s10621_s28 + $0x5c0] ss:$12 sps:$4 sm:$0xff]  }
 0x2a1   : > { %8705 = vmatpush3.bf16.msra.mxu0 %v10024_v9  ;;  %v10047_v9 = vld [vmem:[%s10621_s28 + $0x368] ss:$12 sps:$4 sm:$0xff]  }
 0x2a2   : > { %8689 = vmatpush3.bf16.msra.mxu1 %v10023_v5  ;;  %8706 = vmatprep.subr.bf16.mxu0 %v10026_v30  ;;  %v10046_v5 = vld [vmem:[%s10621_s28 + $0x5f0] ss:$12 sps:$4 sm:$0xff]   ;;  %v10053_v30 = vld [vmem:[%s10621_s28 + $0x3f8] ss:$12 sps:$4 sm:$0xff]  }
 0x2a3   : > { %8690 = vmatprep.subr.bf16.mxu1 %v10025_v21  ;;  %v10052_v21 = vld [vmem:[%s10621_s28 + $0x518] ss:$12 sps:$4 sm:$0xff]  }
 0x2a5   : > { %8707 = vmatpush3.bf16.msra.mxu0 %v10028_v3  ;;  %v10056_v3 = vld [vmem:[%s10621_s28 + $0x500] ss:$12 sps:$4 sm:$0xff]  }
 0x2a6   : > { %8691 = vmatpush3.bf16.msra.mxu1 %v10027_v17  ;;  %8708 = vmatprep.subr.bf16.mxu0 %v10030_v20  ;;  %v10055_v17 = vld [vmem:[%s10621_s28 + $0x338] ss:$12 sps:$4 sm:$0xff]   ;;  %v10059_v20 = vld [vmem:[%s10621_s28 + $0x320] ss:$12 sps:$4 sm:$0xff]  }
 0x2a7   : > { %8692 = vmatprep.subr.bf16.mxu1 %v10029_v19  ;;  %v10058_v19 = vld [vmem:[%s10621_s28 + $0x5a8] ss:$12 sps:$4 sm:$0xff]  }
 0x2a9   : > { %8709 = vmatpush3.bf16.msra.mxu0 %v10032_v26  ;;  %v10062_v26 = vld [vmem:[%s10621_s28 + $0x590] ss:$12 sps:$4 sm:$0xff]  }
 0x2aa   : > { %8693 = vmatpush3.bf16.msra.mxu1 %v10031_v8  ;;  %8710 = vmatprep.subr.bf16.mxu0 %v10033_v62  ;;  %v10060_v8 = vld [vmem:[%s10621_s28 + $0x4e8] ss:$12 sps:$4 sm:$0xff]  }
 0x2ab   : > { %8722 = vmatprep.subr.bf16.mxu1 %v10034_v33  ;;  %v10063_v62 = vld [vmem:[%s10621_s28 + $0x308] ss:$12 sps:$4 sm:$0xff]   ;;  %v10064_v33 = vld [vmem:[%s10621_s28 + $0x4d0] ss:$12 sps:$4 sm:$0xff]  }
 0x2ad   : > { %6977 = vmatmul.mubr.bf16.vlgmr.msra.gmra.mxu1 %v10710_v16  ;;  %8711 = vmatpush3.bf16.msra.mxu0 %v10035_v44  ;;  %v10045_v16 = vld [vmem:[%s10621_s28 + $0x428] ss:$12 sps:$4 sm:$0xff]   ;;  %v10065_v44 = vld [vmem:[%s10621_s28 + $0x578] ss:$12 sps:$4 sm:$0xff]  }
 0x2ae   : > { %8723 = vmatpush3.bf16.msra.mxu1 %v10036_v15  ;;  %8712 = vmatprep.subr.bf16.mxu0 %v10037_v42  ;;  %v10066_v15 = vld [vmem:[%s10621_s28 + $0x770] ss:$12 sps:$4 sm:$0xff]   ;;  %v10067_v42 = vld [vmem:[%s10621_s28 + $0x4b8] ss:$12 sps:$4 sm:$0xff]  }
 0x2af   : > { %8724 = vmatprep.subr.bf16.mxu1 %v10038_v45  ;;  %7056 = vmatprep.mubr.bf16.mxu1 %v10752_v53  ;;  %v10049_v53 = vld [vmem:[%s10621_s28 + $0x410] ss:$12 sps:$4 sm:$0xff]  }
 0x2b0   : > { %v10068_v45 = vld [vmem:[%s10621_s28 + $0x6b0] ss:$12 sps:$4 sm:$0xff]  }
 0x2b1   : > { %8713 = vmatpush3.bf16.msra.mxu0 %v10039_v59  ;;  %v10069_v59 = vld [vmem:[%s10621_s28 + $0x560] ss:$12 sps:$4 sm:$0xff]  }
 0x2b2   : > { %8725 = vmatpush3.bf16.msra.mxu1 %v10040_v27  ;;  %8714 = vmatprep.subr.bf16.mxu0 %v10041_v51  ;;  %v10070_v27 = vld [vmem:[%s10621_s28 + $0x758] ss:$12 sps:$4 sm:$0xff]   ;;  %v10071_v51 = vld [vmem:[%s10621_s28 + $0x4a0] ss:$12 sps:$4 sm:$0xff]  }
 0x2b3   : > { %8726 = vmatprep.subr.bf16.mxu1 %v10042_v54  ;;  %v10072_v54 = vld [vmem:[%s10621_s28 + $0x698] ss:$12 sps:$4 sm:$0xff]  }
 0x2b5   : > { %8715 = vmatpush3.bf16.msra.mxu0 %v10043_v55  ;;  %v10073_v55 = vld [vmem:[%s10621_s28 + $0x548] ss:$12 sps:$4 sm:$0xff]  }
 0x2b6   : > { %8727 = vmatpush3.bf16.msra.mxu1 %v10044_v25  ;;  %8744 = vmatprep.subr.bf16.mxu0 %v10046_v5  ;;  %v10074_v25 = vld [vmem:[%s10621_s28 + $0x740] ss:$12 sps:$4 sm:$0xff]  }
 0x2b7   : > { %8728 = vmatprep.subr.bf16.mxu1 %v10045_v16  ;;  %v10075_v16 = vld [vmem:[%s10621_s28 + $0x488] ss:$12 sps:$4 sm:$0xff]   ;;  %v10076_v5 = vld [vmem:[%s10621_s28 + $0x680] ss:$12 sps:$4 sm:$0xff]  }
 0x2b8   : > { %7017 = vmatmul.mubr.bf16.vlgmr.msra.gmra.mxu0 %v10713_v18  ;;  %v10057_v18 = vld [vmem:[%s10621_s28 + $0x3e0] ss:$12 sps:$4 sm:$0xff]  }
 0x2b9   : > { %8745 = vmatpush3.bf16.msra.mxu0 %v10048_v24  ;;  %7096 = vmatprep.mubr.bf16.mxu0 %v10758_v57  ;;  %v10061_v57 = vld [vmem:[%s10621_s28 + $0x3c8] ss:$12 sps:$4 sm:$0xff]  }
 0x2ba   : > { %8729 = vmatpush3.bf16.msra.mxu1 %v10047_v9  ;;  %8746 = vmatprep.subr.bf16.mxu0 %v10050_v11  ;;  %v10078_v9 = vld [vmem:[%s10621_s28 + $0x8f0] ss:$12 sps:$4 sm:$0xff]   ;;  %v10079_v24 = vld [vmem:[%s10621_s28 + $0x668] ss:$12 sps:$4 sm:$0xff]  }
 0x2bb   : > { %8730 = vmatprep.subr.bf16.mxu1 %v10049_v53  ;;  %v10080_v53 = vld [vmem:[%s10621_s28 + $0x830] ss:$12 sps:$4 sm:$0xff]  }
 0x2bc   : > { %v10081_v11 = vld [vmem:[%s10621_s28 + $0x710] ss:$12 sps:$4 sm:$0xff]  }
 0x2bd   : > { %8747 = vmatpush3.bf16.msra.mxu0 %v10052_v21 }
 0x2be   : > { %8731 = vmatpush3.bf16.msra.mxu1 %v10051_v7  ;;  %8748 = vmatprep.subr.bf16.mxu0 %v10054_v14  ;;  %v10082_v7 = vld [vmem:[%s10621_s28 + $0x8d8] ss:$12 sps:$4 sm:$0xff]   ;;  %v10083_v14 = vld [vmem:[%s10621_s28 + $0x650] ss:$12 sps:$4 sm:$0xff]  }
 0x2bf   : > { %8732 = vmatprep.subr.bf16.mxu1 %v10053_v30 }
 0x2c1   : > { %8749 = vmatpush3.bf16.msra.mxu0 %v10056_v3 }
 0x2c2   : > { %8733 = vmatpush3.bf16.msra.mxu1 %v10055_v17  ;;  %8750 = vmatprep.subr.bf16.mxu0 %v10058_v19  ;;  %v10084_v17 = vld [vmem:[%s10621_s28 + $0x818] ss:$12 sps:$4 sm:$0xff]  }
 0x2c3   : > { %8734 = vmatprep.subr.bf16.mxu1 %v10057_v18  ;;  %v10085_v19 = vld [vmem:[%s10621_s28 + $0x6f8] ss:$12 sps:$4 sm:$0xff]  }
 0x2c5   : > { %8751 = vmatpush3.bf16.msra.mxu0 %v10060_v8 }
 0x2c6   : > { %8735 = vmatpush3.bf16.msra.mxu1 %v10059_v20  ;;  %8752 = vmatprep.subr.bf16.mxu0 %v10062_v26  ;;  %v10086_v20 = vld [vmem:[%s10621_s28 + $0x8c0] ss:$12 sps:$4 sm:$0xff]  }
 0x2c7   : > { %8736 = vmatprep.subr.bf16.mxu1 %v10061_v57 }
 0x2c9   : > { %8753 = vmatpush3.bf16.msra.mxu0 %v10064_v33  ;;  %v10088_v33 = vld [vmem:[%s10621_s28 + $0x800] ss:$12 sps:$4 sm:$0xff]  }
 0x2ca   : > { %8737 = vmatpush3.bf16.msra.mxu1 %v10063_v62  ;;  %8754 = vmatprep.subr.bf16.mxu0 %v10065_v44  ;;  %v10087_v62 = vld [vmem:[%s10621_s28 + $0x638] ss:$12 sps:$4 sm:$0xff]  }
 0x2cb   : > { %8766 = vmatprep.subr.bf16.mxu1 %v10066_v15  ;;  %v10090_v15 = vld [vmem:[%s10621_s28 + $0x8a8] ss:$12 sps:$4 sm:$0xff]  }
 0x2cd   : > { %7057 = vmatmul.mubr.bf16.vlgmr.msra.gmra.mxu1 %v10798_v32  ;;  %8755 = vmatpush3.bf16.msra.mxu0 %v10067_v42  ;;  %v10077_v32 = vld [vmem:[%s10621_s28 + $0x728] ss:$12 sps:$4 sm:$0xff]   ;;  %v10091_v42 = vld [vmem:[%s10621_s28 + $0x620] ss:$12 sps:$4 sm:$0xff]  }
 0x2ce   : > { %8767 = vmatpush3.bf16.msra.mxu1 %v10068_v45  ;;  %8756 = vmatprep.subr.bf16.mxu0 %v10069_v59  ;;  %v10092_v45 = vld [vmem:[%s10621_s28 + $0x7e8] ss:$12 sps:$4 sm:$0xff]  }
 0x2cf   : > { %8768 = vmatprep.subr.bf16.mxu1 %v10070_v27  ;;  %7136 = vmatprep.mubr.bf16.mxu1 %v10822_v48  ;;  %v10093_v59 = vld [vmem:[%s10621_s28 + $0x6c8] ss:$12 sps:$4 sm:$0xff]   ;;  %v10094_v27 = vld [vmem:[%s10621_s28 + $0x890] ss:$12 sps:$4 sm:$0xff]  }
 0x2d1   : > { %8757 = vmatpush3.bf16.msra.mxu0 %v10071_v51  ;;  %v10095_v51 = vld [vmem:[%s10621_s28 + $0x608] ss:$12 sps:$4 sm:$0xff]  }
 0x2d2   : > { %8769 = vmatpush3.bf16.msra.mxu1 %v10072_v54  ;;  %8758 = vmatprep.subr.bf16.mxu0 %v10073_v55  ;;  %v10096_v54 = vld [vmem:[%s10621_s28 + $0x7d0] ss:$12 sps:$4 sm:$0xff]   ;;  %v10097_v55 = vld [vmem:[%s10621_s28 + $0x878] ss:$12 sps:$4 sm:$0xff]  }
 0x2d3   : > { %8770 = vmatprep.subr.bf16.mxu1 %v10074_v25  ;;  %v10098_v25 = vld [vmem:[%s10621_s28 + $0xa70] ss:$12 sps:$4 sm:$0xff]  }
 0x2d5   : > { %8759 = vmatpush3.bf16.msra.mxu0 %v10075_v16  ;;  %v10099_v16 = vld [vmem:[%s10621_s28 + $0x7b8] ss:$12 sps:$4 sm:$0xff]  }
 0x2d6   : > { %8771 = vmatpush3.bf16.msra.mxu1 %v10076_v5  ;;  %8788 = vmatprep.subr.bf16.mxu0 %v10078_v9  ;;  %v10100_v5 = vld [vmem:[%s10621_s28 + $0x9b0] ss:$12 sps:$4 sm:$0xff]   ;;  %v10102_v9 = vld [vmem:[%s10621_s28 + $0xa58] ss:$12 sps:$4 sm:$0xff]  }
 0x2d7   : > { %8772 = vmatprep.subr.bf16.mxu1 %v10077_v32  ;;  %v10101_v32 = vld [vmem:[%s10621_s28 + $0x860] ss:$12 sps:$4 sm:$0xff]  }
 0x2d8   : > { %v6732_v48 = vpop.f32.mrf.mxu0  ;;  %7097 = vmatmul.mubr.bf16.vlgmr.msra.gmra.mxu0 %v10803_v34 }
 0x2d9   : > { %v6773_v21 = vpop.f32.mrf.mxu1  ;;  %v6733_v30 = vadd.f32 %v6732_v48, %v11484_v63  ;;  %8789 = vmatpush3.bf16.msra.mxu0 %v10080_v53  ;;  %7176 = vmatprep.mubr.bf16.mxu0 %v10828_v52  ;;  %v10104_v53 = vld [vmem:[%s10621_s28 + $0x998] ss:$12 sps:$4 sm:$0xff]   ;;  %v10107_v48 = vld [vmem:[%s10621_s28 + $0x788] ss:$12 sps:$4 sm:$0xff]  }
 0x2da   : > { %8773 = vmatpush3.bf16.msra.mxu1 %v10079_v24  ;;  %v6734_v3 = vpop.f32.mrf.mxu0  ;;  %8790 = vmatprep.subr.bf16.mxu0 %v10082_v7  ;;  %v10103_v24 = vld [vmem:[%s10621_s28 + $0x7a0] ss:$12 sps:$4 sm:$0xff]  }
 0x2db   : > { %v6775_v18 = vpop.f32.mrf.mxu1  ;;  %8774 = vmatprep.subr.bf16.mxu1 %v10081_v11  ;;  %v6735_v8 = vadd.f32 %v6734_v3, %v11489_v29  ;;  %v11562_v34 = vadd.f32 %v6773_v21, %v6733_v30  ;;  %v10089_v29 = vld [vmem:[%s10621_s28 + $0x6e0] ss:$12 sps:$4 sm:$0xff]   ;;  %v10105_v11 = vld [vmem:[%s10621_s28 + $0x848] ss:$12 sps:$4 sm:$0xff]   ;;  %v10110_v30 = vld [vmem:[%s10621_s28 + $0xbf0] ss:$12 sps:$4 sm:$0xff]  }
 0x2dc   : > { %v6736_v63 = vpop.f32.mrf.mxu0  ;;  %v10106_v7 = vld [vmem:[%s10621_s28 + $0xa40] ss:$12 sps:$4 sm:$0xff]   ;;  %v10109_v21 = vld [vmem:[%s10621_s28 + $0xa28] ss:$12 sps:$4 sm:$0xff]   ;;  %v10114_v3 = vld [vmem:[%s10621_s28 + $0xbd8] ss:$12 sps:$4 sm:$0xff]  }
 0x2dd   : > { %v6777_v57 = vpop.f32.mrf.mxu1  ;;  %v11565_v26 = vadd.f32 %v6775_v18, %v6735_v8  ;;  %8791 = vmatpush3.bf16.msra.mxu0 %v10084_v17  ;;  %v10112_v17 = vld [vmem:[%s10621_s28 + $0xb30] ss:$12 sps:$4 sm:$0xff]   ;;  %v10118_v8 = vld [vmem:[%s10621_s28 + $0xbc0] ss:$12 sps:$4 sm:$0xff]   ;;  %v10119_v63 = vld [vmem:[%s10621_s28 + $0x938] ss:$12 sps:$4 sm:$0xff]  }
 0x2de   : > { %8775 = vmatpush3.bf16.msra.mxu1 %v10083_v14  ;;  %v6737_v44 = vpop.f32.mrf.mxu0  ;;  %8792 = vmatprep.subr.bf16.mxu0 %v10086_v20  ;;  %v10111_v14 = vld [vmem:[%s10621_s28 + $0x968] ss:$12 sps:$4 sm:$0xff]   ;;  %v10115_v18 = vld [vmem:[%s10621_s28 + $0x950] ss:$12 sps:$4 sm:$0xff]   ;;  %v10117_v20 = vld [vmem:[%s10621_s28 + $0x9f8] ss:$12 sps:$4 sm:$0xff]  }
 0x2df   : > { %8776 = vmatprep.subr.bf16.mxu1 %v10085_v19  ;;  %v6778_v52 = vpop.f32.mrf.mxu1  ;;  %v10116_v19 = vld [vmem:[%s10621_s28 + $0xb18] ss:$12 sps:$4 sm:$0xff]   ;;  %v10121_v57 = vld [vmem:[%s10621_s28 + $0x9e0] ss:$12 sps:$4 sm:$0xff]   ;;  %v10124_v44 = vld [vmem:[%s10621_s28 + $0xae8] ss:$12 sps:$4 sm:$0xff]  }
 0x2e0   : > { %v10128_v52 = vld [vmem:[%s10621_s28 + $0xad0] ss:$12 sps:$4 sm:$0xff]  }
 0x2e1   : > { %8793 = vmatpush3.bf16.msra.mxu0 %v10088_v33  ;;  %v10123_v33 = vld [vmem:[%s10621_s28 + $0x920] ss:$12 sps:$4 sm:$0xff]  }
 0x2e2   : > { %8777 = vmatpush3.bf16.msra.mxu1 %v10087_v62  ;;  %8794 = vmatprep.subr.bf16.mxu0 %v10090_v15  ;;  %v10122_v62 = vld [vmem:[%s10621_s28 + $0xba8] ss:$12 sps:$4 sm:$0xff]  }
 0x2e3   : > { %8778 = vmatprep.subr.bf16.mxu1 %v10089_v29  ;;  %v10126_v29 = vld [vmem:[%s10621_s28 + $0xb90] ss:$12 sps:$4 sm:$0xff]   ;;  %v10127_v15 = vld [vmem:[%s10621_s28 + $0x908] ss:$12 sps:$4 sm:$0xff]  }
 0x2e5   : > { %8795 = vmatpush3.bf16.msra.mxu0 %v10092_v45  ;;  %v10130_v45 = vld [vmem:[%s10621_s28 + $0xd70] ss:$12 sps:$4 sm:$0xff]  }
 0x2e6   : > { %8779 = vmatpush3.bf16.msra.mxu1 %v10091_v42  ;;  %8796 = vmatprep.subr.bf16.mxu0 %v10094_v27  ;;  %v10129_v42 = vld [vmem:[%s10621_s28 + $0xb78] ss:$12 sps:$4 sm:$0xff]   ;;  %v10132_v27 = vld [vmem:[%s10621_s28 + $0xcb0] ss:$12 sps:$4 sm:$0xff]  }
 0x2e7   : > { %8780 = vmatprep.subr.bf16.mxu1 %v10093_v59  ;;  %v10131_v59 = vld [vmem:[%s10621_s28 + $0xab8] ss:$12 sps:$4 sm:$0xff]  }
 0x2e9   : > { %8797 = vmatpush3.bf16.msra.mxu0 %v10096_v54  ;;  %v10134_v54 = vld [vmem:[%s10621_s28 + $0xd58] ss:$12 sps:$4 sm:$0xff]  }
 0x2ea   : > { %8781 = vmatpush3.bf16.msra.mxu1 %v10095_v51  ;;  %8798 = vmatprep.subr.bf16.mxu0 %v10097_v55  ;;  %v10133_v51 = vld [vmem:[%s10621_s28 + $0xb60] ss:$12 sps:$4 sm:$0xff]  }
 0x2eb   : > { %8810 = vmatprep.subr.bf16.mxu1 %v10098_v25  ;;  %v10135_v55 = vld [vmem:[%s10621_s28 + $0xaa0] ss:$12 sps:$4 sm:$0xff]   ;;  %v10136_v25 = vld [vmem:[%s10621_s28 + $0xc98] ss:$12 sps:$4 sm:$0xff]  }
 0x2ed   : > { %7137 = vmatmul.mubr.bf16.vlgmr.msra.gmra.mxu1 %v10898_v4  ;;  %8799 = vmatpush3.bf16.msra.mxu0 %v10099_v16  ;;  %v10108_v4 = vld [vmem:[%s10621_s28 + $0x980] ss:$12 sps:$4 sm:$0xff]   ;;  %v10137_v16 = vld [vmem:[%s10621_s28 + $0xb48] ss:$12 sps:$4 sm:$0xff]  }
 0x2ee   : > { %8811 = vmatpush3.bf16.msra.mxu1 %v10100_v5  ;;  %8800 = vmatprep.subr.bf16.mxu0 %v10101_v32  ;;  %v10138_v5 = vld [vmem:[%s10621_s28 + $0xd40] ss:$12 sps:$4 sm:$0xff]   ;;  %v10139_v32 = vld [vmem:[%s10621_s28 + $0xa88] ss:$12 sps:$4 sm:$0xff]  }
 0x2ef   : > { %8812 = vmatprep.subr.bf16.mxu1 %v10102_v9  ;;  %7216 = vmatprep.mubr.bf16.mxu1 %v10908_v10  ;;  %v10113_v10 = vld [vmem:[%s10621_s28 + $0xa10] ss:$12 sps:$4 sm:$0xff]   ;;  %v10141_v9 = vld [vmem:[%s10621_s28 + $0xd28] ss:$12 sps:$4 sm:$0xff]  }
 0x2f1   : > { %8801 = vmatpush3.bf16.msra.mxu0 %v10103_v24  ;;  %v10142_v24 = vld [vmem:[%s10621_s28 + $0xef0] ss:$12 sps:$4 sm:$0xff]  }
 0x2f2   : > { %8813 = vmatpush3.bf16.msra.mxu1 %v10104_v53  ;;  %8802 = vmatprep.subr.bf16.mxu0 %v10105_v11  ;;  %v10143_v53 = vld [vmem:[%s10621_s28 + $0xc68] ss:$12 sps:$4 sm:$0xff]   ;;  %v10144_v11 = vld [vmem:[%s10621_s28 + $0xe30] ss:$12 sps:$4 sm:$0xff]  }
 0x2f3   : > { %8814 = vmatprep.subr.bf16.mxu1 %v10106_v7  ;;  %v10146_v7 = vld [vmem:[%s10621_s28 + $0xed8] ss:$12 sps:$4 sm:$0xff]  }
 0x2f5   : > { %8803 = vmatpush3.bf16.msra.mxu0 %v10107_v48 }
 0x2f6   : > { %8815 = vmatpush3.bf16.msra.mxu1 %v10108_v4  ;;  %8832 = vmatprep.subr.bf16.mxu0 %v10110_v30  ;;  %v10147_v30 = vld [vmem:[%s10621_s28 + $0xc50] ss:$12 sps:$4 sm:$0xff]  }
 0x2f7   : > { %8816 = vmatprep.subr.bf16.mxu1 %v10109_v21 }
 0x2f8   : > { %7177 = vmatmul.mubr.bf16.vlgmr.msra.gmra.mxu0 %v10903_v6  ;;  %v10120_v6 = vld [vmem:[%s10621_s28 + $0xb00] ss:$12 sps:$4 sm:$0xff]  }
 0x2f9   : > { %8833 = vmatpush3.bf16.msra.mxu0 %v10112_v17  ;;  %7256 = vmatprep.mubr.bf16.mxu0 %v10910_v39  ;;  %v10125_v39 = vld [vmem:[%s10621_s28 + $0x9c8] ss:$12 sps:$4 sm:$0xff]  }
 0x2fa   : > { %8817 = vmatpush3.bf16.msra.mxu1 %v10111_v14  ;;  %8834 = vmatprep.subr.bf16.mxu0 %v10114_v3  ;;  %v10148_v14 = vld [vmem:[%s10621_s28 + $0xe18] ss:$12 sps:$4 sm:$0xff]  }
 0x2fb   : > { %8818 = vmatprep.subr.bf16.mxu1 %v10113_v10  ;;  %v10149_v3 = vld [vmem:[%s10621_s28 + $0xcf8] ss:$12 sps:$4 sm:$0xff]  }
 0x2fd   : > { %8835 = vmatpush3.bf16.msra.mxu0 %v10116_v19 }
 0x2fe   : > { %8819 = vmatpush3.bf16.msra.mxu1 %v10115_v18  ;;  %8836 = vmatprep.subr.bf16.mxu0 %v10118_v8  ;;  %v10150_v18 = vld [vmem:[%s10621_s28 + $0xec0] ss:$12 sps:$4 sm:$0xff]  }
 0x2ff   : > { %8820 = vmatprep.subr.bf16.mxu1 %v10117_v20 }
 0x301   : > { %8837 = vmatpush3.bf16.msra.mxu0 %v10120_v6  ;;  %v10152_v6 = vld [vmem:[%s10621_s28 + $0xe00] ss:$12 sps:$4 sm:$0xff]  }
 0x302   : > { %8821 = vmatpush3.bf16.msra.mxu1 %v10119_v63  ;;  %8838 = vmatprep.subr.bf16.mxu0 %v10122_v62  ;;  %v10151_v63 = vld [vmem:[%s10621_s28 + $0xc38] ss:$12 sps:$4 sm:$0xff]   ;;  %v10154_v62 = vld [vmem:[%s10621_s28 + $0xea8] ss:$12 sps:$4 sm:$0xff]  }
 0x303   : > { %8822 = vmatprep.subr.bf16.mxu1 %v10121_v57 }
 0x305   : > { %8839 = vmatpush3.bf16.msra.mxu0 %v10124_v44  ;;  %v10156_v44 = vld [vmem:[%s10621_s28 + $0xde8] ss:$12 sps:$4 sm:$0xff]  }
 0x306   : > { %8823 = vmatpush3.bf16.msra.mxu1 %v10123_v33  ;;  %8840 = vmatprep.subr.bf16.mxu0 %v10126_v29  ;;  %v10155_v33 = vld [vmem:[%s10621_s28 + $0xc20] ss:$12 sps:$4 sm:$0xff]   ;;  %v10158_v29 = vld [vmem:[%s10621_s28 + $0xe90] ss:$12 sps:$4 sm:$0xff]  }
 0x307   : > { %8824 = vmatprep.subr.bf16.mxu1 %v10125_v39  ;;  %v10157_v39 = vld [vmem:[%s10621_s28 + $0xcc8] ss:$12 sps:$4 sm:$0xff]  }
 0x309   : > { %8841 = vmatpush3.bf16.msra.mxu0 %v10128_v52  ;;  %v10160_v52 = vld [vmem:[%s10621_s28 + $0xdd0] ss:$12 sps:$4 sm:$0xff]  }
 0x30a   : > { %8825 = vmatpush3.bf16.msra.mxu1 %v10127_v15  ;;  %8842 = vmatprep.subr.bf16.mxu0 %v10129_v42  ;;  %v10159_v15 = vld [vmem:[%s10621_s28 + $0xc08] ss:$12 sps:$4 sm:$0xff]   ;;  %v10161_v42 = vld [vmem:[%s10621_s28 + $0xe78] ss:$12 sps:$4 sm:$0xff]  }
 0x30b   : > { %8854 = vmatprep.subr.bf16.mxu1 %v10130_v45  ;;  %v10162_v45 = vld [vmem:[%s10621_s28 + $0x1070] ss:$12 sps:$4 sm:$0xff]  }
 0x30d   : > { %7217 = vmatmul.mubr.bf16.vlgmr.msra.gmra.mxu1 %v10996_v37  ;;  %8843 = vmatpush3.bf16.msra.mxu0 %v10131_v59  ;;  %v10140_v37 = vld [vmem:[%s10621_s28 + $0xc80] ss:$12 sps:$4 sm:$0xff]   ;;  %v10163_v59 = vld [vmem:[%s10621_s28 + $0xdb8] ss:$12 sps:$4 sm:$0xff]  }
 0x30e   : > { %8855 = vmatpush3.bf16.msra.mxu1 %v10132_v27  ;;  %8844 = vmatprep.subr.bf16.mxu0 %v10133_v51  ;;  %v10164_v27 = vld [vmem:[%s10621_s28 + $0xfb0] ss:$12 sps:$4 sm:$0xff]   ;;  %v10165_v51 = vld [vmem:[%s10621_s28 + $0xe60] ss:$12 sps:$4 sm:$0xff]  }
 0x30f   : > { %8856 = vmatprep.subr.bf16.mxu1 %v10134_v54  ;;  %7296 = vmatprep.mubr.bf16.mxu1 %v11006_v50  ;;  %v10145_v50 = vld [vmem:[%s10621_s28 + $0xd10] ss:$12 sps:$4 sm:$0xff]   ;;  %v10166_v54 = vld [vmem:[%s10621_s28 + $0x1058] ss:$12 sps:$4 sm:$0xff]  }
 0x311   : > { %8845 = vmatpush3.bf16.msra.mxu0 %v10135_v55  ;;  %v10167_v55 = vld [vmem:[%s10621_s28 + $0xda0] ss:$12 sps:$4 sm:$0xff]  }
 0x312   : > { %8857 = vmatpush3.bf16.msra.mxu1 %v10136_v25  ;;  %8846 = vmatprep.subr.bf16.mxu0 %v10137_v16  ;;  %v10168_v25 = vld [vmem:[%s10621_s28 + $0xf98] ss:$12 sps:$4 sm:$0xff]   ;;  %v10169_v16 = vld [vmem:[%s10621_s28 + $0xe48] ss:$12 sps:$4 sm:$0xff]  }
 0x313   : > { %8858 = vmatprep.subr.bf16.mxu1 %v10138_v5  ;;  %v10170_v5 = vld [vmem:[%s10621_s28 + $0x1040] ss:$12 sps:$4 sm:$0xff]  }
 0x315   : > { %8847 = vmatpush3.bf16.msra.mxu0 %v10139_v32  ;;  %v10171_v32 = vld [vmem:[%s10621_s28 + $0xd88] ss:$12 sps:$4 sm:$0xff]  }
 0x316   : > { %8859 = vmatpush3.bf16.msra.mxu1 %v10140_v37  ;;  %8876 = vmatprep.subr.bf16.mxu0 %v10142_v24  ;;  %v10173_v37 = vld [vmem:[%s10621_s28 + $0x1028] ss:$12 sps:$4 sm:$0xff]  }
 0x317   : > { %8860 = vmatprep.subr.bf16.mxu1 %v10141_v9  ;;  %v10174_v9 = vld [vmem:[%s10621_s28 + $0x11f0] ss:$12 sps:$4 sm:$0xff]   ;;  %v10175_v24 = vld [vmem:[%s10621_s28 + $0xf68] ss:$12 sps:$4 sm:$0xff]  }
 0x318   : > { %v6814_v48 = vpop.f32.mrf.mxu0  ;;  %7257 = vmatmul.mubr.bf16.vlgmr.msra.gmra.mxu0 %v11000_v38 }
 0x319   : > { %v6855_v4 = vpop.f32.mrf.mxu1  ;;  %v6815_v21 = vadd.f32 %v6814_v48, %v11562_v34  ;;  %8877 = vmatpush3.bf16.msra.mxu0 %v10144_v11  ;;  %7336 = vmatprep.mubr.bf16.mxu0 %v11008_v58  ;;  %v10178_v11 = vld [vmem:[%s10621_s28 + $0x11d8] ss:$12 sps:$4 sm:$0xff]  }
 0x31a   : > { %8861 = vmatpush3.bf16.msra.mxu1 %v10143_v53  ;;  %v6816_v17 = vpop.f32.mrf.mxu0  ;;  %8878 = vmatprep.subr.bf16.mxu0 %v10146_v7  ;;  %v10176_v53 = vld [vmem:[%s10621_s28 + $0x1130] ss:$12 sps:$4 sm:$0xff]   ;;  %v10180_v7 = vld [vmem:[%s10621_s28 + $0x1118] ss:$12 sps:$4 sm:$0xff]  }
 0x31b   : > { %v6857_v10 = vpop.f32.mrf.mxu1  ;;  %8862 = vmatprep.subr.bf16.mxu1 %v10145_v50  ;;  %v6817_v19 = vadd.f32 %v6816_v17, %v11565_v26  ;;  %v11640_v38 = vadd.f32 %v6855_v4, %v6815_v21  ;;  %v10153_v26 = vld [vmem:[%s10621_s28 + $0xce0] ss:$12 sps:$4 sm:$0xff]   ;;  %v10179_v50 = vld [vmem:[%s10621_s28 + $0xf50] ss:$12 sps:$4 sm:$0xff]   ;;  %v10181_v48 = vld [vmem:[%s10621_s28 + $0xff8] ss:$12 sps:$4 sm:$0xff]  }
 0x31c   : > { %v6818_v34 = vpop.f32.mrf.mxu0  ;;  %v10182_v4 = vld [vmem:[%s10621_s28 + $0x11c0] ss:$12 sps:$4 sm:$0xff]   ;;  %v10183_v21 = vld [vmem:[%s10621_s28 + $0xf38] ss:$12 sps:$4 sm:$0xff]  }
 0x31d   : > { %v6859_v20 = vpop.f32.mrf.mxu1  ;;  %v11643_v8 = vadd.f32 %v6857_v10, %v6817_v19  ;;  %8879 = vmatpush3.bf16.msra.mxu0 %v10148_v14  ;;  %v10186_v14 = vld [vmem:[%s10621_s28 + $0x11a8] ss:$12 sps:$4 sm:$0xff]   ;;  %v10187_v17 = vld [vmem:[%s10621_s28 + $0xf20] ss:$12 sps:$4 sm:$0xff]   ;;  %v10192_v19 = vld [vmem:[%s10621_s28 + $0x10d0] ss:$12 sps:$4 sm:$0xff]  }
 0x31e   : > { %8863 = vmatpush3.bf16.msra.mxu1 %v10147_v30  ;;  %v6819_v57 = vpop.f32.mrf.mxu0  ;;  %8880 = vmatprep.subr.bf16.mxu0 %v10150_v18  ;;  %v10185_v30 = vld [vmem:[%s10621_s28 + $0xfe0] ss:$12 sps:$4 sm:$0xff]   ;;  %v10188_v10 = vld [vmem:[%s10621_s28 + $0x10e8] ss:$12 sps:$4 sm:$0xff]   ;;  %v10193_v34 = vld [vmem:[%s10621_s28 + $0x1178] ss:$12 sps:$4 sm:$0xff]  }
 0x31f   : > { %8864 = vmatprep.subr.bf16.mxu1 %v10149_v3  ;;  %v6860_v58 = vpop.f32.mrf.mxu1  ;;  %v10190_v3 = vld [vmem:[%s10621_s28 + $0x1190] ss:$12 sps:$4 sm:$0xff]   ;;  %v10191_v18 = vld [vmem:[%s10621_s28 + $0xf08] ss:$12 sps:$4 sm:$0xff]   ;;  %v10197_v57 = vld [vmem:[%s10621_s28 + $0x1160] ss:$12 sps:$4 sm:$0xff]  }
 0x320   : > { %v10194_v20 = vld [vmem:[%s10621_s28 + $0x1370] ss:$12 sps:$4 sm:$0xff]   ;;  %v10199_v58 = vld [vmem:[%s10621_s28 + $0x10a0] ss:$12 sps:$4 sm:$0xff]  }
 0x321   : > { %8881 = vmatpush3.bf16.msra.mxu0 %v10152_v6  ;;  %v10196_v6 = vld [vmem:[%s10621_s28 + $0x12b0] ss:$12 sps:$4 sm:$0xff]  }
 0x322   : > { %8865 = vmatpush3.bf16.msra.mxu1 %v10151_v63  ;;  %8882 = vmatprep.subr.bf16.mxu0 %v10154_v62  ;;  %v10195_v63 = vld [vmem:[%s10621_s28 + $0x10b8] ss:$12 sps:$4 sm:$0xff]  }
 0x323   : > { %8866 = vmatprep.subr.bf16.mxu1 %v10153_v26  ;;  %v10198_v26 = vld [vmem:[%s10621_s28 + $0x1358] ss:$12 sps:$4 sm:$0xff]  }
 0x325   : > { %8883 = vmatpush3.bf16.msra.mxu0 %v10156_v44  ;;  %v10201_v44 = vld [vmem:[%s10621_s28 + $0x1148] ss:$12 sps:$4 sm:$0xff]  }
 0x326   : > { %8867 = vmatpush3.bf16.msra.mxu1 %v10155_v33  ;;  %8884 = vmatprep.subr.bf16.mxu0 %v10158_v29  ;;  %v10200_v33 = vld [vmem:[%s10621_s28 + $0x1298] ss:$12 sps:$4 sm:$0xff]  }
 0x327   : > { %8868 = vmatprep.subr.bf16.mxu1 %v10157_v39  ;;  %v10202_v39 = vld [vmem:[%s10621_s28 + $0x1340] ss:$12 sps:$4 sm:$0xff]  }
 0x329   : > { %8885 = vmatpush3.bf16.msra.mxu0 %v10160_v52  ;;  %v10204_v52 = vld [vmem:[%s10621_s28 + $0x1280] ss:$12 sps:$4 sm:$0xff]  }
 0x32a   : > { %8869 = vmatpush3.bf16.msra.mxu1 %v10159_v15  ;;  %8886 = vmatprep.subr.bf16.mxu0 %v10161_v42  ;;  %v10205_v42 = vld [vmem:[%s10621_s28 + $0x1328] ss:$12 sps:$4 sm:$0xff]  }
 0x32b   : > { %8898 = vmatprep.subr.bf16.mxu1 %v10162_v45  ;;  %v10206_v45 = vld [vmem:[%s10621_s28 + $0x14f0] ss:$12 sps:$4 sm:$0xff]  }
 0x32d   : > { %7297 = vmatmul.mubr.bf16.vlgmr.msra.gmra.mxu1 %v11092_v46  ;;  %8887 = vmatpush3.bf16.msra.mxu0 %v10163_v59  ;;  %v10172_v46 = vld [vmem:[%s10621_s28 + $0xf80] ss:$12 sps:$4 sm:$0xff]  }
 0x32e   : > { %8899 = vmatpush3.bf16.msra.mxu1 %v10164_v27  ;;  %8888 = vmatprep.subr.bf16.mxu0 %v10165_v51  ;;  %v10207_v27 = vld [vmem:[%s10621_s28 + $0x1268] ss:$12 sps:$4 sm:$0xff]   ;;  %v10208_v51 = vld [vmem:[%s10621_s28 + $0x1430] ss:$12 sps:$4 sm:$0xff]  }
 0x32f   : > { %8900 = vmatprep.subr.bf16.mxu1 %v10166_v54  ;;  %7376 = vmatprep.mubr.bf16.mxu1 %v11102_v56  ;;  %v10177_v56 = vld [vmem:[%s10621_s28 + $0x1010] ss:$12 sps:$4 sm:$0xff]   ;;  %v10210_v54 = vld [vmem:[%s10621_s28 + $0x14d8] ss:$12 sps:$4 sm:$0xff]  }
 0x331   : > { %8889 = vmatpush3.bf16.msra.mxu0 %v10167_v55 }
 0x332   : > { %8901 = vmatpush3.bf16.msra.mxu1 %v10168_v25  ;;  %8890 = vmatprep.subr.bf16.mxu0 %v10169_v16  ;;  %v10211_v16 = vld [vmem:[%s10621_s28 + $0x1250] ss:$12 sps:$4 sm:$0xff]  }
 0x333   : > { %8902 = vmatprep.subr.bf16.mxu1 %v10170_v5  ;;  %v10212_v5 = vld [vmem:[%s10621_s28 + $0x1418] ss:$12 sps:$4 sm:$0xff]  }
 0x335   : > { %8891 = vmatpush3.bf16.msra.mxu0 %v10171_v32 }
 0x336   : > { %8903 = vmatpush3.bf16.msra.mxu1 %v10172_v46  ;;  %8920 = vmatprep.subr.bf16.mxu0 %v10174_v9  ;;  %v10213_v46 = vld [vmem:[%s10621_s28 + $0x12f8] ss:$12 sps:$4 sm:$0xff]  }
 0x337   : > { %8904 = vmatprep.subr.bf16.mxu1 %v10173_v37  ;;  %v10214_v37 = vld [vmem:[%s10621_s28 + $0x14c0] ss:$12 sps:$4 sm:$0xff]  }
 0x338   : > { %7337 = vmatmul.mubr.bf16.vlgmr.msra.gmra.mxu0 %v11096_v47  ;;  %v10184_v47 = vld [vmem:[%s10621_s28 + $0x1100] ss:$12 sps:$4 sm:$0xff]  }
 0x339   : > { %8921 = vmatpush3.bf16.msra.mxu0 %v10176_v53  ;;  %7416 = vmatprep.mubr.bf16.mxu0 %v11104_v60  ;;  %v10189_v60 = vld [vmem:[%s10621_s28 + $0xfc8] ss:$12 sps:$4 sm:$0xff]   ;;  %v10215_v53 = vld [vmem:[%s10621_s28 + $0x1238] ss:$12 sps:$4 sm:$0xff]  }
 0x33a   : > { %8905 = vmatpush3.bf16.msra.mxu1 %v10175_v24  ;;  %8922 = vmatprep.subr.bf16.mxu0 %v10178_v11 }
 0x33b   : > { %8906 = vmatprep.subr.bf16.mxu1 %v10177_v56  ;;  %v10216_v56 = vld [vmem:[%s10621_s28 + $0x1400] ss:$12 sps:$4 sm:$0xff]  }
 0x33d   : > { %8923 = vmatpush3.bf16.msra.mxu0 %v10180_v7  ;;  %v10219_v7 = vld [vmem:[%s10621_s28 + $0x1220] ss:$12 sps:$4 sm:$0xff]  }
 0x33e   : > { %8907 = vmatpush3.bf16.msra.mxu1 %v10179_v50  ;;  %8924 = vmatprep.subr.bf16.mxu0 %v10182_v4  ;;  %v10218_v50 = vld [vmem:[%s10621_s28 + $0x14a8] ss:$12 sps:$4 sm:$0xff]  }
 0x33f   : > { %8908 = vmatprep.subr.bf16.mxu1 %v10181_v48  ;;  %v10220_v48 = vld [vmem:[%s10621_s28 + $0x13e8] ss:$12 sps:$4 sm:$0xff]  }
 0x340   : > { %v10221_v4 = vld [vmem:[%s10621_s28 + $0x12c8] ss:$12 sps:$4 sm:$0xff]  }
 0x341   : > { %8925 = vmatpush3.bf16.msra.mxu0 %v10184_v47  ;;  %v10223_v47 = vld [vmem:[%s10621_s28 + $0x1208] ss:$12 sps:$4 sm:$0xff]  }
 0x342   : > { %8909 = vmatpush3.bf16.msra.mxu1 %v10183_v21  ;;  %8926 = vmatprep.subr.bf16.mxu0 %v10186_v14  ;;  %v10222_v21 = vld [vmem:[%s10621_s28 + $0x1490] ss:$12 sps:$4 sm:$0xff]   ;;  %v10225_v14 = vld [vmem:[%s10621_s28 + $0x1478] ss:$12 sps:$4 sm:$0xff]  }
 0x343   : > { %8910 = vmatprep.subr.bf16.mxu1 %v10185_v30  ;;  %v10224_v30 = vld [vmem:[%s10621_s28 + $0x13d0] ss:$12 sps:$4 sm:$0xff]  }
 0x345   : > { %8927 = vmatpush3.bf16.msra.mxu0 %v10188_v10  ;;  %v10227_v10 = vld [vmem:[%s10621_s28 + $0x13b8] ss:$12 sps:$4 sm:$0xff]  }
 0x346   : > { %8911 = vmatpush3.bf16.msra.mxu1 %v10187_v17  ;;  %8928 = vmatprep.subr.bf16.mxu0 %v10190_v3  ;;  %v10226_v17 = vld [vmem:[%s10621_s28 + $0x1670] ss:$12 sps:$4 sm:$0xff]   ;;  %v10229_v3 = vld [vmem:[%s10621_s28 + $0x1460] ss:$12 sps:$4 sm:$0xff]  }
 0x347   : > { %8912 = vmatprep.subr.bf16.mxu1 %v10189_v60  ;;  %v10228_v60 = vld [vmem:[%s10621_s28 + $0x15b0] ss:$12 sps:$4 sm:$0xff]  }
 0x349   : > { %8929 = vmatpush3.bf16.msra.mxu0 %v10192_v19 }
 0x34a   : > { %8913 = vmatpush3.bf16.msra.mxu1 %v10191_v18  ;;  %8930 = vmatprep.subr.bf16.mxu0 %v10193_v34  ;;  %v10230_v18 = vld [vmem:[%s10621_s28 + $0x1658] ss:$12 sps:$4 sm:$0xff]   ;;  %v10231_v34 = vld [vmem:[%s10621_s28 + $0x13a0] ss:$12 sps:$4 sm:$0xff]  }
 0x34b   : > { %8942 = vmatprep.subr.bf16.mxu1 %v10194_v20  ;;  %v10232_v20 = vld [vmem:[%s10621_s28 + $0x1598] ss:$12 sps:$4 sm:$0xff]  }
 0x34d   : > { %7377 = vmatmul.mubr.bf16.vlgmr.msra.gmra.mxu1 %v11188_v0  ;;  %v6937_v62 = vpop.f32.mrf.mxu1  ;;  %8931 = vmatpush3.bf16.msra.mxu0 %v10195_v63  ;;  %v10203_v0 = vld [vmem:[%s10621_s28 + $0x1088] ss:$12 sps:$4 sm:$0xff]  }
 0x34e   : > { %8943 = vmatpush3.bf16.msra.mxu1 %v10196_v6  ;;  %8932 = vmatprep.subr.bf16.mxu0 %v10197_v57  ;;  %v10233_v63 = vld [vmem:[%s10621_s28 + $0x1448] ss:$12 sps:$4 sm:$0xff]   ;;  %v10234_v6 = vld [vmem:[%s10621_s28 + $0x1640] ss:$12 sps:$4 sm:$0xff]  }
 0x34f   : > { %8944 = vmatprep.subr.bf16.mxu1 %v10198_v26  ;;  %v6939_v29 = vpop.f32.mrf.mxu1  ;;  %7456 = vmatprep.mubr.bf16.mxu1 %v11198_v2  ;;  %v10209_v2 = vld [vmem:[%s10621_s28 + $0x1310] ss:$12 sps:$4 sm:$0xff]  }
 0x351   : > { %v6941_v15 = vpop.f32.mrf.mxu1  ;;  %8933 = vmatpush3.bf16.msra.mxu0 %v10199_v58  ;;  %v10236_v58 = vld [vmem:[%s10621_s28 + $0x1580] ss:$12 sps:$4 sm:$0xff]  }
 0x352   : > { %8945 = vmatpush3.bf16.msra.mxu1 %v10200_v33  ;;  %8934 = vmatprep.subr.bf16.mxu0 %v10201_v44  ;;  %v1637_v33 = vsub.s32 2, %v10670_v43  ;;  %v10237_v44 = vld [vmem:[%s10621_s28 + $0x1628] ss:$12 sps:$4 sm:$0xff]   ;;  %v10242_v43 = vld [vmem:[%s10621_s28 + $0x17d8] ss:$12 sps:$4 sm:$0xff]  }
 0x353   : > { %8946 = vmatprep.subr.bf16.mxu1 %v10202_v39  ;;  %v6942_v59 = vpop.f32.mrf.mxu1  ;;  %v10238_v39 = vld [vmem:[%s10621_s28 + $0x17f0] ss:$12 sps:$4 sm:$0xff]  }
 0x355   : > { %8935 = vmatpush3.bf16.msra.mxu0 %v10203_v0  ;;  %v10239_v0 = vld [vmem:[%s10621_s28 + $0x1568] ss:$12 sps:$4 sm:$0xff]  }
 0x356   : > { %8947 = vmatpush3.bf16.msra.mxu1 %v10204_v52  ;;  %8964 = vmatprep.subr.bf16.mxu0 %v10206_v45  ;;  %v10240_v52 = vld [vmem:[%s10621_s28 + $0x1730] ss:$12 sps:$4 sm:$0xff]  }
 0x357   : > { %8948 = vmatprep.subr.bf16.mxu1 %v10205_v42  ;;  %v10241_v42 = vld [vmem:[%s10621_s28 + $0x1610] ss:$12 sps:$4 sm:$0xff]  }
 0x358   : > { %v6896_v55 = vpop.f32.mrf.mxu0  ;;  %7417 = vmatmul.mubr.bf16.vlgmr.msra.gmra.mxu0 %v11192_v1 }
 0x359   : > { %v6897_v25 = vadd.f32 %v6896_v55, %v11640_v38  ;;  %8965 = vmatpush3.bf16.msra.mxu0 %v10208_v51  ;;  %7496 = vmatprep.mubr.bf16.mxu0 %v11200_v12  ;;  %v10244_v51 = vld [vmem:[%s10621_s28 + $0x1718] ss:$12 sps:$4 sm:$0xff]   ;;  %v10246_v55 = vld [vmem:[%s10621_s28 + $0x17c0] ss:$12 sps:$4 sm:$0xff]  }
 0x35a   : > { %8949 = vmatpush3.bf16.msra.mxu1 %v10207_v27  ;;  %v6898_v32 = vpop.f32.mrf.mxu0  ;;  %8966 = vmatprep.subr.bf16.mxu0 %v10210_v54  ;;  %v10243_v27 = vld [vmem:[%s10621_s28 + $0x1550] ss:$12 sps:$4 sm:$0xff]   ;;  %v10245_v54 = vld [vmem:[%s10621_s28 + $0x15f8] ss:$12 sps:$4 sm:$0xff]  }
 0x35b   : > { %8950 = vmatprep.subr.bf16.mxu1 %v10209_v2  ;;  %v6899_v9 = vadd.f32 %v6898_v32, %v11643_v8  ;;  %v11718_v24 = vadd.f32 %v6937_v62, %v6897_v25  ;;  %v10217_v8 = vld [vmem:[%s10621_s28 + $0x12e0] ss:$12 sps:$4 sm:$0xff]   ;;  %v10235_v62 = vld [vmem:[%s10621_s28 + $0x1388] ss:$12 sps:$4 sm:$0xff]  }
 0x35c   : > { %v6900_v1 = vpop.f32.mrf.mxu0  ;;  %v10248_v32 = vld [vmem:[%s10621_s28 + $0x1700] ss:$12 sps:$4 sm:$0xff]  }
 0x35d   : > { %v11721_v38 = vadd.f32 %v6939_v29, %v6899_v9  ;;  %8967 = vmatpush3.bf16.msra.mxu0 %v10212_v5  ;;  %v10247_v5 = vld [vmem:[%s10621_s28 + $0x1538] ss:$12 sps:$4 sm:$0xff]   ;;  %v10250_v9 = vld [vmem:[%s10621_s28 + $0x17a8] ss:$12 sps:$4 sm:$0xff]  }
 0x35e   : > { %8951 = vmatpush3.bf16.msra.mxu1 %v10211_v16  ;;  %v6901_v11 = vpop.f32.mrf.mxu0  ;;  %8968 = vmatprep.subr.bf16.mxu0 %v10214_v37  ;;  %v10249_v37 = vld [vmem:[%s10621_s28 + $0x15e0] ss:$12 sps:$4 sm:$0xff]   ;;  %v10252_v1 = vld [vmem:[%s10621_s28 + $0x16e8] ss:$12 sps:$4 sm:$0xff]  }
 0x35f   : > { %8952 = vmatprep.subr.bf16.mxu1 %v10213_v46  ;;  %v7667_v12 = vcombine.low %v11718_v24, %v11721_v38  ;;  %v10255_v11 = vld [vmem:[%s10621_s28 + $0x1508] ss:$12 sps:$4 sm:$0xff]  }
 0x361   : > { %8969 = vmatpush3.bf16.msra.mxu0 %v10216_v56  ;;  %v10254_v56 = vld [vmem:[%s10621_s28 + $0x1790] ss:$12 sps:$4 sm:$0xff]  }
 0x362   : > { %8953 = vmatpush3.bf16.msra.mxu1 %v10215_v53  ;;  %8970 = vmatprep.subr.bf16.mxu0 %v10218_v50  ;;  %v10253_v53 = vld [vmem:[%s10621_s28 + $0x15c8] ss:$12 sps:$4 sm:$0xff]   ;;  %v10257_v50 = vld [vmem:[%s10621_s28 + $0x1778] ss:$12 sps:$4 sm:$0xff]  }
 0x363   : > { %8954 = vmatprep.subr.bf16.mxu1 %v10217_v8  ;;  %v10256_v8 = vld [vmem:[%s10621_s28 + $0x16d0] ss:$12 sps:$4 sm:$0xff]  }
 0x365   : > { %8971 = vmatpush3.bf16.msra.mxu0 %v10220_v48  ;;  %v10259_v48 = vld [vmem:[%s10621_s28 + $0x16b8] ss:$12 sps:$4 sm:$0xff]  }
 0x366   : > { %8955 = vmatpush3.bf16.msra.mxu1 %v10219_v7  ;;  %8972 = vmatprep.subr.bf16.mxu0 %v10222_v21  ;;  %v10258_v7 = vld [vmem:[%s10621_s28 + $0x1970] ss:$12 sps:$4 sm:$0xff]   ;;  %v10261_v21 = vld [vmem:[%s10621_s28 + $0x1760] ss:$12 sps:$4 sm:$0xff]  }
 0x367   : > { %8956 = vmatprep.subr.bf16.mxu1 %v10221_v4  ;;  %v10260_v4 = vld [vmem:[%s10621_s28 + $0x18b0] ss:$12 sps:$4 sm:$0xff]  }
 0x369   : > { %8973 = vmatpush3.bf16.msra.mxu0 %v10224_v30 }
 0x36a   : > { %8957 = vmatpush3.bf16.msra.mxu1 %v10223_v47  ;;  %8974 = vmatprep.subr.bf16.mxu0 %v10225_v14  ;;  %v10262_v47 = vld [vmem:[%s10621_s28 + $0x1958] ss:$12 sps:$4 sm:$0xff]   ;;  %v10263_v14 = vld [vmem:[%s10621_s28 + $0x16a0] ss:$12 sps:$4 sm:$0xff]  }
 0x36b   : > { %8986 = vmatprep.subr.bf16.mxu1 %v10226_v17  ;;  %v10264_v17 = vld [vmem:[%s10621_s28 + $0x1898] ss:$12 sps:$4 sm:$0xff]  }
 0x36d   : > { %7457 = vmatmul.mubr.bf16.vlgmr.msra.gmra.mxu1 %v11284_v28  ;;  %v8694_v19 = vpop.f32.mrf.mxu1  ;;  %8975 = vmatpush3.bf16.msra.mxu0 %v10227_v10 }
 0x36e   : > { %8987 = vmatpush3.bf16.msra.mxu1 %v10228_v60  ;;  %8976 = vmatprep.subr.bf16.mxu0 %v10229_v3  ;;  %v10265_v60 = vld [vmem:[%s10621_s28 + $0x1748] ss:$12 sps:$4 sm:$0xff]   ;;  %v10266_v3 = vld [vmem:[%s10621_s28 + $0x1940] ss:$12 sps:$4 sm:$0xff]  }
 0x36f   : > { %8988 = vmatprep.subr.bf16.mxu1 %v10230_v18  ;;  %v8695_v57 = vpop.f32.mrf.mxu1  ;;  %7536 = vmatprep.mubr.bf16.mxu1 %v11294_v40  ;;  %v10292_v40 = vld [vmem:[%s241_s25] sm:$0x7] }
 0x370   : > { %v8696_v26 = vadd.f32 %v8695_v57, %v8694_v19  ;;  %v1638_v15 = vrot.slane %v10292_v40, %v1637_v33  ;;  %v10270_v57 = vld [vmem:[%s10621_s28 + $0x1868] ss:$12 sps:$4 sm:$0xff]   ;;  %v10274_v33 = vld [vmem:[%s10621_s28 + $0x1a18] ss:$12 sps:$4 sm:$0xff]  }
 0x371   : > { %v8697_v28 = vpop.f32.mrf.mxu1  ;;  %8977 = vmatpush3.bf16.msra.mxu0 %v10231_v34 }
 0x372   : > { %8989 = vmatpush3.bf16.msra.mxu1 %v10232_v20  ;;  %8978 = vmatprep.subr.bf16.mxu0 %v10233_v63  ;;  %v6979_v59 = vadd.f32 %v8696_v26, %v1638_v15  ;;  %v10268_v20 = vld [vmem:[%s10621_s28 + $0x1880] ss:$12 sps:$4 sm:$0xff]   ;;  %v10269_v63 = vld [vmem:[%s10621_s28 + $0x1928] ss:$12 sps:$4 sm:$0xff]   ;;  %v10271_v26 = vld [vmem:[%s10621_s28 + $0x1a30] ss:$12 sps:$4 sm:$0xff]  }
 0x373   : > { %8990 = vmatprep.subr.bf16.mxu1 %v10234_v6  ;;  %v8698_v29 = vpop.f32.mrf.mxu1  ;;  %v10272_v28 = vld [vmem:[%s10621_s28 + $0x1910] ss:$12 sps:$4 sm:$0xff]   ;;  %v10276_v15 = vld [vmem:[%s10621_s28 + $0x1838] ss:$12 sps:$4 sm:$0xff]  }
 0x375   : > { %8979 = vmatpush3.bf16.msra.mxu0 %v10235_v62 }
 0x376   : > { %8991 = vmatpush3.bf16.msra.mxu1 %v10236_v58  ;;  %9008 = vmatprep.subr.bf16.mxu0 %v10238_v39  ;;  %v10273_v58 = vld [vmem:[%s10621_s28 + $0x1850] ss:$12 sps:$4 sm:$0xff]   ;;  %v10275_v39 = vld [vmem:[%s10621_s28 + $0x18f8] ss:$12 sps:$4 sm:$0xff]  }
 0x377   : > { %8992 = vmatprep.subr.bf16.mxu1 %v10237_v44 }
 0x378   : > { %v8716_v45 = vpop.f32.mrf.mxu0  ;;  %7497 = vmatmul.mubr.bf16.vlgmr.msra.gmra.mxu0 %v11288_v13 }
 0x379   : > { %9009 = vmatpush3.bf16.msra.mxu0 %v10240_v52  ;;  %7576 = vmatprep.mubr.bf16.mxu0 %v11296_v41  ;;  %v10251_v41 = vld [vmem:[%s10621_s28 + $0x1520] ss:$12 sps:$4 sm:$0xff]  }
 0x37a   : > { %8993 = vmatpush3.bf16.msra.mxu1 %v10239_v0  ;;  %v8717_v2 = vpop.f32.mrf.mxu0  ;;  %9010 = vmatprep.subr.bf16.mxu0 %v10242_v43  ;;  %v10277_v0 = vld [vmem:[%s10621_s28 + $0x1a00] ss:$12 sps:$4 sm:$0xff]  }
 0x37b   : > { %8994 = vmatprep.subr.bf16.mxu1 %v10241_v42  ;;  %v8718_v25 = vadd.f32 %v8717_v2, %v8716_v45  ;;  %v10278_v42 = vld [vmem:[%s10621_s28 + $0x18e0] ss:$12 sps:$4 sm:$0xff]   ;;  %v10280_v45 = vld [vmem:[%s10621_s28 + $0x19e8] ss:$12 sps:$4 sm:$0xff]  }
 0x37c   : > { %v8719_v13 = vpop.f32.mrf.mxu0  ;;  %v10279_v43 = vld [vmem:[%s10621_s28 + $0x1820] ss:$12 sps:$4 sm:$0xff]  }
 0x37d   : > { %v7019_v16 = vadd.f32 %v8718_v25, %v6979_v59  ;;  %9011 = vmatpush3.bf16.msra.mxu0 %v10244_v51  ;;  %v10282_v59 = vld [vmem:[%s10621_s28 + $0x1808] ss:$12 sps:$4 sm:$0xff]   ;;  %v10284_v51 = vld [vmem:[%s10621_s28 + $0x19b8] ss:$12 sps:$4 sm:$0xff]  }
 0x37e   : > { %8995 = vmatpush3.bf16.msra.mxu1 %v10243_v27  ;;  %v8720_v46 = vpop.f32.mrf.mxu0  ;;  %9012 = vmatprep.subr.bf16.mxu0 %v10246_v55  ;;  %v10283_v27 = vld [vmem:[%s10621_s28 + $0x19d0] ss:$12 sps:$4 sm:$0xff]  }
 0x37f   : > { %8996 = vmatprep.subr.bf16.mxu1 %v10245_v54  ;;  %v10285_v54 = vld [vmem:[%s10621_s28 + $0x19a0] ss:$12 sps:$4 sm:$0xff]   ;;  %v10287_v46 = vld [vmem:[%s10621_s28 + $0x1aa8] ss:$12 sps:$4 sm:$0xff]  }
 0x381   : > { %9013 = vmatpush3.bf16.msra.mxu0 %v10248_v32 }
 0x382   : > { %8997 = vmatpush3.bf16.msra.mxu1 %v10247_v5  ;;  %9014 = vmatprep.subr.bf16.mxu0 %v10250_v9  ;;  %v10286_v5 = vld [vmem:[%s10621_s28 + $0x1988] ss:$12 sps:$4 sm:$0xff]  }
 0x383   : > { %8998 = vmatprep.subr.bf16.mxu1 %v10249_v37  ;;  %v10288_v37 = vld [vmem:[%s10621_s28 + $0x1a90] ss:$12 sps:$4 sm:$0xff]  }
 0x385   : > { %9015 = vmatpush3.bf16.msra.mxu0 %v10252_v1 }
 0x386   : > { %8999 = vmatpush3.bf16.msra.mxu1 %v10251_v41  ;;  %9016 = vmatprep.subr.bf16.mxu0 %v10254_v56  ;;  %v10289_v56 = vld [vmem:[%s10621_s28 + $0x1a78] ss:$12 sps:$4 sm:$0xff]  }
 0x387   : > { %9000 = vmatprep.subr.bf16.mxu1 %v10253_v53 }
 0x389   : > { %9017 = vmatpush3.bf16.msra.mxu0 %v10256_v8  ;;  %v10290_v8 = vld [vmem:[%s10621_s28 + $0x1a60] ss:$12 sps:$4 sm:$0xff]  }
 0x38a   : > { %9001 = vmatpush3.bf16.msra.mxu1 %v10255_v11  ;;  %9018 = vmatprep.subr.bf16.mxu0 %v10257_v50  ;;  %v10291_v50 = vld [vmem:[%s10621_s28 + $0x1a48] ss:$12 sps:$4 sm:$0xff]  }
 0x38b   : > { %9030 = vmatprep.subr.bf16.mxu1 %v10258_v7 }
 0x38d   : > { %v8738_v30 = vpop.f32.mrf.mxu1  ;;  %7537 = vmatmul.mubr.bf16.vlgmr.msra.gmra.mxu1 %v11380_v22  ;;  %9019 = vmatpush3.bf16.msra.mxu0 %v10259_v48  ;;  %v10267_v22 = vld [vmem:[%s10621_s28 + $0x1688] ss:$12 sps:$4 sm:$0xff]  }
 0x38e   : > { %9031 = vmatpush3.bf16.msra.mxu1 %v10260_v4  ;;  %9020 = vmatprep.subr.bf16.mxu0 %v10261_v21 }
 0x38f   : > { %v8739_v10 = vpop.f32.mrf.mxu1  ;;  %9032 = vmatprep.subr.bf16.mxu1 %v10262_v47  ;;  %7616 = vmatprep.mubr.bf16.mxu1 %v11392_v36  ;;  %v10469_v36 = vmov 0  }
 0x390   : > { %v8740_v18 = vadd.f32 %v8739_v10, %v8738_v30 }
 0x391   : > { %v8741_v19 = vpop.f32.mrf.mxu1  ;;  %9021 = vmatpush3.bf16.msra.mxu0 %v10263_v14 }
 0x392   : > { %v7059_v34 = vadd.f32 %v8740_v18, %v7019_v16  ;;  %9033 = vmatpush3.bf16.msra.mxu1 %v10264_v17  ;;  %9022 = vmatprep.subr.bf16.mxu0 %v10265_v60 }
 0x393   : > { %9034 = vmatprep.subr.bf16.mxu1 %v10266_v3  ;;  %v8742_v6 = vpop.f32.mrf.mxu1 }
 0x395   : > { %9023 = vmatpush3.bf16.msra.mxu0 %v10267_v22 }
 0x396   : > { %9035 = vmatpush3.bf16.msra.mxu1 %v10268_v20  ;;  %7624 = vmatprep.subr.bf16.mxu0 %v10469_v36 }
 0x397   : > { %9036 = vmatprep.subr.bf16.mxu1 %v10269_v63 }
 0x398   : > { %v8760_v62 = vpop.f32.mrf.mxu0  ;;  %7577 = vmatmul.mubr.bf16.vlgmr.msra.gmra.mxu0 %v11384_v23 }
 0x399   : > { %7625 = vmatpush1.bf16.msra.mxu0 %v10271_v26  ;;  %8673 = vmatprep.mubr.msk.bf16.mxu0 %vm6202_vm0, %v11390_v35  ;;  %v10281_v35 = vld [vmem:[%s10621_s28 + $0x18c8] ss:$12 sps:$4 sm:$0xff]  }
 0x39a   : > { %9037 = vmatpush3.bf16.msra.mxu1 %v10270_v57  ;;  %v8761_v44 = vpop.f32.mrf.mxu0  ;;  %7626 = vmatprep.subr.bf16.mxu0 %v10469_v36 }
 0x39b   : > { %9038 = vmatprep.subr.bf16.mxu1 %v10272_v28  ;;  %v8762_v29 = vadd.f32 %v8761_v44, %v8760_v62 }
 0x39c   : > { %v8763_v40 = vpop.f32.mrf.mxu0 }
 0x39d   : > { %v7099_v23 = vadd.f32 %v8762_v29, %v7059_v34  ;;  %7627 = vmatpush1.bf16.msra.mxu0 %v10274_v33 }
 0x39e   : > { %9039 = vmatpush3.bf16.msra.mxu1 %v10273_v58  ;;  %v8764_v52 = vpop.f32.mrf.mxu0  ;;  %7628 = vmatprep.subr.bf16.mxu0 %v10469_v36 }
 0x39f   : > { %9040 = vmatprep.subr.bf16.mxu1 %v10275_v39 }
 0x3a1   : > { %7629 = vmatpush1.bf16.msra.mxu0 %v10277_v0 }
 0x3a2   : > { %9041 = vmatpush3.bf16.msra.mxu1 %v10276_v15  ;;  %7630 = vmatprep.subr.bf16.mxu0 %v10469_v36 }
 0x3a3   : > { %9042 = vmatprep.subr.bf16.mxu1 %v10278_v42 }
 0x3a5   : > { %7631 = vmatpush1.bf16.msra.mxu0 %v10280_v45 }
 0x3a6   : > { %9043 = vmatpush3.bf16.msra.mxu1 %v10279_v43  ;;  %7632 = vmatprep.subr.bf16.mxu0 %v10469_v36 }
 0x3a7   : > { %9044 = vmatprep.subr.bf16.mxu1 %v10281_v35 }
 0x3a9   : > { %7633 = vmatpush1.bf16.msra.mxu0 %v10283_v27 }
 0x3aa   : > { %9045 = vmatpush3.bf16.msra.mxu1 %v10282_v59  ;;  %7634 = vmatprep.subr.bf16.mxu0 %v10469_v36 }
 0x3ad   : > { %v8782_v2 = vpop.f32.mrf.mxu1  ;;  %7617 = vmatmul.mubr.bf16.vlgmr.msra.gmra.mxu1 %v11473_v31  ;;  %7635 = vmatpush1.bf16.msra.mxu0 %v10284_v51 }
 0x3ae   : > { %7636 = vmatprep.subr.bf16.mxu0 %v10469_v36 }
 0x3af   : > { %v8783_v55 = vpop.f32.mrf.mxu1 }
 0x3b0   : > { %v8784_v25 = vadd.f32 %v8783_v55, %v8782_v2 }
 0x3b1   : > { %v8785_v13 = vpop.f32.mrf.mxu1  ;;  %7637 = vmatpush1.bf16.msra.mxu0 %v10285_v54 }
 0x3b2   : > { %v7139_v16 = vadd.f32 %v8784_v25, %v7099_v23  ;;  %7638 = vmatprep.subr.bf16.mxu0 %v10469_v36 }
 0x3b3   : > { %v8786_v32 = vpop.f32.mrf.mxu1 }
 0x3b5   : > { %7639 = vmatpush1.bf16.msra.mxu0 %v10286_v5 }
 0x3b6   : > { %7646 = vmatprep.subr.bf16.mxu0 %v10469_v36 }
 0x3b8   : > { %v8804_v31 = vpop.f32.mrf.mxu0 }
 0x3b9   : > { %7647 = vmatpush2.bf16.msra.mxu0 %v10287_v46 }
 0x3ba   : > { %v8805_v9 = vpop.f32.mrf.mxu0  ;;  %7648 = vmatprep.subr.bf16.mxu0 %v10469_v36 }
 0x3bb   : > { %v8806_v41 = vadd.f32 %v8805_v9, %v8804_v31 }
 0x3bc   : > { %v8807_v1 = vpop.f32.mrf.mxu0 }
 0x3bd   : > { %v7179_v53 = vadd.f32 %v8806_v41, %v7139_v16  ;;  %7649 = vmatpush2.bf16.msra.mxu0 %v10288_v37 }
 0x3be   : > { %v8808_v11 = vpop.f32.mrf.mxu0  ;;  %7650 = vmatprep.subr.bf16.mxu0 %v10469_v36 }
 0x3c1   : > { %7651 = vmatpush2.bf16.msra.mxu0 %v10289_v56 }
 0x3c2   : > { %7652 = vmatprep.subr.bf16.mxu0 %v10469_v36 }
 0x3c5   : > { %7653 = vmatpush2.bf16.msra.mxu0 %v10290_v8 }
 0x3c6   : > { %7654 = vmatprep.subr.bf16.mxu0 %v10469_v36 }
 0x3c9   : > { %7655 = vmatpush2.bf16.msra.mxu0 %v10291_v50 }
 0x3cc   : > { %7657 = vmatmul.mubr.bf16.vlgmr.msra.gmra.mxu0 %v11455_v61 }
 0x3cd   : > { %v8826_v7 = vpop.f32.mrf.mxu1 }
 0x3cf   : > { %v8827_v48 = vpop.f32.mrf.mxu1 }
 0x3d0   : > { %v8828_v4 = vadd.f32 %v8827_v48, %v8826_v7 }
 0x3d1   : > { %v8829_v21 = vpop.f32.mrf.mxu1 }
 0x3d2   : > { %v7219_v47 = vadd.f32 %v8828_v4, %v7179_v53 }
 0x3d3   : > { %v8830_v30 = vpop.f32.mrf.mxu1 }
 0x3d8   : > { %v8848_v14 = vpop.f32.mrf.mxu0 }
 0x3da   : > { %v8849_v17 = vpop.f32.mrf.mxu0 }
 0x3db   : > { %v8850_v10 = vadd.f32 %v8849_v17, %v8848_v14 }
 0x3dc   : > { %v8851_v60 = vpop.f32.mrf.mxu0 }
 0x3dd   : > { %v7259_v3 = vadd.f32 %v8850_v10, %v7219_v47  ;;  %v7674_v60 = vrot.slane %v7667_v12, %v10678_v49 }
 0x3de   : > { %v8852_v18 = vpop.f32.mrf.mxu0 }
 0x3ed   : > { %v8870_v19 = vpop.f32.mrf.mxu1 }
 0x3ef   : > { %v8871_v34 = vpop.f32.mrf.mxu1 }
 0x3f0   : > { %v8872_v22 = vadd.f32 %v8871_v34, %v8870_v19 }
 0x3f1   : > { %v8873_v20 = vpop.f32.mrf.mxu1 }
 0x3f2   : > { %v7299_v63 = vadd.f32 %v8872_v22, %v7259_v3 }
 0x3f3   : > { %v8874_v6 = vpop.f32.mrf.mxu1 }
 0x3f8   : > { %v8892_v57 = vpop.f32.mrf.mxu0 }
 0x3fa   : > { %v8893_v26 = vpop.f32.mrf.mxu0 }
 0x3fb   : > { %v8894_v61 = vadd.f32 %v8893_v26, %v8892_v57 }
 0x3fc   : > { %v8895_v36 = vpop.f32.mrf.mxu0 }
 0x3fd   : > { %v7339_v28 = vadd.f32 %v8894_v61, %v7299_v63 }
 0x3fe   : > { %v8896_v62 = vpop.f32.mrf.mxu0 }
 0x40d   : > { %v8914_v58 = vpop.f32.mrf.mxu1 }
 0x40f   : > { %v8915_v33 = vpop.f32.mrf.mxu1 }
 0x410   : > { %v8916_v44 = vadd.f32 %v8915_v33, %v8914_v58 }
 0x411   : > { %v8917_v39 = vpop.f32.mrf.mxu1 }
 0x412   : > { %v7379_v29 = vadd.f32 %v8916_v44, %v7339_v28 }
 0x413   : > { %v8918_v40 = vpop.f32.mrf.mxu1 }
 0x418   : > { %v8936_v23 = vpop.f32.mrf.mxu0 }
 0x41a   : > { %v8937_v15 = vpop.f32.mrf.mxu0 }
 0x41b   : > { %v8938_v0 = vadd.f32 %v8937_v15, %v8936_v23 }
 0x41c   : > { %v8939_v52 = vpop.f32.mrf.mxu0 }
 0x41d   : > { %v7419_v42 = vadd.f32 %v8938_v0, %v7379_v29 }
 0x41e   : > { %v8940_v43 = vpop.f32.mrf.mxu0 }
 0x42d   : > { %v8958_v45 = vpop.f32.mrf.mxu1 }
 0x42f   : > { %v8959_v35 = vpop.f32.mrf.mxu1 }
 0x430   : > { %v8960_v59 = vadd.f32 %v8959_v35, %v8958_v45 }
 0x431   : > { %v8961_v27 = vpop.f32.mrf.mxu1 }
 0x432   : > { %v7459_v51 = vadd.f32 %v8960_v59, %v7419_v42 }
 0x433   : > { %v8962_v2 = vpop.f32.mrf.mxu1 }
 0x438   : > { %v8980_v54 = vpop.f32.mrf.mxu0 }
 0x43a   : > { %v8981_v55 = vpop.f32.mrf.mxu0 }
 0x43b   : > { %v8982_v25 = vadd.f32 %v8981_v55, %v8980_v54 }
 0x43c   : > { %v8983_v13 = vpop.f32.mrf.mxu0 }
 0x43d   : > { %v7499_v16 = vadd.f32 %v8982_v25, %v7459_v51 }
 0x43e   : > { %v8984_v5 = vpop.f32.mrf.mxu0 }
 0x44d   : > { %v9002_v32 = vpop.f32.mrf.mxu1 }
 0x44f   : > { %v9003_v46 = vpop.f32.mrf.mxu1 }
 0x450   : > { %v9004_v7 = vadd.f32 %v9003_v46, %v9002_v32 }
 0x451   : > { %v9005_v31 = vpop.f32.mrf.mxu1 }
 0x452   : > { %v7539_v4 = vadd.f32 %v9004_v7, %v7499_v16 }
 0x453   : > { %v9006_v37 = vpop.f32.mrf.mxu1 }
 0x458   : > { %v9024_v9 = vpop.f32.mrf.mxu0 }
 0x45a   : > { %v9025_v41 = vpop.f32.mrf.mxu0 }
 0x45b   : > { %v9026_v48 = vadd.f32 %v9025_v41, %v9024_v9 }
 0x45c   : > { %v9027_v1 = vpop.f32.mrf.mxu0 }
 0x45d   : > { %v7579_v47 = vadd.f32 %v9026_v48, %v7539_v4 }
 0x45e   : > { %v9028_v53 = vpop.f32.mrf.mxu0 }
 0x46d   : > { %v9046_v56 = vpop.f32.mrf.mxu1 }
 0x46f   : > { %v9047_v11 = vpop.f32.mrf.mxu1 }
 0x470   : > { %v9048_v21 = vadd.f32 %v9047_v11, %v9046_v56 }
 0x471   : > { %v9049_v8 = vpop.f32.mrf.mxu1 }
 0x472   : > { %v7619_v30 = vadd.f32 %v9048_v21, %v7579_v47 }
 0x473   : > { %v9050_v50 = vpop.f32.mrf.mxu1 }
 0x48c   : > { %v7658_v14 = vpop.f32.mrf.mxu0 }
 0x48d   : > { %v7659_v17 = vadd.f32 %v7658_v14, %v7619_v30 }
 0x48e   : > { %v7660_v10 = vpop.f32.mrf.mxu0 }
 0x48f   : > { %v7681_v3 = vrot.slane %v7659_v17, %v10678_v49 }
 0x490   : > { %v7661_v18 = vpop.f32.mrf.mxu0 }
 0x491   : > { %v7682_v19 = vcombine.low %v7674_v60, %v7681_v3 }
 0x492   : > { %v7662_v34 = vpop.f32.mrf.mxu0 }
 0x493   : > { %7684 = vst [vmem:[%s235_s8] sm:$0x3f] %v7682_v19 }
 0x494   : > { %10386 = shalt.err (!%p10383_p13)
}
 0x495   : > { %s10387_s30 = scalar_lea.hbm %s11839_s26, 96  ;;  %s10391_s28 = scalar_lea.hbm %s11883_s3, 1824 }
 0x496   : > { %p10388_p0 = scmp.ne.s32.totalorder %s11839_s26, %s10387_s30  ;;  %p10392_p3 = scmp.lt.s32.totalorder %s11839_s26, %s11883_s3 }
 0x497   : > { %p10393_p7 = scmp.lt.s32.totalorder %s10391_s28, %s10387_s30 }
 0x498   : > { %p10389_p6 = pnand %p10388_p0, %p11905_p12 }
 0x499   : > { %p10394_p8 = por %p10393_p7, %p10392_p3 }
 0x49a   : > { %p10390_p5 = pneg %p10389_p6 }
 0x49c   : > { %p10395_p9 = pnand %p10394_p8, %p10390_p5 }
 0x49e   : > { %10398 = shalt.err (!%p10395_p9)
}
 0x49f   : > { %9066 = dma.vmem_to_hbm [thread:$0]  (%p11905_p12), %s7703_s9, 96, %s11839_s26, %s7686_s15  }
 0x4a0 PF: > { %p9088_p1 = scmp.ge.s32.totalorder %s10461_s17, 2  ;;  %s7714_s25 = sand.u32 1, %s10441_s12  }
 0x4a1   : > { %p11906_p2 = scmp.ne.s32.totalorder %s11893_s24, 0  ;;  %s7715_s6 = scalar_lea.sflag [#allocation4], %s7714_s25 }
 0x4a3   : > { %p9080_p4 = pnand %p9088_p1, %p11906_p2 }
 0x4a5   : > { %p9081_p10 = pneg %p9080_p4 }
 0x4a7   : > { %10436 = dma.done.wait (%p9081_p10), %s7715_s6, 96  }
 0x4a8   : > { %10438 = vsyncadd (%p9081_p10), %s7715_s6, 4294967200  ;;  %s20_s17 = sadd.s32 1, %s10461_s17   ;;  %s11907_s12 = smov %s10445_s13 }
 0x4a9   : > { %p17_p11 = scmp.ge.s32.totalorder %s20_s17, 21   ;;  %s11908_s13 = smov %s10449_s14 }
 0x4aa   : > { %s11909_s14 = smov %s10604_s4  ;;  %s11910_s15 = smov %s10457_s16 }
 0x4ab   : > { %s11911_s16 = smov %s11913_s21  ;;  %19 = sbr.rel (!%p17_p11) target bundleno = 9 (0x9), region = 88 }
 0x4b0   :  { %7720 = vsyncpa [#allocation3], 1 }
 0x4b1   :  { %7722 = vsyncpa [#allocation3 + $0x1], 1 }
 0x4b2   :  { %7723 = vsyncpa [#allocation6], 1 }
 0x4b3   :  { %7725 = vsyncpa [#allocation6 + $0x1], 1 }
 0x4b4   :  { %7726 = vsyncpa [#allocation4], 1 }
 0x4b5   :  { %7728 = vsyncpa [#allocation4 + $0x1], 1 }

</bundles_post_ra>
